<compile_context>
chip_gen: v7x
topology: tpu7x:2x2x1
jax: 0.10.0
libtpu: 0.0.40
codegen_flags: <defaults>
</compile_context>

<pallas_src>
import jax
import jax.numpy as jnp
from jax import lax
from jax.experimental import pallas as pl
from jax.experimental.pallas import tpu as pltpu


# Architecture constants implied by the module (Linear(64*4*4) pins a 28x28 input).
_KH = 5
_HIN = 28              # input spatial size
_OH1, _PH1 = 24, 12    # conv1 output / pool1 output spatial size
_OH2, _PH2 = 8, 4      # conv2 output / pool2 output spatial size
_NPAD = 128            # lane-dense padded width of the final Linear output


# ----------------------------- fused Pallas kernel ------------------------------

def _cnn_fused_kernel(x_ref, t1_ref, pe_ref, po_ref, b1_ref,
                      u2_ref, qe_ref, qo_ref, b2_ref, wl_ref, bl_ref, o_ref):
    f32, bf16 = jnp.float32, jnp.bfloat16
    kh = t1_ref.shape[0]
    oh1, oh2 = pe_ref.shape[1], qe_ref.shape[1]      # 24, 8
    n1, n2 = b1_ref.shape[1], b2_ref.shape[1]        # 12*32, 4*64

    x = x_ref[0]                                     # (28, 28*Cin) f32

    # conv1 fused with the W half of maxpool1: kh Toeplitz matmuls; lanes [:n1] hold the
    # even pooled-W columns, lanes [n1:] the odd ones.
    y1 = jnp.zeros((oh1, 2 * n1), f32)
    for i in range(kh):
        y1 = y1 + jnp.dot(x[i:i + oh1, :].astype(bf16), t1_ref[i],
                          preferred_element_type=f32)
    y1 = jnp.maximum(y1[:, :n1], y1[:, n1:]).astype(bf16)        # (24, 384)

    # H half of maxpool1 via 0/1 row-selection matmuls; conv1 bias (commutes with the max).
    p1 = jnp.maximum(jnp.dot(pe_ref[...], y1, preferred_element_type=f32),
                     jnp.dot(po_ref[...], y1, preferred_element_type=f32))
    p1 = p1 + b1_ref[...]                                        # (12, 384) f32

    # conv2 fused with the W half of maxpool2.
    y2 = jnp.zeros((oh2, 2 * n2), f32)
    for i in range(kh):
        y2 = y2 + jnp.dot(p1[i:i + oh2, :].astype(bf16), u2_ref[i],
                          preferred_element_type=f32)
    y2 = jnp.maximum(y2[:, :n2], y2[:, n2:]).astype(bf16)        # (8, 256)

    # H half of maxpool2; conv2 bias.
    p2 = jnp.maximum(jnp.dot(qe_ref[...], y2, preferred_element_type=f32),
                     jnp.dot(qo_ref[...], y2, preferred_element_type=f32))
    p2 = p2 + b2_ref[...]                                        # (4, 256) f32

    # Linear (+ fused ReLU). Torch's NCHW flatten order is folded into wl_ref's layout,
    # and the output stays lane-dense (padded to 128 columns).
    acc = jnp.zeros((1, wl_ref.shape[2]), f32)
    for h in range(wl_ref.shape[0]):
        acc = acc + jnp.dot(p2[h:h + 1, :].astype(bf16), wl_ref[h],
                            preferred_element_type=f32)
    acc = jnp.maximum(acc + bl_ref[...], 0.0)
    o_ref[...] = acc.reshape(o_ref.shape)


# --------------------------- wrapper-side layout glue ----------------------------

def _conv_pool_weight(w_oihw, in_w, out_pw):
    """Build (kh, in_w*Ci, 2*out_pw*Co) bf16 Toeplitz weights.

    Row block i, contracted with rows [i, i+OH) of the (H, W*Ci) activation, yields the
    VALID 5x5 conv outputs at the even (first out_pw*Co lanes) and odd (last out_pw*Co
    lanes) W positions of every 2x2 pooling window; column index = pw*Co + co."""
    co, ci, kh, kw = w_oihw.shape
    wk = jnp.transpose(w_oihw, (2, 3, 1, 0))                   # (kh, kw, Ci, Co)
    w_pos = jnp.arange(in_w)[:, None]                          # (in_w, 1)
    halves = []
    for off in (0, 1):
        jj = w_pos - (2 * jnp.arange(out_pw)[None, :] + off)   # (in_w, out_pw): tap index
        valid = (jj >= 0) & (jj < kw)
        g = wk[:, jnp.clip(jj, 0, kw - 1), :, :]               # (kh, in_w, out_pw, Ci, Co)
        g = jnp.where(valid[None, :, :, None, None], g, 0.0)
        g = jnp.transpose(g, (0, 1, 3, 2, 4))                  # (kh, in_w, Ci, out_pw, Co)
        halves.append(g.reshape(kh, in_w * ci, out_pw * co))
    return jnp.concatenate(halves, axis=-1).astype(jnp.bfloat16)


def _row_select(out_rows, in_rows, offset):
    """0/1 matrix selecting rows offset, offset+2, ...; shape (out_rows, in_rows), bf16."""
    return jax.nn.one_hot(2 * jnp.arange(out_rows) + offset, in_rows, dtype=jnp.bfloat16)


def cnn_forward(x_nchw, params):
    w1, b1, w2, b2, wl, bl = params
    B, cin, H, W = x_nchw.shape
    assert (H, W) == (_HIN, _HIN), "Linear(64*4*4) implies a 28x28 input"
    c1, c2 = w1.shape[0], w2.shape[0]
    classes = wl.shape[0]

    # Parameter layout glue (tiny, pure XLA; everything below is MXU-ready bf16).
    t1 = _conv_pool_weight(w1, _HIN, _PH1)                     # (5, 28*cin, 2*12*c1)
    u2 = _conv_pool_weight(w2, _PH1, _PH2)                     # (5, 12*c1, 2*4*c2)
    pe, po = _row_select(_PH1, _OH1, 0), _row_select(_PH1, _OH1, 1)
    qe, qo = _row_select(_PH2, _OH2, 0), _row_select(_PH2, _OH2, 1)
    b1_t = jnp.tile(b1, _PH1).reshape(1, _PH1 * c1).astype(jnp.float32)
    b2_t = jnp.tile(b2, _PH2).reshape(1, _PH2 * c2).astype(jnp.float32)
    # Linear weights re-ordered so contracting over (h, w*c2+c) reproduces torch's
    # x.view(B, -1) flatten of the NCHW (c2, 4, 4) tensor; padded to 128 output lanes.
    wl_r = jnp.transpose(wl.reshape(classes, c2, _PH2, _PH2), (2, 3, 1, 0))
    wl_r = wl_r.reshape(_PH2, _PH2 * c2, classes)
    wl_r = jnp.pad(wl_r, ((0, 0), (0, 0), (0, _NPAD - classes))).astype(jnp.bfloat16)
    bl_p = jnp.pad(bl, (0, _NPAD - classes)).reshape(1, _NPAD).astype(jnp.float32)

    # Per-image activation view: (28, 28*cin) with lane index = w*cin + ci.
    x2d = jnp.transpose(x_nchw, (0, 2, 3, 1)).reshape(B, _HIN, _HIN * cin)
    x2d = x2d.astype(jnp.float32)

    def _full(a):
        return pl.BlockSpec(a.shape, lambda b, _nd=a.ndim: (0,) * _nd)

    out = pl.pallas_call(
        _cnn_fused_kernel,
        out_shape=jax.ShapeDtypeStruct((B, 1, _NPAD), jnp.float32),
        grid=(B,),
        in_specs=[pl.BlockSpec((1, _HIN, _HIN * cin), lambda b: (b, 0, 0)),
                  _full(t1), _full(pe), _full(po), _full(b1_t),
                  _full(u2), _full(qe), _full(qo), _full(b2_t),
                  _full(wl_r), _full(bl_p)],
        out_specs=pl.BlockSpec((1, 1, _NPAD), lambda b: (b, 0, 0)),
        compiler_params=pltpu.CompilerParams(
            dimension_semantics=("parallel",),
            vmem_limit_bytes=32 * 1024 * 1024),
    )(x2d, t1, pe, po, b1_t, u2, qe, qo, b2_t, wl_r, bl_p)

    return out[:, 0, :classes]


# --------------------------- pure-JAX reference ------------------------------

def cnn_reference(x_nchw, params):
    w1, b1, w2, b2, wl, bl = params
    dn = ('NCHW', 'OIHW', 'NCHW')

    def pool(t):
        return lax.reduce_window(t, jnp.array(-jnp.inf, t.dtype), lax.max,
                                 (1, 1, 2, 2), (1, 1, 2, 2), 'VALID')

    y = lax.conv_general_dilated(x_nchw, w1, (1, 1), 'VALID', dimension_numbers=dn)
    y = y + b1[None, :, None, None]
    y = pool(y)
    y = lax.conv_general_dilated(y, w2, (1, 1), 'VALID', dimension_numbers=dn)
    y = y + b2[None, :, None, None]
    y = pool(y)
    y = y.reshape(y.shape[0], -1)
    y = y @ wl.T + bl
    return jnp.maximum(y, 0.0)


if __name__ == "__main__":
    key = jax.random.PRNGKey(0)
    k1, k2, k3, k4, k5, k6, kx = jax.random.split(key, 7)

    # Deterministic synthetic parameters (torch shapes: Conv2d OIHW, Linear (out, in)).
    w1 = (0.10 * jax.random.normal(k1, (32, 1, 5, 5))).astype(jnp.float32)
    b1 = (0.10 * jax.random.normal(k2, (32,))).astype(jnp.float32)
    w2 = (0.05 * jax.random.normal(k3, (64, 32, 5, 5))).astype(jnp.float32)
    b2 = (0.05 * jax.random.normal(k4, (64,))).astype(jnp.float32)
    wl = (0.05 * jax.random.normal(k5, (10, 64 * 4 * 4))).astype(jnp.float32)
    bl = (0.05 * jax.random.normal(k6, (10,))).astype(jnp.float32)
    params = (w1, b1, w2, b2, wl, bl)

    # batch=2, in_channels=1, 28x28 spatial (Linear(64*4*4) implies a 28x28 input).
    x = jax.random.normal(kx, (2, 1, 28, 28), dtype=jnp.float32)

    out = jax.block_until_ready(jax.jit(cnn_forward)(x, params))
    ref = jax.block_until_ready(cnn_reference(x, params))

    assert out.shape == (2, 10) and out.dtype == jnp.float32
    assert bool(jnp.allclose(out, ref, atol=5e-2, rtol=5e-2)), (
        f"mismatch: max |diff| = {float(jnp.max(jnp.abs(out - ref)))}")
    print("KERNEL_OK")
</pallas_src>

<mosaic_0001>
module attributes {stable_mosaic.version = 11 : i64} {
  func.func @_cnn_fused_kernel(%arg0: i32, %arg1: memref<1x28x28xf32, #tpu.memory_space<vmem>>, %arg2: memref<5x28x768xbf16, #tpu.memory_space<vmem>>, %arg3: memref<12x24xbf16, #tpu.memory_space<vmem>>, %arg4: memref<12x24xbf16, #tpu.memory_space<vmem>>, %arg5: memref<1x384xf32, #tpu.memory_space<vmem>>, %arg6: memref<5x384x512xbf16, #tpu.memory_space<vmem>>, %arg7: memref<4x8xbf16, #tpu.memory_space<vmem>>, %arg8: memref<4x8xbf16, #tpu.memory_space<vmem>>, %arg9: memref<1x256xf32, #tpu.memory_space<vmem>>, %arg10: memref<4x256x128xbf16, #tpu.memory_space<vmem>>, %arg11: memref<1x128xf32, #tpu.memory_space<vmem>>, %arg12: memref<1x1x128xf32, #tpu.memory_space<vmem>>) attributes {dimension_semantics = [#tpu.dimension_semantics<parallel>], iteration_bounds = array<i64: 2>, scalar_prefetch = 0 : i64, scratch_operands = 0 : i64, tpu.core_type = #tpu.core_type<tc>, window_params = [{transform_indices = @transform_0, window_bounds = array<i64: 1, 28, 28>}, {pipeline_mode = #tpu.pipeline_mode<synchronous>, transform_indices = @transform_1, window_bounds = array<i64: 5, 28, 768>}, {pipeline_mode = #tpu.pipeline_mode<synchronous>, transform_indices = @transform_2, window_bounds = array<i64: 12, 24>}, {pipeline_mode = #tpu.pipeline_mode<synchronous>, transform_indices = @transform_3, window_bounds = array<i64: 12, 24>}, {pipeline_mode = #tpu.pipeline_mode<synchronous>, transform_indices = @transform_4, window_bounds = array<i64: 1, 384>}, {pipeline_mode = #tpu.pipeline_mode<synchronous>, transform_indices = @transform_5, window_bounds = array<i64: 5, 384, 512>}, {pipeline_mode = #tpu.pipeline_mode<synchronous>, transform_indices = @transform_6, window_bounds = array<i64: 4, 8>}, {pipeline_mode = #tpu.pipeline_mode<synchronous>, transform_indices = @transform_7, window_bounds = array<i64: 4, 8>}, {pipeline_mode = #tpu.pipeline_mode<synchronous>, transform_indices = @transform_8, window_bounds = array<i64: 1, 256>}, {pipeline_mode = #tpu.pipeline_mode<synchronous>, transform_indices = @transform_9, window_bounds = array<i64: 4, 256, 128>}, {pipeline_mode = #tpu.pipeline_mode<synchronous>, transform_indices = @transform_10, window_bounds = array<i64: 1, 128>}, {transform_indices = @transform_11, window_bounds = array<i64: 1, 1, 128>}]} {
    %c0 = arith.constant 0 : index
    %c0_0 = arith.constant 0 : index
    %c0_1 = arith.constant 0 : index
    %0 = vector.load %arg1[%c0, %c0_0, %c0_1] : memref<1x28x28xf32, #tpu.memory_space<vmem>>, vector<1x28x28xf32>
    %1 = vector.shape_cast %0 : vector<1x28x28xf32> to vector<28x28xf32>
    %cst = arith.constant 0.000000e+00 : f32
    %2 = vector.broadcast %cst : f32 to vector<24x768xf32>
    %3 = vector.extract_strided_slice %1 {offsets = [0, 0], sizes = [24, 28], strides = [1, 1]} : vector<28x28xf32> to vector<24x28xf32>
    %4 = arith.truncf %3 : vector<24x28xf32> to vector<24x28xbf16>
    %c0_2 = arith.constant 0 : index
    %c0_3 = arith.constant 0 : index
    %c0_4 = arith.constant 0 : index
    %5 = vector.load %arg2[%c0_2, %c0_3, %c0_4] : memref<5x28x768xbf16, #tpu.memory_space<vmem>>, vector<1x28x768xbf16>
    %6 = vector.shape_cast %5 : vector<1x28x768xbf16> to vector<28x768xbf16>
    %cst_5 = arith.constant dense<0.000000e+00> : vector<24x768xf32>
    %7 = tpu.matmul %4, %6, %cst_5 {dimension_numbers = #tpu.dot_dimension_numbers<[1], [0], [0], [1], [0, 0, 1, 1], [], []>} : vector<24x28xbf16>, vector<28x768xbf16>, vector<24x768xf32> -> vector<24x768xf32>
    %8 = arith.addf %2, %7 : vector<24x768xf32>
    %9 = vector.extract_strided_slice %1 {offsets = [1, 0], sizes = [24, 28], strides = [1, 1]} : vector<28x28xf32> to vector<24x28xf32>
    %10 = arith.truncf %9 : vector<24x28xf32> to vector<24x28xbf16>
    %c1 = arith.constant 1 : index
    %c0_6 = arith.constant 0 : index
    %c0_7 = arith.constant 0 : index
    %11 = vector.load %arg2[%c1, %c0_6, %c0_7] : memref<5x28x768xbf16, #tpu.memory_space<vmem>>, vector<1x28x768xbf16>
    %12 = vector.shape_cast %11 : vector<1x28x768xbf16> to vector<28x768xbf16>
    %cst_8 = arith.constant dense<0.000000e+00> : vector<24x768xf32>
    %13 = tpu.matmul %10, %12, %cst_8 {dimension_numbers = #tpu.dot_dimension_numbers<[1], [0], [0], [1], [0, 0, 1, 1], [], []>} : vector<24x28xbf16>, vector<28x768xbf16>, vector<24x768xf32> -> vector<24x768xf32>
    %14 = arith.addf %8, %13 : vector<24x768xf32>
    %15 = vector.extract_strided_slice %1 {offsets = [2, 0], sizes = [24, 28], strides = [1, 1]} : vector<28x28xf32> to vector<24x28xf32>
    %16 = arith.truncf %15 : vector<24x28xf32> to vector<24x28xbf16>
    %c2 = arith.constant 2 : index
    %c0_9 = arith.constant 0 : index
    %c0_10 = arith.constant 0 : index
    %17 = vector.load %arg2[%c2, %c0_9, %c0_10] : memref<5x28x768xbf16, #tpu.memory_space<vmem>>, vector<1x28x768xbf16>
    %18 = vector.shape_cast %17 : vector<1x28x768xbf16> to vector<28x768xbf16>
    %cst_11 = arith.constant dense<0.000000e+00> : vector<24x768xf32>
    %19 = tpu.matmul %16, %18, %cst_11 {dimension_numbers = #tpu.dot_dimension_numbers<[1], [0], [0], [1], [0, 0, 1, 1], [], []>} : vector<24x28xbf16>, vector<28x768xbf16>, vector<24x768xf32> -> vector<24x768xf32>
    %20 = arith.addf %14, %19 : vector<24x768xf32>
    %21 = vector.extract_strided_slice %1 {offsets = [3, 0], sizes = [24, 28], strides = [1, 1]} : vector<28x28xf32> to vector<24x28xf32>
    %22 = arith.truncf %21 : vector<24x28xf32> to vector<24x28xbf16>
    %c3 = arith.constant 3 : index
    %c0_12 = arith.constant 0 : index
    %c0_13 = arith.constant 0 : index
    %23 = vector.load %arg2[%c3, %c0_12, %c0_13] : memref<5x28x768xbf16, #tpu.memory_space<vmem>>, vector<1x28x768xbf16>
    %24 = vector.shape_cast %23 : vector<1x28x768xbf16> to vector<28x768xbf16>
    %cst_14 = arith.constant dense<0.000000e+00> : vector<24x768xf32>
    %25 = tpu.matmul %22, %24, %cst_14 {dimension_numbers = #tpu.dot_dimension_numbers<[1], [0], [0], [1], [0, 0, 1, 1], [], []>} : vector<24x28xbf16>, vector<28x768xbf16>, vector<24x768xf32> -> vector<24x768xf32>
    %26 = arith.addf %20, %25 : vector<24x768xf32>
    %27 = vector.extract_strided_slice %1 {offsets = [4, 0], sizes = [24, 28], strides = [1, 1]} : vector<28x28xf32> to vector<24x28xf32>
    %28 = arith.truncf %27 : vector<24x28xf32> to vector<24x28xbf16>
    %c4 = arith.constant 4 : index
    %c0_15 = arith.constant 0 : index
    %c0_16 = arith.constant 0 : index
    %29 = vector.load %arg2[%c4, %c0_15, %c0_16] : memref<5x28x768xbf16, #tpu.memory_space<vmem>>, vector<1x28x768xbf16>
    %30 = vector.shape_cast %29 : vector<1x28x768xbf16> to vector<28x768xbf16>
    %cst_17 = arith.constant dense<0.000000e+00> : vector<24x768xf32>
    %31 = tpu.matmul %28, %30, %cst_17 {dimension_numbers = #tpu.dot_dimension_numbers<[1], [0], [0], [1], [0, 0, 1, 1], [], []>} : vector<24x28xbf16>, vector<28x768xbf16>, vector<24x768xf32> -> vector<24x768xf32>
    %32 = arith.addf %26, %31 : vector<24x768xf32>
    %33 = vector.extract_strided_slice %32 {offsets = [0, 0], sizes = [24, 384], strides = [1, 1]} : vector<24x768xf32> to vector<24x384xf32>
    %34 = vector.extract_strided_slice %32 {offsets = [0, 384], sizes = [24, 384], strides = [1, 1]} : vector<24x768xf32> to vector<24x384xf32>
    %35 = arith.maximumf %33, %34 : vector<24x384xf32>
    %36 = arith.truncf %35 : vector<24x384xf32> to vector<24x384xbf16>
    %c0_18 = arith.constant 0 : index
    %c0_19 = arith.constant 0 : index
    %37 = vector.load %arg3[%c0_18, %c0_19] : memref<12x24xbf16, #tpu.memory_space<vmem>>, vector<12x24xbf16>
    %cst_20 = arith.constant dense<0.000000e+00> : vector<12x384xf32>
    %38 = tpu.matmul %37, %36, %cst_20 {dimension_numbers = #tpu.dot_dimension_numbers<[1], [0], [0], [1], [0, 0, 1, 1], [], []>} : vector<12x24xbf16>, vector<24x384xbf16>, vector<12x384xf32> -> vector<12x384xf32>
    %c0_21 = arith.constant 0 : index
    %c0_22 = arith.constant 0 : index
    %39 = vector.load %arg4[%c0_21, %c0_22] : memref<12x24xbf16, #tpu.memory_space<vmem>>, vector<12x24xbf16>
    %cst_23 = arith.constant dense<0.000000e+00> : vector<12x384xf32>
    %40 = tpu.matmul %39, %36, %cst_23 {dimension_numbers = #tpu.dot_dimension_numbers<[1], [0], [0], [1], [0, 0, 1, 1], [], []>} : vector<12x24xbf16>, vector<24x384xbf16>, vector<12x384xf32> -> vector<12x384xf32>
    %41 = arith.maximumf %38, %40 : vector<12x384xf32>
    %c0_24 = arith.constant 0 : index
    %c0_25 = arith.constant 0 : index
    %42 = vector.load %arg5[%c0_24, %c0_25] : memref<1x384xf32, #tpu.memory_space<vmem>>, vector<1x384xf32>
    %43 = vector.broadcast %42 : vector<1x384xf32> to vector<12x384xf32>
    %44 = arith.addf %41, %43 : vector<12x384xf32>
    %cst_26 = arith.constant 0.000000e+00 : f32
    %45 = vector.broadcast %cst_26 : f32 to vector<8x512xf32>
    %46 = vector.extract_strided_slice %44 {offsets = [0, 0], sizes = [8, 384], strides = [1, 1]} : vector<12x384xf32> to vector<8x384xf32>
    %47 = arith.truncf %46 : vector<8x384xf32> to vector<8x384xbf16>
    %c0_27 = arith.constant 0 : index
    %c0_28 = arith.constant 0 : index
    %c0_29 = arith.constant 0 : index
    %48 = vector.load %arg6[%c0_27, %c0_28, %c0_29] : memref<5x384x512xbf16, #tpu.memory_space<vmem>>, vector<1x384x512xbf16>
    %49 = vector.shape_cast %48 : vector<1x384x512xbf16> to vector<384x512xbf16>
    %cst_30 = arith.constant dense<0.000000e+00> : vector<8x512xf32>
    %50 = tpu.matmul %47, %49, %cst_30 {dimension_numbers = #tpu.dot_dimension_numbers<[1], [0], [0], [1], [0, 0, 1, 1], [], []>} : vector<8x384xbf16>, vector<384x512xbf16>, vector<8x512xf32> -> vector<8x512xf32>
    %51 = arith.addf %45, %50 : vector<8x512xf32>
    %52 = vector.extract_strided_slice %44 {offsets = [1, 0], sizes = [8, 384], strides = [1, 1]} : vector<12x384xf32> to vector<8x384xf32>
    %53 = arith.truncf %52 : vector<8x384xf32> to vector<8x384xbf16>
    %c1_31 = arith.constant 1 : index
    %c0_32 = arith.constant 0 : index
    %c0_33 = arith.constant 0 : index
    %54 = vector.load %arg6[%c1_31, %c0_32, %c0_33] : memref<5x384x512xbf16, #tpu.memory_space<vmem>>, vector<1x384x512xbf16>
    %55 = vector.shape_cast %54 : vector<1x384x512xbf16> to vector<384x512xbf16>
    %cst_34 = arith.constant dense<0.000000e+00> : vector<8x512xf32>
    %56 = tpu.matmul %53, %55, %cst_34 {dimension_numbers = #tpu.dot_dimension_numbers<[1], [0], [0], [1], [0, 0, 1, 1], [], []>} : vector<8x384xbf16>, vector<384x512xbf16>, vector<8x512xf32> -> vector<8x512xf32>
    %57 = arith.addf %51, %56 : vector<8x512xf32>
    %58 = vector.extract_strided_slice %44 {offsets = [2, 0], sizes = [8, 384], strides = [1, 1]} : vector<12x384xf32> to vector<8x384xf32>
    %59 = arith.truncf %58 : vector<8x384xf32> to vector<8x384xbf16>
    %c2_35 = arith.constant 2 : index
    %c0_36 = arith.constant 0 : index
    %c0_37 = arith.constant 0 : index
    %60 = vector.load %arg6[%c2_35, %c0_36, %c0_37] : memref<5x384x512xbf16, #tpu.memory_space<vmem>>, vector<1x384x512xbf16>
    %61 = vector.shape_cast %60 : vector<1x384x512xbf16> to vector<384x512xbf16>
    %cst_38 = arith.constant dense<0.000000e+00> : vector<8x512xf32>
    %62 = tpu.matmul %59, %61, %cst_38 {dimension_numbers = #tpu.dot_dimension_numbers<[1], [0], [0], [1], [0, 0, 1, 1], [], []>} : vector<8x384xbf16>, vector<384x512xbf16>, vector<8x512xf32> -> vector<8x512xf32>
    %63 = arith.addf %57, %62 : vector<8x512xf32>
    %64 = vector.extract_strided_slice %44 {offsets = [3, 0], sizes = [8, 384], strides = [1, 1]} : vector<12x384xf32> to vector<8x384xf32>
    %65 = arith.truncf %64 : vector<8x384xf32> to vector<8x384xbf16>
    %c3_39 = arith.constant 3 : index
    %c0_40 = arith.constant 0 : index
    %c0_41 = arith.constant 0 : index
    %66 = vector.load %arg6[%c3_39, %c0_40, %c0_41] : memref<5x384x512xbf16, #tpu.memory_space<vmem>>, vector<1x384x512xbf16>
    %67 = vector.shape_cast %66 : vector<1x384x512xbf16> to vector<384x512xbf16>
    %cst_42 = arith.constant dense<0.000000e+00> : vector<8x512xf32>
    %68 = tpu.matmul %65, %67, %cst_42 {dimension_numbers = #tpu.dot_dimension_numbers<[1], [0], [0], [1], [0, 0, 1, 1], [], []>} : vector<8x384xbf16>, vector<384x512xbf16>, vector<8x512xf32> -> vector<8x512xf32>
    %69 = arith.addf %63, %68 : vector<8x512xf32>
    %70 = vector.extract_strided_slice %44 {offsets = [4, 0], sizes = [8, 384], strides = [1, 1]} : vector<12x384xf32> to vector<8x384xf32>
    %71 = arith.truncf %70 : vector<8x384xf32> to vector<8x384xbf16>
    %c4_43 = arith.constant 4 : index
    %c0_44 = arith.constant 0 : index
    %c0_45 = arith.constant 0 : index
    %72 = vector.load %arg6[%c4_43, %c0_44, %c0_45] : memref<5x384x512xbf16, #tpu.memory_space<vmem>>, vector<1x384x512xbf16>
    %73 = vector.shape_cast %72 : vector<1x384x512xbf16> to vector<384x512xbf16>
    %cst_46 = arith.constant dense<0.000000e+00> : vector<8x512xf32>
    %74 = tpu.matmul %71, %73, %cst_46 {dimension_numbers = #tpu.dot_dimension_numbers<[1], [0], [0], [1], [0, 0, 1, 1], [], []>} : vector<8x384xbf16>, vector<384x512xbf16>, vector<8x512xf32> -> vector<8x512xf32>
    %75 = arith.addf %69, %74 : vector<8x512xf32>
    %76 = vector.extract_strided_slice %75 {offsets = [0, 0], sizes = [8, 256], strides = [1, 1]} : vector<8x512xf32> to vector<8x256xf32>
    %77 = vector.extract_strided_slice %75 {offsets = [0, 256], sizes = [8, 256], strides = [1, 1]} : vector<8x512xf32> to vector<8x256xf32>
    %78 = arith.maximumf %76, %77 : vector<8x256xf32>
    %79 = arith.truncf %78 : vector<8x256xf32> to vector<8x256xbf16>
    %c0_47 = arith.constant 0 : index
    %c0_48 = arith.constant 0 : index
    %80 = vector.load %arg7[%c0_47, %c0_48] : memref<4x8xbf16, #tpu.memory_space<vmem>>, vector<4x8xbf16>
    %cst_49 = arith.constant dense<0.000000e+00> : vector<4x256xf32>
    %81 = tpu.matmul %80, %79, %cst_49 {dimension_numbers = #tpu.dot_dimension_numbers<[1], [0], [0], [1], [0, 0, 1, 1], [], []>} : vector<4x8xbf16>, vector<8x256xbf16>, vector<4x256xf32> -> vector<4x256xf32>
    %c0_50 = arith.constant 0 : index
    %c0_51 = arith.constant 0 : index
    %82 = vector.load %arg8[%c0_50, %c0_51] : memref<4x8xbf16, #tpu.memory_space<vmem>>, vector<4x8xbf16>
    %cst_52 = arith.constant dense<0.000000e+00> : vector<4x256xf32>
    %83 = tpu.matmul %82, %79, %cst_52 {dimension_numbers = #tpu.dot_dimension_numbers<[1], [0], [0], [1], [0, 0, 1, 1], [], []>} : vector<4x8xbf16>, vector<8x256xbf16>, vector<4x256xf32> -> vector<4x256xf32>
    %84 = arith.maximumf %81, %83 : vector<4x256xf32>
    %c0_53 = arith.constant 0 : index
    %c0_54 = arith.constant 0 : index
    %85 = vector.load %arg9[%c0_53, %c0_54] : memref<1x256xf32, #tpu.memory_space<vmem>>, vector<1x256xf32>
    %86 = vector.broadcast %85 : vector<1x256xf32> to vector<4x256xf32>
    %87 = arith.addf %84, %86 : vector<4x256xf32>
    %cst_55 = arith.constant 0.000000e+00 : f32
    %88 = vector.broadcast %cst_55 : f32 to vector<1x128xf32>
    %89 = vector.extract_strided_slice %87 {offsets = [0, 0], sizes = [1, 256], strides = [1, 1]} : vector<4x256xf32> to vector<1x256xf32>
    %90 = arith.truncf %89 : vector<1x256xf32> to vector<1x256xbf16>
    %c0_56 = arith.constant 0 : index
    %c0_57 = arith.constant 0 : index
    %c0_58 = arith.constant 0 : index
    %91 = vector.load %arg10[%c0_56, %c0_57, %c0_58] : memref<4x256x128xbf16, #tpu.memory_space<vmem>>, vector<1x256x128xbf16>
    %92 = vector.shape_cast %91 : vector<1x256x128xbf16> to vector<256x128xbf16>
    %cst_59 = arith.constant dense<0.000000e+00> : vector<1x128xf32>
    %93 = tpu.matmul %90, %92, %cst_59 {dimension_numbers = #tpu.dot_dimension_numbers<[1], [0], [0], [1], [0, 0, 1, 1], [], []>} : vector<1x256xbf16>, vector<256x128xbf16>, vector<1x128xf32> -> vector<1x128xf32>
    %94 = arith.addf %88, %93 : vector<1x128xf32>
    %95 = vector.extract_strided_slice %87 {offsets = [1, 0], sizes = [1, 256], strides = [1, 1]} : vector<4x256xf32> to vector<1x256xf32>
    %96 = arith.truncf %95 : vector<1x256xf32> to vector<1x256xbf16>
    %c1_60 = arith.constant 1 : index
    %c0_61 = arith.constant 0 : index
    %c0_62 = arith.constant 0 : index
    %97 = vector.load %arg10[%c1_60, %c0_61, %c0_62] : memref<4x256x128xbf16, #tpu.memory_space<vmem>>, vector<1x256x128xbf16>
    %98 = vector.shape_cast %97 : vector<1x256x128xbf16> to vector<256x128xbf16>
    %cst_63 = arith.constant dense<0.000000e+00> : vector<1x128xf32>
    %99 = tpu.matmul %96, %98, %cst_63 {dimension_numbers = #tpu.dot_dimension_numbers<[1], [0], [0], [1], [0, 0, 1, 1], [], []>} : vector<1x256xbf16>, vector<256x128xbf16>, vector<1x128xf32> -> vector<1x128xf32>
    %100 = arith.addf %94, %99 : vector<1x128xf32>
    %101 = vector.extract_strided_slice %87 {offsets = [2, 0], sizes = [1, 256], strides = [1, 1]} : vector<4x256xf32> to vector<1x256xf32>
    %102 = arith.truncf %101 : vector<1x256xf32> to vector<1x256xbf16>
    %c2_64 = arith.constant 2 : index
    %c0_65 = arith.constant 0 : index
    %c0_66 = arith.constant 0 : index
    %103 = vector.load %arg10[%c2_64, %c0_65, %c0_66] : memref<4x256x128xbf16, #tpu.memory_space<vmem>>, vector<1x256x128xbf16>
    %104 = vector.shape_cast %103 : vector<1x256x128xbf16> to vector<256x128xbf16>
    %cst_67 = arith.constant dense<0.000000e+00> : vector<1x128xf32>
    %105 = tpu.matmul %102, %104, %cst_67 {dimension_numbers = #tpu.dot_dimension_numbers<[1], [0], [0], [1], [0, 0, 1, 1], [], []>} : vector<1x256xbf16>, vector<256x128xbf16>, vector<1x128xf32> -> vector<1x128xf32>
    %106 = arith.addf %100, %105 : vector<1x128xf32>
    %107 = vector.extract_strided_slice %87 {offsets = [3, 0], sizes = [1, 256], strides = [1, 1]} : vector<4x256xf32> to vector<1x256xf32>
    %108 = arith.truncf %107 : vector<1x256xf32> to vector<1x256xbf16>
    %c3_68 = arith.constant 3 : index
    %c0_69 = arith.constant 0 : index
    %c0_70 = arith.constant 0 : index
    %109 = vector.load %arg10[%c3_68, %c0_69, %c0_70] : memref<4x256x128xbf16, #tpu.memory_space<vmem>>, vector<1x256x128xbf16>
    %110 = vector.shape_cast %109 : vector<1x256x128xbf16> to vector<256x128xbf16>
    %cst_71 = arith.constant dense<0.000000e+00> : vector<1x128xf32>
    %111 = tpu.matmul %108, %110, %cst_71 {dimension_numbers = #tpu.dot_dimension_numbers<[1], [0], [0], [1], [0, 0, 1, 1], [], []>} : vector<1x256xbf16>, vector<256x128xbf16>, vector<1x128xf32> -> vector<1x128xf32>
    %112 = arith.addf %106, %111 : vector<1x128xf32>
    %c0_72 = arith.constant 0 : index
    %c0_73 = arith.constant 0 : index
    %113 = vector.load %arg11[%c0_72, %c0_73] : memref<1x128xf32, #tpu.memory_space<vmem>>, vector<1x128xf32>
    %114 = arith.addf %112, %113 : vector<1x128xf32>
    %cst_74 = arith.constant 0.000000e+00 : f32
    %115 = vector.broadcast %cst_74 : f32 to vector<1x128xf32>
    %116 = arith.maximumf %114, %115 : vector<1x128xf32>
    %117 = vector.shape_cast %116 : vector<1x128xf32> to vector<1x1x128xf32>
    %c0_75 = arith.constant 0 : index
    %c0_76 = arith.constant 0 : index
    %c0_77 = arith.constant 0 : index
    %118 = vector.load %arg12[%c0_75, %c0_76, %c0_77] : memref<1x1x128xf32, #tpu.memory_space<vmem>>, vector<1x1x128xf32>
    tpu.vector_store %arg12[%c0_75, %c0_76, %c0_77], %117 {strides = array<i32>} : memref<1x1x128xf32, #tpu.memory_space<vmem>>, vector<1x1x128xf32>,
    return
  }
  func.func @transform_0(%arg0: i32) -> (i32, i32, i32) {
    %c0_i32 = arith.constant 0 : i32
    %c0_i32_0 = arith.constant 0 : i32
    %c0_i32_1 = arith.constant 0 : i32
    return %arg0, %c0_i32, %c0_i32_0 : i32, i32, i32
  }
  func.func @transform_1(%arg0: i32) -> (i32, i32, i32) {
    %c0_i32 = arith.constant 0 : i32
    %c0_i32_0 = arith.constant 0 : i32
    %c0_i32_1 = arith.constant 0 : i32
    %c0_i32_2 = arith.constant 0 : i32
    return %c0_i32, %c0_i32_0, %c0_i32_1 : i32, i32, i32
  }
  func.func @transform_2(%arg0: i32) -> (i32, i32) {
    %c0_i32 = arith.constant 0 : i32
    %c0_i32_0 = arith.constant 0 : i32
    %c0_i32_1 = arith.constant 0 : i32
    return %c0_i32, %c0_i32_0 : i32, i32
  }
  func.func @transform_3(%arg0: i32) -> (i32, i32) {
    %c0_i32 = arith.constant 0 : i32
    %c0_i32_0 = arith.constant 0 : i32
    %c0_i32_1 = arith.constant 0 : i32
    return %c0_i32, %c0_i32_0 : i32, i32
  }
  func.func @transform_4(%arg0: i32) -> (i32, i32) {
    %c0_i32 = arith.constant 0 : i32
    %c0_i32_0 = arith.constant 0 : i32
    %c0_i32_1 = arith.constant 0 : i32
    return %c0_i32, %c0_i32_0 : i32, i32
  }
  func.func @transform_5(%arg0: i32) -> (i32, i32, i32) {
    %c0_i32 = arith.constant 0 : i32
    %c0_i32_0 = arith.constant 0 : i32
    %c0_i32_1 = arith.constant 0 : i32
    %c0_i32_2 = arith.constant 0 : i32
    return %c0_i32, %c0_i32_0, %c0_i32_1 : i32, i32, i32
  }
  func.func @transform_6(%arg0: i32) -> (i32, i32) {
    %c0_i32 = arith.constant 0 : i32
    %c0_i32_0 = arith.constant 0 : i32
    %c0_i32_1 = arith.constant 0 : i32
    return %c0_i32, %c0_i32_0 : i32, i32
  }
  func.func @transform_7(%arg0: i32) -> (i32, i32) {
    %c0_i32 = arith.constant 0 : i32
    %c0_i32_0 = arith.constant 0 : i32
    %c0_i32_1 = arith.constant 0 : i32
    return %c0_i32, %c0_i32_0 : i32, i32
  }
  func.func @transform_8(%arg0: i32) -> (i32, i32) {
    %c0_i32 = arith.constant 0 : i32
    %c0_i32_0 = arith.constant 0 : i32
    %c0_i32_1 = arith.constant 0 : i32
    return %c0_i32, %c0_i32_0 : i32, i32
  }
  func.func @transform_9(%arg0: i32) -> (i32, i32, i32) {
    %c0_i32 = arith.constant 0 : i32
    %c0_i32_0 = arith.constant 0 : i32
    %c0_i32_1 = arith.constant 0 : i32
    %c0_i32_2 = arith.constant 0 : i32
    return %c0_i32, %c0_i32_0, %c0_i32_1 : i32, i32, i32
  }
  func.func @transform_10(%arg0: i32) -> (i32, i32) {
    %c0_i32 = arith.constant 0 : i32
    %c0_i32_0 = arith.constant 0 : i32
    %c0_i32_1 = arith.constant 0 : i32
    return %c0_i32, %c0_i32_0 : i32, i32
  }
  func.func @transform_11(%arg0: i32) -> (i32, i32, i32) {
    %c0_i32 = arith.constant 0 : i32
    %c0_i32_0 = arith.constant 0 : i32
    %c0_i32_1 = arith.constant 0 : i32
    return %arg0, %c0_i32, %c0_i32_0 : i32, i32, i32
  }
}

</mosaic_0001>

<bundles_post_ra>
// kernel: tile.13
= control target key start
LH: loop header
LB: loop body
LE: loop exit
PB: predicated region body
PF: predicated region fallthrough
CT: control target
= control target key end

     0   :  { %s28_s0 = inlined_call_operand.vmem [shape: f32[32], index: 0, kind: input, shape index: {}]   ;;  %s29_s1 = inlined_call_operand.vmem [shape: f32[12,32], index: 1, kind: output, shape index: {}]  }
   0x1   :  { %v4_v0 = vld [vmem:[%s28_s0] ss:$0 sm:$0xff] }
   0x2   :  { %5 = vst [vmem:[%s29_s1] sm:$0xff] %v4_v0  ;;  %8 = vst [vmem:[%s29_s1 + $0x8] sm:$0xff] %v4_v0 }

// kernel: tile.14
= control target key start
LH: loop header
LB: loop body
LE: loop exit
PB: predicated region body
PF: predicated region fallthrough
CT: control target
= control target key end

     0   :  { %s49_s8 = smov 96   ;;  %vm3_vm0 = vcmask 261120   ;;  %s51_s15 = smov 64   ;;  %vm9_vm1 = vcmask 1048320   ;;  %vm15_vm2 = vcmask 785920   ;;  %vm21_vm3 = vcmask 523520   ;;  %s83_s0 = inlined_call_operand.vmem [shape: f32[12,32], index: 0, kind: input, shape index: {}]   ;;  %s84_s1 = inlined_call_operand.vmem [shape: f32[1,384], index: 1, kind: output, shape index: {}]  }
   0x1   :  { %v41_v0 = vld [vmem:[%s83_s0 + $0x3] ss:$4 sm:$0x7]   ;;  %v42_v1 = vld [vmem:[%s83_s0 + $0x2] ss:$4 sm:$0x7]  }
   0x2   :  { %7 = vrot.lane.b32.xlu0 %v41_v0, %s49_s8  ;;  %v43_v2 = vld [vmem:[%s83_s0 + $0x1] ss:$4 sm:$0x7]   ;;  %v2_v3 = vld [vmem:[%s83_s0] ss:$4 sm:$0x7]  }
   0x3   :  { %s50_s0 = smov 32   ;;  %4 = vst.msk [vmem:[#allocation0] ss:$8 sm:$0x7] %vm3_vm0, %v2_v3  }
   0x4   :  { %19 = vrot.lane.b32.xlu1 %v43_v2, %s50_s0 }
   0x6   :  { %13 = vrot.lane.b32.xlu0 %v42_v1, %s51_s15 }
  0x74   :  { %v8_v4 = vpop.permute.xlu0 %7  }
  0x75   :  { %10 = vst.msk [vmem:[#allocation0] ss:$8 sm:$0x7] %vm9_vm1, %v8_v4  }
  0x76   :  { %v20_v5 = vpop.permute.xlu1 %19  }
  0x78   :  { %v14_v6 = vpop.permute.xlu0 %13  }
  0x79   :  { %16 = vst.msk [vmem:[#allocation0] ss:$8 sm:$0x7] %vm15_vm2, %v14_v6  }
  0x7a   :  { %22 = vst.msk [vmem:[#allocation0] ss:$8 sm:$0x7] %vm21_vm3, %v20_v5  }
  0x81   :  { %v26_v7 = vld [vmem:[#allocation0] sm:$0x1]  ;;  %v30_v8 = vld [vmem:[#allocation0 + $0x8] sm:$0x1]  ;;  %v35_v9 = vld [vmem:[#allocation0 + $0x10] sm:$0x1] }
  0x82   :  { %28 = vst [vmem:[%s84_s1] sm:$0x1] %v26_v7  ;;  %44 = vst [vmem:[%s84_s1 + $0x1] sm:$0x1] %v30_v8 }
  0x83   :  { %45 = vst [vmem:[%s84_s1 + $0x2] sm:$0x1] %v35_v9 }

// kernel: tile.18
= control target key start
LH: loop header
LB: loop body
LE: loop exit
PB: predicated region body
PF: predicated region fallthrough
CT: control target
= control target key end

     0   :  { %s22_s0 = inlined_call_operand.vmem [shape: f32[64], index: 0, kind: input, shape index: {}]   ;;  %s23_s1 = inlined_call_operand.vmem [shape: f32[4,64], index: 1, kind: output, shape index: {}]  }
   0x1   :  { %v4_v0 = vld [vmem:[%s22_s0] ss:$0 sm:$0xff] }
   0x2   :  { %5 = vst [vmem:[%s23_s1] sm:$0xf] %v4_v0 }

// kernel: tile.19
= control target key start
LH: loop header
LB: loop body
LE: loop exit
PB: predicated region body
PF: predicated region fallthrough
CT: control target
= control target key end

     0   :  { %s6_s8 = smov 3  ;;  %vm8_vm0 = vcmask 523264   ;;  %s30_s9 = smov 64   ;;  %vm15_vm1 = vcmask 1048064   ;;  %s50_s0 = inlined_call_operand.vmem [shape: f32[4,64], index: 0, kind: input, shape index: {}]   ;;  %s51_s1 = inlined_call_operand.vmem [shape: f32[1,256], index: 1, kind: output, shape index: {}]  }
   0x1   :  { %v4_v0 = vld [vmem:[%s50_s0] sm:$0xf]  ;;  %s11_s0 = smov 3 }
   0x2   :  { %5 = vst [vmem:[#allocation1] sm:$0xf] %v4_v0 }
   0x9   :  { %v12_v1 = vld [vmem:[#allocation1 + $0x1] ss:$2 sm:%s11_s0]   ;;  %v7_v2 = vld [vmem:[#allocation1] ss:$2 sm:%s6_s8]  }
   0xa   :  { %13 = vrot.lane.b32.xlu0 %v12_v1, %s30_s9  ;;  %9 = vst.msk [vmem:[#allocation0] ss:$8 sm:$0x3] %vm8_vm0, %v7_v2  }
  0x7c   :  { %v14_v3 = vpop.permute.xlu0 %13  }
  0x7d   :  { %16 = vst.msk [vmem:[#allocation0] ss:$8 sm:$0x3] %vm15_vm1, %v14_v3  }
  0x84   :  { %v20_v4 = vld [vmem:[#allocation0] sm:$0x1]  ;;  %v24_v5 = vld [vmem:[#allocation0 + $0x8] sm:$0x1] }
  0x85   :  { %22 = vst [vmem:[%s51_s1] sm:$0x1] %v20_v4  ;;  %28 = vst [vmem:[%s51_s1 + $0x1] sm:$0x1] %v24_v5 }

// kernel: cnn_forward.1
= control target key start
LH: loop header
LB: loop body
LE: loop exit
PB: predicated region body
PF: predicated region fallthrough
CT: control target
= control target key end

     0   :  { %s11286_s0 = inlined_call_operand.vmem [shape: f32[2,28,28], index: 0, kind: input, shape index: {}]   ;;  %s11287_s1 = inlined_call_operand.vmem [shape: bf16[5,28,768], index: 1, kind: input, shape index: {}]   ;;  %s11288_s2 = inlined_call_operand.vmem [shape: bf16[12,24], index: 2, kind: input, shape index: {}]   ;;  %s11289_s3 = inlined_call_operand.vmem [shape: bf16[12,24], index: 3, kind: input, shape index: {}]   ;;  %s11290_s4 = inlined_call_operand.vmem [shape: f32[1,384], index: 4, kind: input, shape index: {}]   ;;  %s11291_s5 = inlined_call_operand.vmem [shape: bf16[5,384,512], index: 5, kind: input, shape index: {}]   ;;  %s11292_s6 = inlined_call_operand.vmem [shape: bf16[4,8], index: 6, kind: input, shape index: {}]   ;;  %s11293_s7 = inlined_call_operand.vmem [shape: bf16[4,8], index: 7, kind: input, shape index: {}]   ;;  %s11294_s8 = inlined_call_operand.vmem [shape: f32[1,256], index: 8, kind: input, shape index: {}]   ;;  %s11295_s9 = inlined_call_operand.vmem [shape: bf16[4,256,128], index: 9, kind: input, shape index: {}]   ;;  %s11296_s10 = inlined_call_operand.vmem [shape: f32[1,128], index: 10, kind: input, shape index: {}]   ;;  %s11297_s11 = inlined_call_operand.hbm [shape: f32[2,1,128], index: 11, kind: output, shape index: {}]  }
   0x1   :  { %11298 = sst [smem:[#allocation6_spill]] %s11286_s0 }
   0x2   :  { %16 = vsyncpa [#allocation3], 0 }
   0x3   :  { %18 = vsyncpa [#allocation3 + $0x1], 0  ;;  %s9123_s17 = smov 0   ;;  %s9125_s18 = smov 0  }
   0x4   :  { %s9127_s19 = smov 0   ;;  %s9129_s20 = smov 0  }
   0x5 LB: > { %s9144_s21 = sadd.s32 4294967295, %s9057_s20   ;;  %s6602_s22 = sadd.s32 4294967294, %s9057_s20   ;;  %s9057_s20 = sphi %s9129_s20, %s11307_s20   ;;  %s9053_s19 = sphi %s9127_s19, %s11306_s19   ;;  %s9049_s18 = sphi %s9125_s18, %s11305_s18   ;;  %s9045_s17 = sphi %s9123_s17, %s11304_s17  }
   0x6   : > { %s9148_s23 = sadd.s32 1, %s9057_s20   ;;  %s267_s24 = sadd.s32 1, %s9053_s19 }
   0x7   : > { %s264_s25 = ssub.s32 %s9057_s20, %s9148_s23  ;;  %p277_p0 = scmp.ne.s32.totalorder %s9053_s19, %s9049_s18 }
   0x8   : > { %p265_p1 = scmp.eq.s32.totalorder %s264_s25, 0  ;;  %p278_p2 = scmp.eq.s32.totalorder %s9144_s21, 1 }
   0x9   : > { %p283_p3 = scmp.ne.s32.totalorder %s9049_s18, %s9045_s17  ;;  %p284_p4 = scmp.eq.s32.totalorder %s6602_s22, 1 }
   0xa   : > { %s9159_s26 = scalar_select %p265_p1, %s9053_s19, %s267_s24  }
   0xb   : > { %p9161_p5 = por %p278_p2, %p277_p0  ;;  %p9165_p6 = por %p284_p4, %p283_p3 }
   0xc   : > { %11299 = sst [smem:[#allocation5_spill]] %s9159_s26  ;;  %p6605_p7 = scmp.ge.s32.totalorder %s9057_s20, 1 }
   0xd   : > { %p340_p8 = scmp.lt.s32.totalorder %s9057_s20, 3 }
   0xf   : > { %p341_p9 = pnand %p6605_p7, %p340_p8 }
  0x10   : > { %v8119_v0 = vld [vmem:[%s11287_s1 + $0x64] ss:$24 sps:$4 sm:$0xff] (!%p341_p9)   ;;  %v8121_v1 = vld [vmem:[%s11287_s1 + $0x74] ss:$24 sps:$4 sm:$0xff] (!%p341_p9)   ;;  %v9059_v2 = vmov (!%p341_p9), 0   ;;  %p379_p10 = scmp.lt.s32.totalorder (!%p341_p9), %s9144_s21, 1 }
  0x11   : > { %344 = sbr.rel (%p341_p9) target bundleno = 1775 (0x6ef), region = 64  ;;  %545 = vmatprep.mubr.bf16.mxu1 (!%p341_p9), %v9059_v2  ;;  %647 = vmatprep.mubr.bf16.mxu0 (!%p341_p9), %v9059_v2  ;;  %v8123_v3 = vld [vmem:[%s11287_s1 + $0x60] ss:$24 sps:$4 sm:$0xff] (!%p341_p9)   ;;  %v8124_v4 = vld [vmem:[%s11287_s1 + $0x70] ss:$24 sps:$4 sm:$0xff] (!%p341_p9)   ;;  %vm494_vm0 = vcmask (!%p341_p9), 1045504  }
  0x12   : > { %513 = vmatprep.subr.bf16.mxu1 (!%p341_p9), %v8119_v0  ;;  %615 = vmatprep.subr.bf16.mxu0 (!%p341_p9), %v8121_v1  ;;  %v8125_v5 = vld [vmem:[%s11287_s1 + $0x94] ss:$24 sps:$4 sm:$0x3f] (!%p341_p9)   ;;  %v8127_v6 = vld [vmem:[%s11287_s1 + $0xa4] ss:$24 sps:$4 sm:$0x3f] (!%p341_p9)  }
  0x13   : > { %514 = vmatpush1.bf16.msra.mxu1 (!%p341_p9), %v8123_v3  ;;  %616 = vmatpush1.bf16.msra.mxu0 (!%p341_p9), %v8124_v4  ;;  %v8129_v7 = vld [vmem:[%s11287_s1 + $0x90] ss:$24 sps:$4 sm:$0x3f] (!%p341_p9)   ;;  %v8130_v8 = vld [vmem:[%s11287_s1 + $0xa0] ss:$24 sps:$4 sm:$0x3f] (!%p341_p9)  }
  0x14   : > { %6632 = vmatprep.subr.msk.bf16.mxu1 (!%p341_p9), %vm494_vm0, %v8125_v5  ;;  %6638 = vmatprep.subr.msk.bf16.mxu0 (!%p341_p9), %vm494_vm0, %v8127_v6  ;;  %v496_v9 = vsel (!%p341_p9), %vm494_vm0, %v8129_v7, 0  ;;  %v508_v10 = vsel (!%p341_p9), %vm494_vm0, %v8130_v8, 0  ;;  %s11302_s0 = sld [smem:[#allocation6_spill]] (!%p341_p9)  ;;  %v8133_v11 = vld [vmem:[%s11287_s1 + $0x4] ss:$24 sps:$4 sm:$0xff] (!%p341_p9)   ;;  %vm487_vm2 = vcmask (!%p341_p9), 228352  }
  0x15   : > { %v8136_v18 = vld [vmem:[%s11287_s1 + $0x6c] ss:$24 sps:$4 sm:$0xff] (!%p341_p9)   ;;  %vm417_vm1 = vsmask.f32 (!%p341_p9), 7424  ;;  %v8131_v25 = vld [vmem:[%s11287_s1] ss:$24 sps:$4 sm:$0xff] (!%p341_p9)  }
  0x16   : > { %v8137_v26 = vld [vmem:[%s11287_s1 + $0x9c] ss:$24 sps:$4 sm:$0x3f] (!%p341_p9)   ;;  %v8134_v28 = vld [vmem:[%s11287_s1 + $0x68] ss:$24 sps:$4 sm:$0xff] (!%p341_p9)   ;;  %vm911_vm3 = vcmask (!%p341_p9), 1046528  }
  0x17   : > { %516 = vmatpush1.bf16.msra.mxu1 (!%p341_p9), %v496_v9  ;;  %618 = vmatpush1.bf16.msra.mxu0 (!%p341_p9), %v508_v10  ;;  %v8139_v27 = vld [vmem:[%s11287_s1 + $0x34] ss:$24 sps:$4 sm:$0x3f] (!%p341_p9)   ;;  %v8141_v29 = vld [vmem:[%s11287_s1 + $0x98] ss:$24 sps:$4 sm:$0x3f] (!%p341_p9)  }
  0x18   : > { %s380_s12 = scalar_select %p379_p10, %s9144_s21, 1  ;;  %743 = vmatprep.subr.bf16.mxu0 %v8133_v11  ;;  %564 = vmatprep.subr.bf16.mxu1 %v8136_v18  ;;  %v8142_v31 = vld [vmem:[%s11287_s1 + $0x30] ss:$24 sps:$4 sm:$0x3f]   ;;  %v502_v33 = vsel %vm494_vm0, %v8141_v29, 0  ;;  %vm1726_vm5 = vcmask 1043456  }
  0x19   : > { %v726_v34 = vsel %vm494_vm0, %v8142_v31, 0  ;;  %v8145_v35 = vld [vmem:[%s11287_s1 + $0x14] ss:$24 sps:$4 sm:$0xff]   ;;  %v8143_v40 = vld [vmem:[%s11287_s1 + $0x10] ss:$24 sps:$4 sm:$0xff]   ;;  %vm1722_vm6 = vcmask 195584  }
  0x1a   : > { %s7800_s22 = sshll.u32 %s380_s12, 5  ;;  %v8148_v36 = vld [vmem:[%s11287_s1 + $0xc] ss:$24 sps:$4 sm:$0xff]   ;;  %v8149_v42 = vld [vmem:[%s11287_s1 + $0x3c] ss:$24 sps:$4 sm:$0x3f]  }
  0x1b   : > { %s383_s29 = scalar_lea.vmem %s11302_s0, %s7800_s22  ;;  %v8151_v43 = vld [vmem:[%s11287_s1 + $0x44] ss:$24 sps:$4 sm:$0x3f]   ;;  %v8146_v44 = vld [vmem:[%s11287_s1 + $0x8] ss:$24 sps:$4 sm:$0xff]   ;;  %vm9061_vm7 = vmmov 0  }
  0x1c   : > { %v385_v12 = vld [vmem:[%s383_s29] sm:$0xff]  ;;  %v386_v13 = vld [vmem:[%s383_s29 + $0x8] sm:$0xff]  ;;  %v9209_v14 = vld [vmem:[%s383_s29 + $0x10] sm:$0xff]  ;;  %vm1177_vm4 = vsmask.f32 6400  ;;  %vm5721_vm8 = vcmask 64512  }
  0x1d   : > { %v388_v15 = vld [vmem:[%s383_s29 + $0x18] sm:$0xf]  ;;  %v9211_v16 = vpack.c.bf16 %v386_v13, %v385_v12  ;;  %v8157_v47 = vld [vmem:[%s11287_s1 + $0xc4] ss:$24 sps:$4 sm:$0xff]   ;;  %v390_v51 = vpack.c.bf16 %v9209_v14, %v9209_v14  ;;  %v8158_v53 = vld [vmem:[%s11287_s1 + $0xc8] ss:$24 sps:$4 sm:$0xff]  }
  0x1e   : > { %v9214_v17 = vpack.c.bf16 %v388_v15, %v9209_v14  ;;  %v8153_v45 = vld [vmem:[%s11287_s1 + $0x38] ss:$24 sps:$4 sm:$0x3f]   ;;  %v8160_v50 = vld [vmem:[%s11287_s1 + $0xcc] ss:$24 sps:$4 sm:$0xff]   ;;  %s377_s0 = sand.u32 1, %s9049_s18  }
  0x1f   : > { %v419_v19 = vshrl.u32 %v9211_v16, 16  ;;  %v421_v20 = vshll.u32 %v9211_v16, 16  ;;  %v1448_v38 = vrot.slane %v9211_v16, 2  ;;  %v8154_v46 = vld [vmem:[%s11287_s1 + $0x40] ss:$24 sps:$4 sm:$0x3f]  }
  0x20   : > { %v426_v21 = vshll.u32 %v9214_v17, 16  ;;  %v430_v32 = vshrl.u32 %v9214_v17, 16  ;;  %v9269_v39 = vrot.slane %v9214_v17, 2  ;;  %v732_v48 = vsel %vm494_vm0, %v8153_v45, 0  ;;  %v8155_v52 = vld [vmem:[%s11287_s1 + $0xc0] ss:$24 sps:$4 sm:$0xff]  }
  0x21   : > { %v423_v22 = vrot.slane %v421_v20, 1  ;;  %v738_v49 = vsel %vm494_vm0, %v8154_v46, 0  ;;  %v8161_v54 = vld [vmem:[%s11287_s1 + $0xf4] ss:$24 sps:$4 sm:$0x3f]   ;;  %v912_v62 = vrot.slane %v9211_v16, 1 }
  0x22   : > { %v428_v23 = vrot.slane %v426_v21, 1  ;;  %v9276_v41 = vsel %vm494_vm0, %v1448_v38, %v9269_v39  ;;  %v8163_v55 = vld [vmem:[%s11287_s1 + $0xfc] ss:$24 sps:$4 sm:$0x3f]   ;;  %v8172_v59 = vld [vmem:[%s11287_s1 + $0x12c] ss:$24 sps:$4 sm:$0xff]  }
  0x23   : > { %v424_v24 = vor.u32 %v423_v22, %v419_v19  ;;  %v8165_v56 = vld [vmem:[%s11287_s1 + $0xf0] ss:$24 sps:$4 sm:$0x3f]   ;;  %v8169_v58 = vld [vmem:[%s11287_s1 + $0xd4] ss:$24 sps:$4 sm:$0xff]   ;;  %v913_v63 = vrot.slane %v9214_v17, 1 }
  0x24   : > { %v432_v37 = vor.u32 %v430_v32, %v428_v23  ;;  %v8166_v57 = vld [vmem:[%s11287_s1 + $0xf8] ss:$24 sps:$4 sm:$0x3f]   ;;  %v976_v60 = vsel %vm494_vm0, %v8165_v56, 0  ;;  %v8170_v1 = vld [vmem:[%s11287_s1 + $0x128] ss:$24 sps:$4 sm:$0xff]  }
  0x25   : > { %v429_v30 = vsel %vm417_vm1, %v424_v24, %v428_v23  ;;  %v982_v61 = vsel %vm494_vm0, %v8166_v57, 0  ;;  %v8167_v0 = vld [vmem:[%s11287_s1 + $0xd0] ss:$24 sps:$4 sm:$0xff]   ;;  %v914_v3 = vsel %vm911_vm3, %v912_v62, %v913_v63  ;;  %v8173_v4 = vld [vmem:[%s11287_s1 + $0x104] ss:$24 sps:$4 sm:$0x3f]  }
  0x26   : > { %6633 = vmatmul.mubr.msk.bf16.vlgmr.msra.gmra.mrb[0].mxu1 %vm487_vm2, %v429_v30  ;;  %6639 = vmatmul.mubr.msk.bf16.vlgmr.msra.gmra.mrb[0].mxu0 %vm487_vm2, %v429_v30  ;;  %v8175_v5 = vld [vmem:[%s11287_s1 + $0x15c] ss:$24 sps:$4 sm:$0x3f]   ;;  %v8177_v6 = vld [vmem:[%s11287_s1 + $0x100] ss:$24 sps:$4 sm:$0x3f]  }
  0x27   : > { %555 = vmatprep.mubr.bf16.mxu1 %v9059_v2  ;;  %657 = vmatprep.mubr.bf16.mxu0 %v9059_v2  ;;  %v8178_v7 = vld [vmem:[%s11287_s1 + $0x158] ss:$24 sps:$4 sm:$0x3f]   ;;  %v8181_v8 = vld [vmem:[%s11287_s1 + $0x124] ss:$24 sps:$4 sm:$0xff]   ;;  %v988_v10 = vsel %vm494_vm0, %v8177_v6, 0 }
  0x28   : > { %744 = vmatpush1.bf16.msra.mxu0 %v8131_v25  ;;  %565 = vmatpush1.bf16.msra.mxu1 %v8134_v28  ;;  %v8184_v9 = vld [vmem:[%s11287_s1 + $0x18c] ss:$24 sps:$4 sm:$0xff]   ;;  %v1252_v11 = vsel %vm494_vm0, %v8178_v7, 0  ;;  %v1178_v12 = vrot.slane %v419_v19, 1  ;;  %v1179_v13 = vrot.slane %v421_v20, 2  ;;  %v1182_v14 = vrot.slane %v426_v21, 2 }
  0x29   : > { %6635 = vmatprep.subr.msk.bf16.mxu1 %vm494_vm0, %v8137_v26  ;;  %6653 = vmatprep.subr.msk.bf16.mxu0 %vm494_vm0, %v8139_v27  ;;  %v1181_v15 = vrot.slane %v430_v32, 1  ;;  %v8179_v17 = vld [vmem:[%s11287_s1 + $0x120] ss:$24 sps:$4 sm:$0xff]   ;;  %v8189_v20 = vld [vmem:[%s11287_s1 + $0x150] ss:$24 sps:$4 sm:$0x3f]  }
  0x2a   : > { %v8182_v19 = vld [vmem:[%s11287_s1 + $0x188] ss:$24 sps:$4 sm:$0xff]   ;;  %v8185_v22 = vld [vmem:[%s11287_s1 + $0x154] ss:$24 sps:$4 sm:$0x3f]   ;;  %v1246_v26 = vsel %vm494_vm0, %v8189_v20, 0 }
  0x2b   : > { %v1183_v18 = vor.u32 %v1182_v14, %v1181_v15  ;;  %v8187_v23 = vld [vmem:[%s11287_s1 + $0x1bc] ss:$24 sps:$4 sm:$0x3f]   ;;  %v8190_v24 = vld [vmem:[%s11287_s1 + $0x1b8] ss:$24 sps:$4 sm:$0x3f]  }
  0x2c   : > { %567 = vmatpush1.bf16.msra.mxu1 %v502_v33  ;;  %746 = vmatpush1.bf16.msra.mxu0 %v726_v34  ;;  %v8193_v25 = vld [vmem:[%s11287_s1 + $0x134] ss:$24 sps:$4 sm:$0xff]   ;;  %v1518_v27 = vsel %vm494_vm0, %v8190_v24, 0  ;;  %v8191_v28 = vld [vmem:[%s11287_s1 + $0x130] ss:$24 sps:$4 sm:$0xff]   ;;  %s7797_s24 = sshll.u32 %s9144_s21, 4 }
  0x2d   : > { %845 = vmatprep.subr.bf16.mxu0 %v8145_v35  ;;  %794 = vmatprep.subr.bf16.mxu1 %v8148_v36  ;;  %v8194_v29 = vld [vmem:[%s11287_s1 + $0x164] ss:$24 sps:$4 sm:$0x3f]   ;;  %v8197_v33 = vld [vmem:[%s11287_s1 + $0x180] ss:$24 sps:$4 sm:$0xff]   ;;  %s378_s25 = scalar_lea.vmem [#allocation2], %s377_s0  ;;  %s11244_s13 = scalar_lea.hbm %s11297_s11, %s7797_s24 }
  0x2e   : > { %6634 = vmatmul.mubr.msk.bf16.gmra.mrb[4].mxu1 %vm487_vm2, %v432_v37  ;;  %6640 = vmatmul.mubr.msk.bf16.gmra.mrb[4].mxu0 %vm487_vm2, %v432_v37  ;;  %v8199_v31 = vld [vmem:[%s11287_s1 + $0x184] ss:$24 sps:$4 sm:$0xff]   ;;  %v8200_v34 = vld [vmem:[%s11287_s1 + $0x1b4] ss:$24 sps:$4 sm:$0x3f]   ;;  %s6547_s29 = sshll.u32 %s378_s25, 4  ;;  %s11246_s29 = int_to_ptr.vmem [resolvable:$true] %s6547_s29 }
  0x2f   : > { %596 = vmatprep.mubr.bf16.mxu1 %v9059_v2  ;;  %775 = vmatprep.mubr.bf16.mxu0 %v9059_v2  ;;  %v8202_v35 = vld [vmem:[%s11287_s1 + $0x1b0] ss:$24 sps:$4 sm:$0x3f]   ;;  %v8205_v36 = vld [vmem:[%s11287_s1 + $0x194] ss:$24 sps:$4 sm:$0xff]   ;;  %s6535_s26 = scalar_lea.sflag [#allocation3], %s377_s0 }
  0x30   : > { %v8203_v38 = vld [vmem:[%s11287_s1 + $0x190] ss:$24 sps:$4 sm:$0xff]   ;;  %v8234_v56 = vld [vmem:[%s11291_s5 + $0x36c] ss:$16 sps:$4 sm:$0xff]   ;;  %s8995_s14 = scalar_lea.vmem %s11246_s29, 16  ;;  %s9062_s21 = smov [#allocation2]  }
  0x31   : > { %v8232_v57 = vld [vmem:[%s11291_s5 + $0x368] ss:$16 sps:$4 sm:$0xff]   ;;  %v8252_v62 = vld [vmem:[%s11291_s5 + $0x3cc] ss:$16 sps:$4 sm:$0xff]   ;;  %p8996_p11 = scmp.ne.s32.totalorder %s11246_s29, %s8995_s14  ;;  %s8999_s15 = sshll.u32 %s9062_s21, 4  ;;  %s9000_s15 = int_to_ptr.vmem [resolvable:$false] %s8999_s15 }
  0x32   : > { %s9001_s16 = scalar_lea.vmem %s9000_s15, 32  ;;  %p9002_p0 = scmp.lt.s32.totalorder %s11246_s29, %s9000_s15 }
  0x33   : > { %p8997_p12 = pnand %p8996_p11, %p9161_p5  ;;  %p9003_p1 = scmp.lt.s32.totalorder %s9001_s16, %s8995_s14 }
  0x35   : > { %p8998_p13 = pneg %p8997_p12  ;;  %p9004_p2 = por %p9003_p1, %p9002_p0 }
  0x36   : > { %6636 = vmatmul.mubr.msk.bf16.vlgmr.msra.gmra.mrb[8].mxu1 %vm487_vm2, %v429_v30  ;;  %6654 = vmatmul.mubr.msk.bf16.vlgmr.msra.gmra.mrb[8].mxu0 %vm487_vm2, %v9211_v16  ;;  %v8196_v30 = vld [vmem:[%s11287_s1 + $0x160] ss:$24 sps:$4 sm:$0x3f]  }
  0x37   : > { %606 = vmatprep.mubr.bf16.mxu1 %v9059_v2  ;;  %785 = vmatprep.mubr.bf16.mxu0 %v9059_v2  ;;  %v1258_v32 = vsel %vm494_vm0, %v8196_v30, 0  ;;  %p9005_p3 = pnand %p9004_p2, %p8998_p13 }
  0x38   : > { %846 = vmatpush1.bf16.msra.mxu0 %v8143_v40  ;;  %795 = vmatpush1.bf16.msra.mxu1 %v8146_v44  ;;  %v8206_v40 = vld [vmem:[%s11287_s1 + $0x1c4] ss:$24 sps:$4 sm:$0x3f]  }
  0x39   : > { %6656 = vmatprep.subr.msk.bf16.mxu1 %vm494_vm0, %v8149_v42  ;;  %6659 = vmatprep.subr.msk.bf16.mxu0 %vm494_vm0, %v8151_v43  ;;  %v8208_v42 = vld [vmem:[%s11287_s1 + $0x1c0] ss:$24 sps:$4 sm:$0x3f]  }
  0x3a   : > { %v1524_v43 = vsel %vm494_vm0, %v8208_v42, 0 }
  0x3c   : > { %797 = vmatpush1.bf16.msra.mxu1 %v732_v48  ;;  %848 = vmatpush1.bf16.msra.mxu0 %v738_v49 }
  0x3d   : > { %993 = vmatprep.subr.bf16.mxu0 %v8157_v47  ;;  %1044 = vmatprep.subr.bf16.mxu1 %v8160_v50 }
  0x3e   : > { %6637 = vmatmul.mubr.msk.bf16.gmra.mrb[12].mxu1 %vm487_vm2, %v432_v37  ;;  %6655 = vmatmul.mubr.msk.bf16.gmra.mrb[12].mxu0 %vm487_vm2, %v390_v51  ;;  %v1512_v37 = vsel %vm494_vm0, %v8202_v35, 0 }
  0x3f   : > { %826 = vmatprep.mubr.bf16.mxu1 %v9059_v2  ;;  %877 = vmatprep.mubr.bf16.mxu0 %v9059_v2 }
  0x46   : > { %6657 = vmatmul.mubr.msk.bf16.vlgmr.msra.gmra.mrb[8].mxu1 %vm487_vm2, %v9211_v16  ;;  %6660 = vmatmul.mubr.msk.bf16.vlgmr.msra.gmra.mrb[0].mxu0 %vm487_vm2, %v9211_v16  ;;  %v1180_v16 = vor.u32 %v1179_v13, %v1178_v12 }
  0x47   : > { %836 = vmatprep.mubr.bf16.mxu1 %v9059_v2  ;;  %887 = vmatprep.mubr.bf16.mxu0 %v9059_v2 }
  0x48   : > { %994 = vmatpush1.bf16.msra.mxu0 %v8155_v52  ;;  %1045 = vmatpush1.bf16.msra.mxu1 %v8158_v53  ;;  %v1184_v21 = vsel %vm1177_vm4, %v1180_v16, %v1183_v18  ;;  %v8214_v52 = vld [vmem:[%s11291_s5 + $0x308] ss:$16 sps:$4 sm:$0xff]  }
  0x49   : > { %6686 = vmatprep.subr.msk.bf16.mxu0 %vm494_vm0, %v8161_v54  ;;  %6689 = vmatprep.subr.msk.bf16.mxu1 %vm494_vm0, %v8163_v55  ;;  %v8220_v53 = vld [vmem:[%s11291_s5 + $0x328] ss:$16 sps:$4 sm:$0xff]   ;;  %v8228_v54 = vld [vmem:[%s11291_s5 + $0x34c] ss:$16 sps:$4 sm:$0xff]  }
  0x4a   : > { %v8226_v55 = vld [vmem:[%s11291_s5 + $0x348] ss:$16 sps:$4 sm:$0xff]  }
  0x4c   : > { %996 = vmatpush1.bf16.msra.mxu0 %v976_v60  ;;  %1047 = vmatpush1.bf16.msra.mxu1 %v982_v61  ;;  %v8246_v60 = vld [vmem:[%s11291_s5 + $0x3ac] ss:$16 sps:$4 sm:$0xff]   ;;  %v8244_v61 = vld [vmem:[%s11291_s5 + $0x3a8] ss:$16 sps:$4 sm:$0xff]  }
  0x4d   : > { %1095 = vmatprep.subr.bf16.mxu0 %v8169_v58  ;;  %1314 = vmatprep.subr.bf16.mxu1 %v8172_v59  ;;  %v8240_v58 = vld [vmem:[%s11291_s5 + $0x38c] ss:$16 sps:$4 sm:$0xff]   ;;  %v8238_v59 = vld [vmem:[%s11291_s5 + $0x388] ss:$16 sps:$4 sm:$0xff]  }
  0x4e   : > { %6658 = vmatmul.mubr.msk.bf16.gmra.mrb[12].mxu1 %vm487_vm2, %v390_v51  ;;  %6661 = vmatmul.mubr.msk.bf16.gmra.mrb[4].mxu0 %vm487_vm2, %v390_v51 }
  0x4f   : > { %1025 = vmatprep.mubr.bf16.mxu0 %v9059_v2  ;;  %1076 = vmatprep.mubr.bf16.mxu1 %v9059_v2 }
  0x56   : > { %6687 = vmatmul.mubr.msk.bf16.vlgmr.msra.gmra.mrb[8].mxu0 %vm487_vm2, %v914_v3  ;;  %6690 = vmatmul.mubr.msk.bf16.vlgmr.msra.gmra.mrb[8].mxu1 %vm487_vm2, %v914_v3 }
  0x57   : > { %1035 = vmatprep.mubr.bf16.mxu0 %v9059_v2  ;;  %1086 = vmatprep.mubr.bf16.mxu1 %v9059_v2 }
  0x58   : > { %1096 = vmatpush1.bf16.msra.mxu0 %v8167_v0  ;;  %1315 = vmatpush1.bf16.msra.mxu1 %v8170_v1  ;;  %v8258_v0 = vld [vmem:[%s11291_s5 + $0x3ec] ss:$16 sps:$4 sm:$0xff]   ;;  %v8256_v1 = vld [vmem:[%s11291_s5 + $0x3e8] ss:$16 sps:$4 sm:$0xff]  }
  0x59   : > { %6692 = vmatprep.subr.msk.bf16.mxu0 %vm494_vm0, %v8173_v4  ;;  %6722 = vmatprep.subr.msk.bf16.mxu1 %vm494_vm0, %v8175_v5 }
  0x5c   : > { %1098 = vmatpush1.bf16.msra.mxu0 %v988_v10  ;;  %1317 = vmatpush1.bf16.msra.mxu1 %v1252_v11 }
  0x5d   : > { %1263 = vmatprep.subr.bf16.mxu0 %v8181_v8  ;;  %1580 = vmatprep.subr.bf16.mxu1 %v8184_v9 }
  0x5e   : > { %6688 = vmatmul.mubr.msk.bf16.gmra.mrb[12].mxu0 %vm487_vm2, %v913_v63  ;;  %6691 = vmatmul.mubr.msk.bf16.gmra.mrb[12].mxu1 %vm487_vm2, %v913_v63 }
  0x5f   : > { %1127 = vmatprep.mubr.bf16.mxu0 %v9059_v2  ;;  %1346 = vmatprep.mubr.bf16.mxu1 %v9059_v2 }
  0x66   : > { %6693 = vmatmul.mubr.msk.bf16.vlgmr.msra.gmra.mrb[0].mxu0 %vm487_vm2, %v914_v3  ;;  %6723 = vmatmul.mubr.msk.bf16.vlgmr.msra.gmra.mrb[8].mxu1 %vm487_vm2, %v1184_v21 }
  0x67   : > { %1137 = vmatprep.mubr.bf16.mxu0 %v9059_v2  ;;  %1264 = vmatpush1.bf16.msra.mxu0 %v8179_v17 }
  0x68   : > { %1356 = vmatprep.mubr.bf16.mxu1 %v9059_v2  ;;  %1581 = vmatpush1.bf16.msra.mxu1 %v8182_v19 }
  0x69   : > { %6719 = vmatprep.subr.msk.bf16.mxu0 %vm494_vm0, %v8185_v22  ;;  %6755 = vmatprep.subr.msk.bf16.mxu1 %vm494_vm0, %v8187_v23 }
  0x6b   : > { %1266 = vmatpush1.bf16.msra.mxu0 %v1246_v26 }
  0x6c   : > { %1583 = vmatpush1.bf16.msra.mxu1 %v1518_v27  ;;  %1365 = vmatprep.subr.bf16.mxu0 %v8193_v25 }
  0x6e   : > { %6694 = vmatmul.mubr.msk.bf16.gmra.mrb[4].mxu0 %vm487_vm2, %v913_v63  ;;  %6724 = vmatmul.mubr.msk.bf16.gmra.mrb[12].mxu1 %vm487_vm2, %v1183_v18  ;;  %v8250_v63 = vld [vmem:[%s11291_s5 + $0x3c8] ss:$16 sps:$4 sm:$0xff]  }
  0x6f   : > { %1295 = vmatprep.mubr.bf16.mxu0 %v9059_v2  ;;  %1612 = vmatprep.mubr.bf16.mxu1 %v9059_v2 }
  0x76   : > { %6720 = vmatmul.mubr.msk.bf16.vlgmr.msra.gmra.mrb[8].mxu0 %vm487_vm2, %v1184_v21  ;;  %6756 = vmatmul.mubr.msk.bf16.vlgmr.msra.gmra.mrb[8].mxu1 %vm487_vm2, %v9276_v41 }
  0x77   : > { %1305 = vmatprep.mubr.bf16.mxu0 %v9059_v2  ;;  %1366 = vmatpush1.bf16.msra.mxu0 %v8191_v28 }
  0x78   : > { %1622 = vmatprep.mubr.bf16.mxu1 %v9059_v2  ;;  %6725 = vmatprep.subr.msk.bf16.mxu0 %vm494_vm0, %v8194_v29 }
  0x7b   : > { %1368 = vmatpush1.bf16.msra.mxu0 %v1258_v32 }
  0x7c   : > { %1529 = vmatprep.subr.bf16.mxu0 %v8199_v31 }
  0x7e   : > { %6721 = vmatmul.mubr.msk.bf16.gmra.mrb[12].mxu0 %vm487_vm2, %v1183_v18  ;;  %6757 = vmatmul.mubr.msk.bf16.gmra.mrb[12].mxu1 %vm487_vm2, %v9269_v39 }
  0x7f   : > { %1397 = vmatprep.mubr.bf16.mxu0 %v9059_v2  ;;  %1768 = vmatprep.mubr.bf16.mxu1 %v9059_v2 }
  0x86   : > { %6726 = vmatmul.mubr.msk.bf16.vlgmr.msra.gmra.mrb[0].mxu0 %vm487_vm2, %v1184_v21 }
  0x87   : > { %1407 = vmatprep.mubr.bf16.mxu0 %v9059_v2  ;;  %1530 = vmatpush1.bf16.msra.mxu0 %v8197_v33 }
  0x88   : > { %6752 = vmatprep.subr.msk.bf16.mxu0 %vm494_vm0, %v8200_v34 }
  0x8b   : > { %1532 = vmatpush1.bf16.msra.mxu0 %v1512_v37 }
  0x8c   : > { %1631 = vmatprep.subr.bf16.mxu0 %v8205_v36 }
  0x8e   : > { %6727 = vmatmul.mubr.msk.bf16.gmra.mrb[4].mxu0 %vm487_vm2, %v1183_v18 }
  0x8f   : > { %1561 = vmatprep.mubr.bf16.mxu0 %v9059_v2 }
  0x96   : > { %6753 = vmatmul.mubr.msk.bf16.vlgmr.msra.gmra.mrb[8].mxu0 %vm487_vm2, %v9276_v41 }
  0x97   : > { %1571 = vmatprep.mubr.bf16.mxu0 %v9059_v2  ;;  %1632 = vmatpush1.bf16.msra.mxu0 %v8203_v38 }
  0x98   : > { %6758 = vmatprep.subr.msk.bf16.mxu0 %vm494_vm0, %v8206_v40 }
  0x9b   : > { %1634 = vmatpush1.bf16.msra.mxu0 %v1524_v43 }
  0x9e   : > { %6754 = vmatmul.mubr.msk.bf16.gmra.mrb[12].mxu0 %vm487_vm2, %v9269_v39 }
  0x9f   : > { %1663 = vmatprep.mubr.bf16.mxu0 %v9059_v2 }
  0xa6   : > { %6759 = vmatmul.mubr.msk.bf16.vlgmr.msra.gmra.mrb[0].mxu0 %vm487_vm2, %v9276_v41  ;;  %v8216_v41 = vld [vmem:[%s11291_s5 + $0x30c] ss:$16 sps:$4 sm:$0xff]  }
  0xa7   : > { %1673 = vmatprep.mubr.bf16.mxu0 %v9059_v2  ;;  %2728 = vmatprep.subr.bf16.mxu0 %v8216_v41 }
  0xa8   : > { %2729 = vmatpush1.bf16.msra.mxu0 %v8214_v52 }
  0xae   : > { %6760 = vmatmul.mubr.msk.bf16.gmra.mrb[4].mxu0 %vm487_vm2, %v9269_v39  ;;  %v8222_v39 = vld [vmem:[%s11291_s5 + $0x32c] ss:$16 sps:$4 sm:$0xff]  }
  0xaf   : > { %2730 = vmatprep.subr.bf16.mxu0 %v8222_v39  ;;  %v8210_v39 = vld [vmem:[%s11289_s3] sm:$0x3f]  }
  0xb0   : > { %2731 = vmatpush1.bf16.msra.mxu0 %v8220_v53  ;;  %v8213_v53 = vld [vmem:[%s11291_s5 + $0x304] ss:$16 sps:$4 sm:$0xff]  }
  0xb1   : > { %2732 = vmatprep.subr.bf16.mxu0 %v8228_v54  ;;  %v8211_v54 = vld [vmem:[%s11291_s5 + $0x300] ss:$16 sps:$4 sm:$0xff]  }
  0xb4   : > { %2733 = vmatpush1.bf16.msra.mxu0 %v8226_v55  ;;  %v8219_v55 = vld [vmem:[%s11291_s5 + $0x324] ss:$16 sps:$4 sm:$0xff]  }
  0xb5   : > { %2734 = vmatprep.subr.bf16.mxu0 %v8234_v56  ;;  %v8217_v56 = vld [vmem:[%s11291_s5 + $0x320] ss:$16 sps:$4 sm:$0xff]  }
  0xb8   : > { %2735 = vmatpush1.bf16.msra.mxu0 %v8232_v57  ;;  %v8225_v57 = vld [vmem:[%s11291_s5 + $0x344] ss:$16 sps:$4 sm:$0xff]  }
  0xb9   : > { %2736 = vmatprep.subr.bf16.mxu0 %v8240_v58  ;;  %v8223_v58 = vld [vmem:[%s11291_s5 + $0x340] ss:$16 sps:$4 sm:$0xff]  }
  0xbc   : > { %2737 = vmatpush1.bf16.msra.mxu0 %v8238_v59  ;;  %v8231_v59 = vld [vmem:[%s11291_s5 + $0x364] ss:$16 sps:$4 sm:$0xff]  }
  0xbd   : > { %2738 = vmatprep.subr.bf16.mxu0 %v8246_v60  ;;  %v8229_v60 = vld [vmem:[%s11291_s5 + $0x360] ss:$16 sps:$4 sm:$0xff]  }
  0xc0   : > { %2739 = vmatpush1.bf16.msra.mxu0 %v8244_v61  ;;  %v8237_v61 = vld [vmem:[%s11291_s5 + $0x384] ss:$16 sps:$4 sm:$0xff]  }
  0xc1   : > { %2740 = vmatprep.subr.bf16.mxu0 %v8252_v62  ;;  %v8235_v62 = vld [vmem:[%s11291_s5 + $0x380] ss:$16 sps:$4 sm:$0xff]  }
  0xc4   : > { %2741 = vmatpush1.bf16.msra.mxu0 %v8250_v63  ;;  %v8243_v63 = vld [vmem:[%s11291_s5 + $0x3a4] ss:$16 sps:$4 sm:$0xff]  }
  0xc5   : > { %2742 = vmatprep.subr.bf16.mxu0 %v8258_v0  ;;  %v8241_v0 = vld [vmem:[%s11291_s5 + $0x3a0] ss:$16 sps:$4 sm:$0xff]  }
  0xc8   : > { %2743 = vmatpush1.bf16.msra.mxu0 %v8256_v1  ;;  %v8249_v1 = vld [vmem:[%s11291_s5 + $0x3c4] ss:$16 sps:$4 sm:$0xff]  }
  0xf9   : > { %v547_v44 = vpop.f32.mrb[0].mxu1 }
  0xfa   : > { %v549_v45 = vpop.f32.mrb[1].mxu1 }
  0xfb   : > { %v551_v46 = vpop.f32.mrb[2].mxu1 }
  0xfc   : > { %v553_v47 = vpop.f32.mrb[3].mxu1 }
 0x101   : > { %v557_v48 = vpop.f32.mrb[4].mxu1 }
 0x102   : > { %v559_v49 = vpop.f32.mrb[5].mxu1 }
 0x103   : > { %v561_v50 = vpop.f32.mrb[6].mxu1 }
 0x104   : > { %v562_v51 = vpop.f32.mrb[7].mxu1  ;;  %v8209_v50 = vld [vmem:[%s11288_s2] sm:$0x3f]  }
 0x105   : > { %v9060_v51 = vmov 0.0  }
 0x149   : > { %v1614_v3 = vpop.f32.mrb[8].mxu1 }
 0x14a   : > { %v1616_v4 = vpop.f32.mrb[9].mxu1 }
 0x14b   : > { %v1618_v5 = vpop.f32.mrb[10].mxu1 }
 0x14c   : > { %v1620_v6 = vpop.f32.mrb[11].mxu1 }
 0x151   : > { %v1624_v7 = vpop.f32.mrb[12].mxu1 }
 0x152   : > { %v1626_v8 = vpop.f32.mrb[13].mxu1 }
 0x153   : > { %v1628_v9 = vpop.f32.mrb[14].mxu1 }
 0x154   : > { %v1629_v10 = vpop.f32.mrb[15].mxu1  ;;  %v8262_v9 = vld [vmem:[%s11291_s5 + $0x408] ss:$16 sps:$4 sm:$0xff]  }
 0x155   : > { %v8267_v10 = vld [vmem:[%s11291_s5 + $0x424] ss:$16 sps:$4 sm:$0xff]  }
 0x169   : > { %v1563_v11 = vpop.f32.mrb[8].mxu0 }
 0x16a   : > { %v7911_v12 = vadd.f32 %v1563_v11, %v547_v44  ;;  %v1565_v13 = vpop.f32.mrb[9].mxu0  ;;  %v8270_v11 = vld [vmem:[%s11291_s5 + $0x42c] ss:$16 sps:$4 sm:$0xff]  }
 0x16b   : > { %v7912_v14 = vadd.f32 %v1565_v13, %v549_v45  ;;  %v1567_v15 = vpop.f32.mrb[10].mxu0  ;;  %v8268_v13 = vld [vmem:[%s11291_s5 + $0x428] ss:$16 sps:$4 sm:$0xff]  }
 0x16c   : > { %v1700_v18 = vmax.f32 %v7911_v12, %v1616_v4  ;;  %v7913_v16 = vadd.f32 %v1567_v15, %v551_v46  ;;  %v1569_v17 = vpop.f32.mrb[11].mxu0  ;;  %v8255_v4 = vld [vmem:[%s11291_s5 + $0x3e4] ss:$16 sps:$4 sm:$0xff]   ;;  %v8265_v12 = vld [vmem:[%s11291_s5 + $0x420] ss:$16 sps:$4 sm:$0xff]  }
 0x16d   : > { %v7914_v19 = vadd.f32 %v1569_v17, %v553_v47  ;;  %v8276_v15 = vld [vmem:[%s11291_s5 + $0x44c] ss:$16 sps:$4 sm:$0xff]   ;;  %v8279_v17 = vld [vmem:[%s11291_s5 + $0x464] ss:$16 sps:$4 sm:$0xff]  }
 0x16e   : > { %v1703_v20 = vmax.f32 %v7913_v16, %v1620_v6  ;;  %v8261_v6 = vld [vmem:[%s11291_s5 + $0x404] ss:$16 sps:$4 sm:$0xff]   ;;  %v8274_v16 = vld [vmem:[%s11291_s5 + $0x448] ss:$16 sps:$4 sm:$0xff]  }
 0x170   : > { %v1709_v21 = vpack.c.bf16 %v1703_v20, %v1700_v18  ;;  %v8271_v18 = vld [vmem:[%s11291_s5 + $0x440] ss:$16 sps:$4 sm:$0xff]  }
 0x171   : > { %v1573_v22 = vpop.f32.mrb[12].mxu0  ;;  %v8277_v20 = vld [vmem:[%s11291_s5 + $0x460] ss:$16 sps:$4 sm:$0xff]  }
 0x172   : > { %v7915_v23 = vadd.f32 %v1573_v22, %v557_v48  ;;  %v1575_v24 = vpop.f32.mrb[13].mxu0  ;;  %v8285_v22 = vld [vmem:[%s11291_s5 + $0x484] ss:$16 sps:$4 sm:$0xff]  }
 0x173   : > { %v7916_v25 = vadd.f32 %v1575_v24, %v559_v49  ;;  %v1577_v26 = vpop.f32.mrb[14].mxu0  ;;  %v8283_v24 = vld [vmem:[%s11291_s5 + $0x480] ss:$16 sps:$4 sm:$0xff]  }
 0x174   : > { %v1706_v27 = vmax.f32 %v7915_v23, %v1626_v8  ;;  %v1578_v28 = vpop.f32.mrb[15].mxu0  ;;  %v8259_v8 = vld [vmem:[%s11291_s5 + $0x400] ss:$16 sps:$4 sm:$0xff]   ;;  %v8288_v23 = vld [vmem:[%s11291_s5 + $0x48c] ss:$16 sps:$4 sm:$0xff]  }
 0x175   : > { %v8291_v26 = vld [vmem:[%s11291_s5 + $0x4a4] ss:$16 sps:$4 sm:$0xff]   ;;  %v8289_v28 = vld [vmem:[%s11291_s5 + $0x4a0] ss:$16 sps:$4 sm:$0xff]  }
 0x176   : > { %v1712_v42 = vpack.c.bf16 %v1706_v27, %v1706_v27  ;;  %v8294_v27 = vld [vmem:[%s11291_s5 + $0x4ac] ss:$16 sps:$4 sm:$0xff]  }
 0x178   : > { %v1728_v49 = vsel %vm1726_vm5, %v1712_v42, 0 }
 0x179   : > { %v1665_v29 = vpop.f32.mrb[0].mxu0 }
 0x17a   : > { %v1701_v30 = vmax.f32 %v7912_v14, %v1665_v29  ;;  %v1667_v31 = vpop.f32.mrb[1].mxu0  ;;  %v8273_v14 = vld [vmem:[%s11291_s5 + $0x444] ss:$16 sps:$4 sm:$0xff]   ;;  %v8292_v29 = vld [vmem:[%s11291_s5 + $0x4a8] ss:$16 sps:$4 sm:$0xff]  }
 0x17b   : > { %v1702_v32 = vmax.f32 %v1614_v3, %v1667_v31  ;;  %v1669_v33 = vpop.f32.mrb[2].mxu0  ;;  %v8247_v3 = vld [vmem:[%s11291_s5 + $0x3c0] ss:$16 sps:$4 sm:$0xff]   ;;  %v8300_v31 = vld [vmem:[%s11291_s5 + $0x4cc] ss:$16 sps:$4 sm:$0xff]  }
 0x17c   : > { %v1704_v34 = vmax.f32 %v7914_v19, %v1669_v33  ;;  %v1671_v35 = vpop.f32.mrb[3].mxu0  ;;  %v8282_v19 = vld [vmem:[%s11291_s5 + $0x46c] ss:$16 sps:$4 sm:$0xff]   ;;  %v8298_v33 = vld [vmem:[%s11291_s5 + $0x4c8] ss:$16 sps:$4 sm:$0xff]  }
 0x17d   : > { %v1705_v36 = vmax.f32 %v1618_v5, %v1671_v35  ;;  %v8253_v5 = vld [vmem:[%s11291_s5 + $0x3e0] ss:$16 sps:$4 sm:$0xff]   ;;  %v8306_v35 = vld [vmem:[%s11291_s5 + $0x4ec] ss:$16 sps:$4 sm:$0xff]  }
 0x17e   : > { %v1710_v37 = vpack.c.bf16 %v1704_v34, %v1701_v30  ;;  %v8297_v30 = vld [vmem:[%s11291_s5 + $0x4c4] ss:$16 sps:$4 sm:$0xff]  }
 0x17f   : > { %v1711_v38 = vpack.c.bf16 %v1705_v36, %v1702_v32  ;;  %v8295_v32 = vld [vmem:[%s11291_s5 + $0x4c0] ss:$16 sps:$4 sm:$0xff]   ;;  %v8303_v34 = vld [vmem:[%s11291_s5 + $0x4e4] ss:$16 sps:$4 sm:$0xff]  }
 0x180   : > { %1736 = vmatprep.subr.bf16.mxu1 %v1710_v37  ;;  %v8301_v36 = vld [vmem:[%s11291_s5 + $0x4e0] ss:$16 sps:$4 sm:$0xff]  }
 0x181   : > { %v1675_v40 = vpop.f32.mrb[4].mxu0  ;;  %1737 = vmatpush1.bf16.msra.mxu1 %v1709_v21 }
 0x182   : > { %v1707_v43 = vmax.f32 %v7916_v25, %v1675_v40  ;;  %v1677_v44 = vpop.f32.mrb[5].mxu0  ;;  %v8286_v25 = vld [vmem:[%s11291_s5 + $0x488] ss:$16 sps:$4 sm:$0xff]   ;;  %v8312_v40 = vld [vmem:[%s11291_s5 + $0x50c] ss:$16 sps:$4 sm:$0xff]  }
 0x183   : > { %v1708_v45 = vmax.f32 %v1624_v7, %v1677_v44  ;;  %v1679_v46 = vpop.f32.mrb[6].mxu0  ;;  %v8264_v7 = vld [vmem:[%s11291_s5 + $0x40c] ss:$16 sps:$4 sm:$0xff]  }
 0x184   : > { %v1713_v47 = vpack.c.bf16 %v1707_v43, %v1707_v43  ;;  %v1680_v48 = vpop.f32.mrb[7].mxu0  ;;  %2744 = vmatprep.subr.bf16.mxu0 %v8264_v7  ;;  %v1922_v46 = vlaneseq }
 0x185   : > { %v1714_v52 = vpack.c.bf16 %v1708_v45, %v1708_v45  ;;  %2745 = vmatpush1.bf16.msra.mxu0 %v8262_v9 }
 0x186   : > { %6762 = vmatprep.subr.msk.bf16.mxu1 %vm1726_vm5, %v1713_v47  ;;  %2746 = vmatprep.subr.bf16.mxu0 %v8270_v11 }
 0x187   : > { %1739 = vmatpush1.bf16.msra.mxu1 %v1728_v49  ;;  %v1734_v41 = vsel %vm1726_vm5, %v1714_v52, 0 }
 0x188   : > { %7895 = vmatprep.subr.bf16.mxu1 %v9060_v51 }
 0x189   : > { %2747 = vmatpush1.bf16.msra.mxu0 %v8268_v13 }
 0x18a   : > { %6763 = vmatmul.mubr.msk.bf16.vlgmr.msra.gmra.mrb[16].mxu1 %vm1722_vm6, %v8209_v50  ;;  %2748 = vmatprep.subr.bf16.mxu0 %v8276_v15 }
 0x18b   : > { %7896 = vmatpush3.bf16.msra.mxu1 %v1711_v38  ;;  %7899 = vmatprep.mubr.msk.bf16.mxu1 %vm9061_vm7, %v9060_v51 }
 0x18c   : > { %7897 = vmatprep.subr.bf16.mxu1 %v9060_v51 }
 0x18d   : > { %2749 = vmatpush1.bf16.msra.mxu0 %v8274_v16 }
 0x18e   : > { %2750 = vmatprep.subr.bf16.mxu0 %v8282_v19 }
 0x18f   : > { %7898 = vmatpush3.bf16.msra.mxu1 %v1734_v41 }
 0x190   : > { %1830 = vmatprep.subr.bf16.mxu1 %v1710_v37  ;;  %v8304_v37 = vld [vmem:[%s11291_s5 + $0x4e8] ss:$16 sps:$4 sm:$0xff]  }
 0x192   : > { %7900 = vmatmul.mubr.msk.bf16.vlgmr.msra.gmra.mrb[20].mxu1 %vm1722_vm6, %v8209_v50 }
 0x193   : > { %1831 = vmatpush1.bf16.msra.mxu1 %v1709_v21  ;;  %1862 = vmatprep.mubr.bf16.mxu1 %v9059_v2  ;;  %v8280_v21 = vld [vmem:[%s11291_s5 + $0x468] ss:$16 sps:$4 sm:$0xff]  }
 0x194   : > { %6766 = vmatprep.subr.msk.bf16.mxu1 %vm1726_vm5, %v1713_v47  ;;  %2751 = vmatpush1.bf16.msra.mxu0 %v8280_v21 }
 0x195   : > { %2752 = vmatprep.subr.bf16.mxu0 %v8288_v23 }
 0x197   : > { %1833 = vmatpush1.bf16.msra.mxu1 %v1728_v49  ;;  %v9708_v49 = vshrl.u32 %v1922_v46, 7  ;;  %v8319_v46 = vld [vmem:[%s11291_s5 + $0x540] ss:$16 sps:$4 sm:$0xff]  }
 0x198   : > { %7903 = vmatprep.subr.bf16.mxu1 %v9060_v51  ;;  %2753 = vmatpush1.bf16.msra.mxu0 %v8286_v25  ;;  %v8307_v25 = vld [vmem:[%s11291_s5 + $0x500] ss:$16 sps:$4 sm:$0xff]  }
 0x199   : > { %2754 = vmatprep.subr.bf16.mxu0 %v8294_v27  ;;  %v1924_v52 = vsub.s32 0, %v9708_v49 }
 0x19a   : > { %6767 = vmatmul.mubr.msk.bf16.vlgmr.msra.gmra.mrb[24].mxu1 %vm1722_vm6, %v8210_v39 }
 0x19b   : > { %7904 = vmatpush3.bf16.msra.mxu1 %v1711_v38  ;;  %7907 = vmatprep.mubr.msk.bf16.mxu1 %vm9061_vm7, %v9060_v51  ;;  %v8309_v38 = vld [vmem:[%s11291_s5 + $0x504] ss:$16 sps:$4 sm:$0xff]  }
 0x19c   : > { %7905 = vmatprep.subr.bf16.mxu1 %v9060_v51  ;;  %2755 = vmatpush1.bf16.msra.mxu0 %v8292_v29 }
 0x19d   : > { %2756 = vmatprep.subr.bf16.mxu0 %v8300_v31  ;;  %v8315_v31 = vld [vmem:[%s11291_s5 + $0x524] ss:$16 sps:$4 sm:$0xff]  }
 0x19f   : > { %7906 = vmatpush3.bf16.msra.mxu1 %v1734_v41  ;;  %v1920_v41 = vld [vmem:[%s11290_s4] sm:$0x7] }
 0x1a0   : > { %2646 = vmatprep.subr.bf16.mxu1 %v8213_v53  ;;  %2757 = vmatpush1.bf16.msra.mxu0 %v8298_v33 }
 0x1a1   : > { %2758 = vmatprep.subr.bf16.mxu0 %v8306_v35 }
 0x1a2   : > { %7908 = vmatmul.mubr.msk.bf16.vlgmr.msra.gmra.mrb[28].mxu1 %vm1722_vm6, %v8210_v39  ;;  %v1928_v39 = vsub.s32 1, %v9708_v49 }
 0x1a3   : > { %2647 = vmatpush1.bf16.msra.mxu1 %v8211_v54 }
 0x1a4   : > { %2648 = vmatprep.subr.bf16.mxu1 %v8219_v55  ;;  %2759 = vmatpush1.bf16.msra.mxu0 %v8304_v37  ;;  %v1925_v55 = vrot.slane %v1920_v41, %v1924_v52  ;;  %v8313_v37 = vld [vmem:[%s11291_s5 + $0x520] ss:$16 sps:$4 sm:$0xff]  }
 0x1a5   : > { %2769 = vmatprep.subr.bf16.mxu0 %v8312_v40  ;;  %v8321_v40 = vld [vmem:[%s11291_s5 + $0x544] ss:$16 sps:$4 sm:$0xff]  }
 0x1a7   : > { %2649 = vmatpush1.bf16.msra.mxu1 %v8217_v56 }
 0x1a8   : > { %2650 = vmatprep.subr.bf16.mxu1 %v8225_v57 }
 0x1ab   : > { %2651 = vmatpush1.bf16.msra.mxu1 %v8223_v58  ;;  %v1929_v58 = vrot.slane %v1920_v41, %v1928_v39 }
 0x1ac   : > { %2652 = vmatprep.subr.bf16.mxu1 %v8231_v59 }
 0x1af   : > { %2653 = vmatpush1.bf16.msra.mxu1 %v8229_v60 }
 0x1b0   : > { %2654 = vmatprep.subr.bf16.mxu1 %v8237_v61 }
 0x1b3   : > { %2655 = vmatpush1.bf16.msra.mxu1 %v8235_v62 }
 0x1b4   : > { %2656 = vmatprep.subr.bf16.mxu1 %v8243_v63 }
 0x1b7   : > { %2657 = vmatpush1.bf16.msra.mxu1 %v8241_v0 }
 0x1b8   : > { %2658 = vmatprep.subr.bf16.mxu1 %v8249_v1  ;;  %v1932_v1 = vsub.s32 2, %v9708_v49 }
 0x1ba   : > { %v1933_v9 = vrot.slane %v1920_v41, %v1932_v1  ;;  %v8328_v41 = vld [vmem:[%s11291_s5 + $0x568] ss:$16 sps:$4 sm:$0xff]  }
 0x1bb   : > { %2659 = vmatpush1.bf16.msra.mxu1 %v8247_v3  ;;  %v8346_v1 = vld [vmem:[%s11291_s5 + $0x5c8] ss:$16 sps:$4 sm:$0xff]  }
 0x1bc   : > { %2660 = vmatprep.subr.bf16.mxu1 %v8255_v4 }
 0x1bf   : > { %2661 = vmatpush1.bf16.msra.mxu1 %v8253_v5 }
 0x1c0   : > { %2662 = vmatprep.subr.bf16.mxu1 %v8261_v6 }
 0x1c3   : > { %2663 = vmatpush1.bf16.msra.mxu1 %v8259_v8 }
 0x1c4   : > { %2664 = vmatprep.subr.bf16.mxu1 %v8267_v10 }
 0x1c7   : > { %2665 = vmatpush1.bf16.msra.mxu1 %v8265_v12 }
 0x1c8   : > { %2666 = vmatprep.subr.bf16.mxu1 %v8273_v14 }
 0x1cb   : > { %2667 = vmatpush1.bf16.msra.mxu1 %v8271_v18 }
 0x1cc   : > { %2668 = vmatprep.subr.bf16.mxu1 %v8279_v17 }
 0x1cf   : > { %2669 = vmatpush1.bf16.msra.mxu1 %v8277_v20 }
 0x1d0   : > { %2670 = vmatprep.subr.bf16.mxu1 %v8285_v22 }
 0x1d3   : > { %2671 = vmatpush1.bf16.msra.mxu1 %v8283_v24 }
 0x1d4   : > { %2672 = vmatprep.subr.bf16.mxu1 %v8291_v26  ;;  %v8310_v26 = vld [vmem:[%s11291_s5 + $0x508] ss:$16 sps:$4 sm:$0xff]  }
 0x1d7   : > { %2673 = vmatpush1.bf16.msra.mxu1 %v8289_v28 }
 0x1d8   : > { %2674 = vmatprep.subr.bf16.mxu1 %v8297_v30 }
 0x1db   : > { %2675 = vmatpush1.bf16.msra.mxu1 %v8295_v32  ;;  %v8318_v32 = vld [vmem:[%s11291_s5 + $0x52c] ss:$16 sps:$4 sm:$0xff]  }
 0x1dc   : > { %2676 = vmatprep.subr.bf16.mxu1 %v8303_v34 }
 0x1df   : > { %2677 = vmatpush1.bf16.msra.mxu1 %v8301_v36 }
 0x1e0   : > { %2687 = vmatprep.subr.bf16.mxu1 %v8309_v38  ;;  %v8316_v38 = vld [vmem:[%s11291_s5 + $0x528] ss:$16 sps:$4 sm:$0xff]  }
 0x25d   : > { %v1770_v42 = vpop.f32.mrb[16].mxu1 }
 0x25e   : > { %v1772_v43 = vpop.f32.mrb[17].mxu1 }
 0x25f   : > { %v1774_v44 = vpop.f32.mrb[18].mxu1 }
 0x260   : > { %v1776_v45 = vpop.f32.mrb[19].mxu1 }
 0x265   : > { %v1813_v47 = vpop.f32.mrb[20].mxu1 }
 0x266   : > { %v7901_v48 = vpop.f32.mrb[21].mxu1 }
 0x267   : > { %v1816_v50 = vpop.f32.mrb[22].mxu1  ;;  %v8327_v48 = vld [vmem:[%s11291_s5 + $0x564] ss:$16 sps:$4 sm:$0xff]  }
 0x268   : > { %v7902_v51 = vpop.f32.mrb[23].mxu1 }
 0x269   : > { %v8325_v51 = vld [vmem:[%s11291_s5 + $0x560] ss:$16 sps:$4 sm:$0xff]  }
 0x26d   : > { %v1864_v53 = vpop.f32.mrb[24].mxu1 }
 0x26e   : > { %v1914_v54 = vmax.f32 %v1770_v42, %v1864_v53  ;;  %v1866_v56 = vpop.f32.mrb[25].mxu1  ;;  %v8324_v42 = vld [vmem:[%s11291_s5 + $0x54c] ss:$16 sps:$4 sm:$0xff]   ;;  %v8333_v53 = vld [vmem:[%s11291_s5 + $0x584] ss:$16 sps:$4 sm:$0xff]  }
 0x26f   : > { %v1915_v57 = vmax.f32 %v1772_v43, %v1866_v56  ;;  %v1868_v59 = vpop.f32.mrb[26].mxu1  ;;  %v8334_v56 = vld [vmem:[%s11291_s5 + $0x588] ss:$16 sps:$4 sm:$0xff]  }
 0x270   : > { %v1917_v60 = vmax.f32 %v1774_v44, %v1868_v59  ;;  %v1870_v61 = vpop.f32.mrb[27].mxu1  ;;  %v9719_v63 = vadd.f32 %v1925_v55, %v1914_v54  ;;  %v8336_v54 = vld [vmem:[%s11291_s5 + $0x58c] ss:$16 sps:$4 sm:$0xff]   ;;  %v8337_v59 = vld [vmem:[%s11291_s5 + $0x5a0] ss:$16 sps:$4 sm:$0xff]  }
 0x271   : > { %v1918_v62 = vmax.f32 %v1776_v45, %v1870_v61  ;;  %v9722_v3 = vadd.f32 %v1929_v58, %v1915_v57  ;;  %v8339_v57 = vld [vmem:[%s11291_s5 + $0x5a4] ss:$16 sps:$4 sm:$0xff]  }
 0x272   : > { %v1940_v0 = vadd.f32 %v1925_v55, %v1917_v60  ;;  %v8331_v55 = vld [vmem:[%s11291_s5 + $0x580] ss:$16 sps:$4 sm:$0xff]   ;;  %v8340_v60 = vld [vmem:[%s11291_s5 + $0x5a8] ss:$16 sps:$4 sm:$0xff]   ;;  %v8345_v61 = vld [vmem:[%s11291_s5 + $0x5c4] ss:$16 sps:$4 sm:$0xff]  }
 0x273   : > { %v1941_v4 = vadd.f32 %v1929_v58, %v1918_v62  ;;  %v8342_v58 = vld [vmem:[%s11291_s5 + $0x5ac] ss:$16 sps:$4 sm:$0xff]  }
 0x274   : > { %v9725_v5 = vpack.c.bf16 %v1940_v0, %v9719_v63  ;;  %v8348_v62 = vld [vmem:[%s11291_s5 + $0x5cc] ss:$16 sps:$4 sm:$0xff]   ;;  %v8343_v0 = vld [vmem:[%s11291_s5 + $0x5c0] ss:$16 sps:$4 sm:$0xff]  }
 0x275   : > { %v9728_v6 = vpack.c.bf16 %v1941_v4, %v9722_v3  ;;  %v1907_v7 = vpop.f32.mrb[28].mxu1  ;;  %v8351_v4 = vld [vmem:[%s11291_s5 + $0x5e4] ss:$16 sps:$4 sm:$0xff]  }
 0x276   : > { %v1916_v8 = vmax.f32 %v1813_v47, %v1907_v7  ;;  %v7909_v10 = vpop.f32.mrb[29].mxu1  ;;  %v2145_v11 = vshll.u32 %v9725_v5, 16  ;;  %v2143_v15 = vshrl.u32 %v9725_v5, 16  ;;  %v8322_v47 = vld [vmem:[%s11291_s5 + $0x548] ss:$16 sps:$4 sm:$0xff]  }
 0x277   : > { %v1910_v12 = vpop.f32.mrb[30].mxu1  ;;  %v2150_v13 = vshrl.u32 %v9728_v6, 16  ;;  %v2152_v14 = vshll.u32 %v9728_v6, 16  ;;  %v8354_v7 = vld [vmem:[%s11291_s5 + $0x5ec] ss:$16 sps:$4 sm:$0xff]  }
 0x278   : > { %v1919_v18 = vmax.f32 %v1816_v50, %v1910_v12  ;;  %v2147_v16 = vrot.slane %v2145_v11, 1  ;;  %v7910_v17 = vpop.f32.mrb[31].mxu1  ;;  %v9734_v21 = vadd.f32 %v1933_v9, %v1916_v8  ;;  %v4305_v27 = vrot.slane %v2143_v15, 1  ;;  %v8330_v50 = vld [vmem:[%s11291_s5 + $0x56c] ss:$16 sps:$4 sm:$0xff]  }
 0x279   : > { %v2154_v19 = vrot.slane %v2152_v14, 1  ;;  %v4308_v20 = vrot.slane %v2150_v13, 1  ;;  %v4309_v23 = vrot.slane %v2152_v14, 2  ;;  %v4306_v28 = vrot.slane %v2145_v11, 2  ;;  %v8349_v8 = vld [vmem:[%s11291_s5 + $0x5e0] ss:$16 sps:$4 sm:$0xff]  }
 0x27a   : > { %v1942_v22 = vadd.f32 %v1933_v9, %v1919_v18  ;;  %v2148_v30 = vor.u32 %v2147_v16, %v2143_v15  ;;  %v8352_v9 = vld [vmem:[%s11291_s5 + $0x5e8] ss:$16 sps:$4 sm:$0xff]   ;;  %v8357_v11 = vld [vmem:[%s11291_s5 + $0x4] ss:$16 sps:$4 sm:$0xff]   ;;  %v8360_v12 = vld [vmem:[%s11291_s5 + $0xc] ss:$16 sps:$4 sm:$0xff]   ;;  %v1944_v18 = vpack.c.bf16 %v9722_v3, %v9722_v3 }
 0x27b   : > { %v2155_v24 = vor.u32 %v2154_v19, %v2150_v13  ;;  %v9751_v33 = vor.u32 %v4309_v23, %v4308_v20  ;;  %v9753_v34 = vor.u32 %v4306_v28, %v4305_v27  ;;  %v8355_v13 = vld [vmem:[%s11291_s5] ss:$16 sps:$4 sm:$0xff]   ;;  %v8358_v15 = vld [vmem:[%s11291_s5 + $0x8] ss:$16 sps:$4 sm:$0xff]   ;;  %v8363_v16 = vld [vmem:[%s11291_s5 + $0x24] ss:$16 sps:$4 sm:$0xff]  }
 0x27c   : > { %v9743_v29 = vpack.c.bf16 %v1942_v22, %v9734_v21  ;;  %v8366_v17 = vld [vmem:[%s11291_s5 + $0x2c] ss:$16 sps:$4 sm:$0xff]   ;;  %v8361_v19 = vld [vmem:[%s11291_s5 + $0x20] ss:$16 sps:$4 sm:$0xff]   ;;  %v8364_v3 = vld [vmem:[%s11291_s5 + $0x28] ss:$16 sps:$4 sm:$0xff]  }
 0x27d   : > { %2678 = vmatprep.mubr.bf16.mxu1 %v2155_v24  ;;  %2760 = vmatprep.mubr.bf16.mxu0 %v2155_v24  ;;  %v8369_v20 = vld [vmem:[%s11291_s5 + $0x44] ss:$16 sps:$4 sm:$0xff]   ;;  %v8372_v22 = vld [vmem:[%s11291_s5 + $0x4c] ss:$16 sps:$4 sm:$0xff]   ;;  %v8367_v23 = vld [vmem:[%s11291_s5 + $0x40] ss:$16 sps:$4 sm:$0xff]  }
 0x27e   : > { %2679 = vmatmul.mubr.bf16.vlgmr.msra.gmra.mrb[32].mxu1 %v2148_v30  ;;  %2761 = vmatmul.mubr.bf16.vlgmr.msra.gmra.mrb[16].mxu0 %v2148_v30  ;;  %v2157_v35 = vshrl.u32 %v9743_v29, 16  ;;  %v2159_v36 = vshll.u32 %v9743_v29, 16  ;;  %v8370_v24 = vld [vmem:[%s11291_s5 + $0x48] ss:$16 sps:$4 sm:$0xff]   ;;  %v8373_v27 = vld [vmem:[%s11291_s5 + $0x60] ss:$16 sps:$4 sm:$0xff]  }
 0x27f   : > { %2688 = vmatpush1.bf16.msra.mxu1 %v8307_v25  ;;  %2770 = vmatpush1.bf16.msra.mxu0 %v8310_v26  ;;  %v8375_v25 = vld [vmem:[%s11291_s5 + $0x64] ss:$16 sps:$4 sm:$0xff]   ;;  %v8378_v26 = vld [vmem:[%s11291_s5 + $0x6c] ss:$16 sps:$4 sm:$0xff]   ;;  %v8376_v28 = vld [vmem:[%s11291_s5 + $0x68] ss:$16 sps:$4 sm:$0xff]  }
 0x280   : > { %2689 = vmatprep.subr.bf16.mxu1 %v8315_v31  ;;  %2771 = vmatprep.subr.bf16.mxu0 %v8318_v32  ;;  %v4311_v43 = vrot.slane %v2157_v35, 1  ;;  %v4312_v44 = vrot.slane %v2159_v36, 2  ;;  %v2161_v10 = vrot.slane %v2159_v36, 1  ;;  %v8381_v30 = vld [vmem:[%s11291_s5 + $0x84] ss:$16 sps:$4 sm:$0xff]  }
 0x281   : > { %2719 = vmatprep.mubr.bf16.mxu1 %v9059_v2  ;;  %2801 = vmatprep.mubr.bf16.mxu0 %v9059_v2  ;;  %v8384_v31 = vld [vmem:[%s11291_s5 + $0x8c] ss:$16 sps:$4 sm:$0xff]   ;;  %v8379_v32 = vld [vmem:[%s11291_s5 + $0x80] ss:$16 sps:$4 sm:$0xff]   ;;  %v8387_v36 = vld [vmem:[%s11291_s5 + $0xa4] ss:$16 sps:$4 sm:$0xff]  }
 0x282   : > { %v9773_v45 = vor.u32 %v4312_v44, %v4311_v43  ;;  %v2162_v14 = vor.u32 %v2161_v10, %v2157_v35  ;;  %v8382_v35 = vld [vmem:[%s11291_s5 + $0x88] ss:$16 sps:$4 sm:$0xff]   ;;  %v8396_v43 = vld [vmem:[%s11291_s5 + $0xcc] ss:$16 sps:$4 sm:$0xff]   ;;  %v8391_v44 = vld [vmem:[%s11291_s5 + $0xc0] ss:$16 sps:$4 sm:$0xff]  }
 0x283   : > { %2690 = vmatpush1.bf16.msra.mxu1 %v8313_v37  ;;  %2772 = vmatpush1.bf16.msra.mxu0 %v8316_v38  ;;  %v8390_v37 = vld [vmem:[%s11291_s5 + $0xac] ss:$16 sps:$4 sm:$0xff]   ;;  %v8385_v38 = vld [vmem:[%s11291_s5 + $0xa0] ss:$16 sps:$4 sm:$0xff]  }
 0x284   : > { %2691 = vmatprep.subr.bf16.mxu1 %v8321_v40  ;;  %2773 = vmatprep.subr.bf16.mxu0 %v8324_v42  ;;  %v8388_v40 = vld [vmem:[%s11291_s5 + $0xa8] ss:$16 sps:$4 sm:$0xff]   ;;  %v8393_v42 = vld [vmem:[%s11291_s5 + $0xc4] ss:$16 sps:$4 sm:$0xff]   ;;  %v8432_v10 = vld [vmem:[%s11291_s5 + $0x18c] ss:$16 sps:$4 sm:$0xff]  }
 0x287   : > { %2692 = vmatpush1.bf16.msra.mxu1 %v8319_v46  ;;  %2774 = vmatpush1.bf16.msra.mxu0 %v8322_v47  ;;  %v8394_v46 = vld [vmem:[%s11291_s5 + $0xc8] ss:$16 sps:$4 sm:$0xff]   ;;  %v8399_v47 = vld [vmem:[%s11291_s5 + $0xe4] ss:$16 sps:$4 sm:$0xff]  }
 0x288   : > { %2693 = vmatprep.subr.bf16.mxu1 %v8327_v48  ;;  %2775 = vmatprep.subr.bf16.mxu0 %v8330_v50  ;;  %v8402_v48 = vld [vmem:[%s11291_s5 + $0xec] ss:$16 sps:$4 sm:$0xff]   ;;  %v8397_v50 = vld [vmem:[%s11291_s5 + $0xe0] ss:$16 sps:$4 sm:$0xff]  }
 0x28b   : > { %2694 = vmatpush1.bf16.msra.mxu1 %v8325_v51  ;;  %2776 = vmatpush1.bf16.msra.mxu0 %v8328_v41  ;;  %v8400_v51 = vld [vmem:[%s11291_s5 + $0xe8] ss:$16 sps:$4 sm:$0xff]   ;;  %v8405_v41 = vld [vmem:[%s11291_s5 + $0x104] ss:$16 sps:$4 sm:$0xff]  }
 0x28c   : > { %2695 = vmatprep.subr.bf16.mxu1 %v8333_v53  ;;  %2777 = vmatprep.subr.bf16.mxu0 %v8336_v54  ;;  %v8408_v53 = vld [vmem:[%s11291_s5 + $0x10c] ss:$16 sps:$4 sm:$0xff]   ;;  %v8403_v54 = vld [vmem:[%s11291_s5 + $0x100] ss:$16 sps:$4 sm:$0xff]  }
 0x28f   : > { %2696 = vmatpush1.bf16.msra.mxu1 %v8331_v55  ;;  %2778 = vmatpush1.bf16.msra.mxu0 %v8334_v56  ;;  %v8406_v55 = vld [vmem:[%s11291_s5 + $0x108] ss:$16 sps:$4 sm:$0xff]   ;;  %v8411_v56 = vld [vmem:[%s11291_s5 + $0x124] ss:$16 sps:$4 sm:$0xff]  }
 0x290   : > { %2697 = vmatprep.subr.bf16.mxu1 %v8339_v57  ;;  %2779 = vmatprep.subr.bf16.mxu0 %v8342_v58  ;;  %v8414_v57 = vld [vmem:[%s11291_s5 + $0x12c] ss:$16 sps:$4 sm:$0xff]   ;;  %v8409_v58 = vld [vmem:[%s11291_s5 + $0x120] ss:$16 sps:$4 sm:$0xff]  }
 0x293   : > { %2698 = vmatpush1.bf16.msra.mxu1 %v8337_v59  ;;  %2780 = vmatpush1.bf16.msra.mxu0 %v8340_v60  ;;  %v8412_v59 = vld [vmem:[%s11291_s5 + $0x128] ss:$16 sps:$4 sm:$0xff]   ;;  %v8417_v60 = vld [vmem:[%s11291_s5 + $0x144] ss:$16 sps:$4 sm:$0xff]  }
 0x294   : > { %2699 = vmatprep.subr.bf16.mxu1 %v8345_v61  ;;  %2781 = vmatprep.subr.bf16.mxu0 %v8348_v62  ;;  %v8420_v61 = vld [vmem:[%s11291_s5 + $0x14c] ss:$16 sps:$4 sm:$0xff]   ;;  %v8415_v62 = vld [vmem:[%s11291_s5 + $0x140] ss:$16 sps:$4 sm:$0xff]  }
 0x297   : > { %2700 = vmatpush1.bf16.msra.mxu1 %v8343_v0  ;;  %2782 = vmatpush1.bf16.msra.mxu0 %v8346_v1  ;;  %v8418_v0 = vld [vmem:[%s11291_s5 + $0x148] ss:$16 sps:$4 sm:$0xff]   ;;  %v8423_v1 = vld [vmem:[%s11291_s5 + $0x164] ss:$16 sps:$4 sm:$0xff]  }
 0x298   : > { %2701 = vmatprep.subr.bf16.mxu1 %v8351_v4  ;;  %2783 = vmatprep.subr.bf16.mxu0 %v8354_v7  ;;  %v8426_v4 = vld [vmem:[%s11291_s5 + $0x16c] ss:$16 sps:$4 sm:$0xff]   ;;  %v8421_v7 = vld [vmem:[%s11291_s5 + $0x160] ss:$16 sps:$4 sm:$0xff]  }
 0x29b   : > { %2702 = vmatpush1.bf16.msra.mxu1 %v8349_v8  ;;  %2784 = vmatpush1.bf16.msra.mxu0 %v8352_v9  ;;  %v8424_v8 = vld [vmem:[%s11291_s5 + $0x168] ss:$16 sps:$4 sm:$0xff]   ;;  %v8429_v9 = vld [vmem:[%s11291_s5 + $0x184] ss:$16 sps:$4 sm:$0xff]  }
 0x29c   : > { %3290 = vmatprep.subr.bf16.mxu1 %v8357_v11  ;;  %3372 = vmatprep.subr.bf16.mxu0 %v8360_v12  ;;  %v8427_v11 = vld [vmem:[%s11291_s5 + $0x180] ss:$16 sps:$4 sm:$0xff]   ;;  %v8430_v12 = vld [vmem:[%s11291_s5 + $0x188] ss:$16 sps:$4 sm:$0xff]  }
 0x29e   : > { %2720 = vmatmul.mubr.bf16.vlgmr.msra.gmra.mrb[32].mxu1 %v2162_v14  ;;  %2802 = vmatmul.mubr.bf16.vlgmr.msra.gmra.mrb[16].mxu0 %v2162_v14  ;;  %v8438_v14 = vld [vmem:[%s11291_s5 + $0x1ac] ss:$16 sps:$4 sm:$0xff]  }
 0x29f   : > { %3291 = vmatpush1.bf16.msra.mxu1 %v8355_v13  ;;  %3322 = vmatprep.mubr.bf16.mxu1 %v1944_v18  ;;  %v8435_v13 = vld [vmem:[%s11291_s5 + $0x1a4] ss:$16 sps:$4 sm:$0xff]  }
 0x2a0   : > { %3373 = vmatpush1.bf16.msra.mxu0 %v8358_v15  ;;  %3404 = vmatprep.mubr.bf16.mxu0 %v1944_v18  ;;  %v8433_v15 = vld [vmem:[%s11291_s5 + $0x1a0] ss:$16 sps:$4 sm:$0xff]   ;;  %v8436_v18 = vld [vmem:[%s11291_s5 + $0x1a8] ss:$16 sps:$4 sm:$0xff]  }
 0x2a1   : > { %3292 = vmatprep.subr.bf16.mxu1 %v8363_v16  ;;  %3374 = vmatprep.subr.bf16.mxu0 %v8366_v17  ;;  %v8441_v16 = vld [vmem:[%s11291_s5 + $0x1c4] ss:$16 sps:$4 sm:$0xff]   ;;  %v8444_v17 = vld [vmem:[%s11291_s5 + $0x1cc] ss:$16 sps:$4 sm:$0xff]  }
 0x2a3   : > { %3293 = vmatpush1.bf16.msra.mxu1 %v8361_v19  ;;  %v8439_v19 = vld [vmem:[%s11291_s5 + $0x1c0] ss:$16 sps:$4 sm:$0xff]  }
 0x2a4   : > { %3375 = vmatpush1.bf16.msra.mxu0 %v8364_v3  ;;  %3294 = vmatprep.subr.bf16.mxu1 %v8369_v20  ;;  %v8442_v3 = vld [vmem:[%s11291_s5 + $0x1c8] ss:$16 sps:$4 sm:$0xff]   ;;  %v8447_v20 = vld [vmem:[%s11291_s5 + $0x1e4] ss:$16 sps:$4 sm:$0xff]  }
 0x2a5   : > { %3376 = vmatprep.subr.bf16.mxu0 %v8372_v22  ;;  %v8450_v22 = vld [vmem:[%s11291_s5 + $0x1ec] ss:$16 sps:$4 sm:$0xff]  }
 0x2a7   : > { %3295 = vmatpush1.bf16.msra.mxu1 %v8367_v23  ;;  %v8445_v23 = vld [vmem:[%s11291_s5 + $0x1e0] ss:$16 sps:$4 sm:$0xff]  }
 0x2a8   : > { %3377 = vmatpush1.bf16.msra.mxu0 %v8370_v24  ;;  %3296 = vmatprep.subr.bf16.mxu1 %v8375_v25  ;;  %v8448_v24 = vld [vmem:[%s11291_s5 + $0x1e8] ss:$16 sps:$4 sm:$0xff]   ;;  %v8453_v25 = vld [vmem:[%s11291_s5 + $0x204] ss:$16 sps:$4 sm:$0xff]  }
 0x2a9   : > { %3378 = vmatprep.subr.bf16.mxu0 %v8378_v26  ;;  %v8456_v26 = vld [vmem:[%s11291_s5 + $0x20c] ss:$16 sps:$4 sm:$0xff]  }
 0x2ab   : > { %3297 = vmatpush1.bf16.msra.mxu1 %v8373_v27  ;;  %v8451_v27 = vld [vmem:[%s11291_s5 + $0x200] ss:$16 sps:$4 sm:$0xff]  }
 0x2ac   : > { %3379 = vmatpush1.bf16.msra.mxu0 %v8376_v28  ;;  %3298 = vmatprep.subr.bf16.mxu1 %v8381_v30  ;;  %v1943_v28 = vpack.c.bf16 %v9719_v63, %v9719_v63  ;;  %v8454_v30 = vld [vmem:[%s11291_s5 + $0x208] ss:$16 sps:$4 sm:$0xff]   ;;  %v8457_v63 = vld [vmem:[%s11291_s5 + $0x220] ss:$16 sps:$4 sm:$0xff]  }
 0x2ad   : > { %3380 = vmatprep.subr.bf16.mxu0 %v8384_v31  ;;  %v8459_v31 = vld [vmem:[%s11291_s5 + $0x224] ss:$16 sps:$4 sm:$0xff]  }
 0x2af   : > { %3299 = vmatpush1.bf16.msra.mxu1 %v8379_v32  ;;  %v8462_v32 = vld [vmem:[%s11291_s5 + $0x22c] ss:$16 sps:$4 sm:$0xff]  }
 0x2b0   : > { %3381 = vmatpush1.bf16.msra.mxu0 %v8382_v35  ;;  %3300 = vmatprep.subr.bf16.mxu1 %v8387_v36  ;;  %v8460_v35 = vld [vmem:[%s11291_s5 + $0x228] ss:$16 sps:$4 sm:$0xff]   ;;  %v8465_v36 = vld [vmem:[%s11291_s5 + $0x244] ss:$16 sps:$4 sm:$0xff]  }
 0x2b1   : > { %3382 = vmatprep.subr.bf16.mxu0 %v8390_v37  ;;  %v8468_v37 = vld [vmem:[%s11291_s5 + $0x24c] ss:$16 sps:$4 sm:$0xff]  }
 0x2b3   : > { %3301 = vmatpush1.bf16.msra.mxu1 %v8385_v38  ;;  %v8463_v38 = vld [vmem:[%s11291_s5 + $0x240] ss:$16 sps:$4 sm:$0xff]  }
 0x2b4   : > { %3383 = vmatpush1.bf16.msra.mxu0 %v8388_v40  ;;  %3302 = vmatprep.subr.bf16.mxu1 %v8393_v42  ;;  %v8466_v40 = vld [vmem:[%s11291_s5 + $0x248] ss:$16 sps:$4 sm:$0xff]   ;;  %v8471_v42 = vld [vmem:[%s11291_s5 + $0x264] ss:$16 sps:$4 sm:$0xff]  }
 0x2b5   : > { %3384 = vmatprep.subr.bf16.mxu0 %v8396_v43  ;;  %v8474_v43 = vld [vmem:[%s11291_s5 + $0x26c] ss:$16 sps:$4 sm:$0xff]  }
 0x2b7   : > { %3303 = vmatpush1.bf16.msra.mxu1 %v8391_v44  ;;  %v8469_v44 = vld [vmem:[%s11291_s5 + $0x260] ss:$16 sps:$4 sm:$0xff]  }
 0x2b8   : > { %3385 = vmatpush1.bf16.msra.mxu0 %v8394_v46  ;;  %3304 = vmatprep.subr.bf16.mxu1 %v8399_v47  ;;  %v8472_v46 = vld [vmem:[%s11291_s5 + $0x268] ss:$16 sps:$4 sm:$0xff]   ;;  %v8477_v47 = vld [vmem:[%s11291_s5 + $0x284] ss:$16 sps:$4 sm:$0xff]  }
 0x2b9   : > { %3386 = vmatprep.subr.bf16.mxu0 %v8402_v48  ;;  %v8480_v48 = vld [vmem:[%s11291_s5 + $0x28c] ss:$16 sps:$4 sm:$0xff]  }
 0x2bb   : > { %3305 = vmatpush1.bf16.msra.mxu1 %v8397_v50  ;;  %v8475_v50 = vld [vmem:[%s11291_s5 + $0x280] ss:$16 sps:$4 sm:$0xff]  }
 0x2bc   : > { %3387 = vmatpush1.bf16.msra.mxu0 %v8400_v51  ;;  %3306 = vmatprep.subr.bf16.mxu1 %v8405_v41  ;;  %v8478_v51 = vld [vmem:[%s11291_s5 + $0x288] ss:$16 sps:$4 sm:$0xff]   ;;  %v8483_v41 = vld [vmem:[%s11291_s5 + $0x2a4] ss:$16 sps:$4 sm:$0xff]  }
 0x2bd   : > { %3388 = vmatprep.subr.bf16.mxu0 %v8408_v53  ;;  %v8486_v53 = vld [vmem:[%s11291_s5 + $0x2ac] ss:$16 sps:$4 sm:$0xff]  }
 0x2bf   : > { %3307 = vmatpush1.bf16.msra.mxu1 %v8403_v54  ;;  %v8481_v54 = vld [vmem:[%s11291_s5 + $0x2a0] ss:$16 sps:$4 sm:$0xff]  }
 0x2c0   : > { %3389 = vmatpush1.bf16.msra.mxu0 %v8406_v55  ;;  %3308 = vmatprep.subr.bf16.mxu1 %v8411_v56  ;;  %v8484_v55 = vld [vmem:[%s11291_s5 + $0x2a8] ss:$16 sps:$4 sm:$0xff]   ;;  %v8489_v56 = vld [vmem:[%s11291_s5 + $0x2c4] ss:$16 sps:$4 sm:$0xff]  }
 0x2c1   : > { %3390 = vmatprep.subr.bf16.mxu0 %v8414_v57  ;;  %v8492_v57 = vld [vmem:[%s11291_s5 + $0x2cc] ss:$16 sps:$4 sm:$0xff]  }
 0x2c3   : > { %3309 = vmatpush1.bf16.msra.mxu1 %v8409_v58  ;;  %v8487_v58 = vld [vmem:[%s11291_s5 + $0x2c0] ss:$16 sps:$4 sm:$0xff]  }
 0x2c4   : > { %3391 = vmatpush1.bf16.msra.mxu0 %v8412_v59  ;;  %3310 = vmatprep.subr.bf16.mxu1 %v8417_v60  ;;  %v8490_v59 = vld [vmem:[%s11291_s5 + $0x2c8] ss:$16 sps:$4 sm:$0xff]   ;;  %v8495_v60 = vld [vmem:[%s11291_s5 + $0x2e4] ss:$16 sps:$4 sm:$0xff]  }
 0x2c5   : > { %3392 = vmatprep.subr.bf16.mxu0 %v8420_v61  ;;  %v8498_v61 = vld [vmem:[%s11291_s5 + $0x2ec] ss:$16 sps:$4 sm:$0xff]  }
 0x2c7   : > { %3311 = vmatpush1.bf16.msra.mxu1 %v8415_v62  ;;  %v8493_v62 = vld [vmem:[%s11291_s5 + $0x2e0] ss:$16 sps:$4 sm:$0xff]  }
 0x2c8   : > { %3393 = vmatpush1.bf16.msra.mxu0 %v8418_v0  ;;  %3312 = vmatprep.subr.bf16.mxu1 %v8423_v1  ;;  %v8496_v0 = vld [vmem:[%s11291_s5 + $0x2e8] ss:$16 sps:$4 sm:$0xff]   ;;  %v8501_v1 = vld [vmem:[%s11291_s5 + $0x604] ss:$16 sps:$4 sm:$0xff]  }
 0x2c9   : > { %3394 = vmatprep.subr.bf16.mxu0 %v8426_v4  ;;  %v8504_v4 = vld [vmem:[%s11291_s5 + $0x60c] ss:$16 sps:$4 sm:$0xff]  }
 0x2cb   : > { %3313 = vmatpush1.bf16.msra.mxu1 %v8421_v7  ;;  %v8499_v7 = vld [vmem:[%s11291_s5 + $0x600] ss:$16 sps:$4 sm:$0xff]  }
 0x2cc   : > { %3395 = vmatpush1.bf16.msra.mxu0 %v8424_v8  ;;  %3314 = vmatprep.subr.bf16.mxu1 %v8429_v9  ;;  %v1945_v8 = vpack.c.bf16 %v9734_v21, %v9734_v21  ;;  %v8502_v9 = vld [vmem:[%s11291_s5 + $0x608] ss:$16 sps:$4 sm:$0xff]   ;;  %v8505_v21 = vld [vmem:[%s11291_s5 + $0x620] ss:$16 sps:$4 sm:$0xff]  }
 0x2cd   : > { %3396 = vmatprep.subr.bf16.mxu0 %v8432_v10  ;;  %v8507_v10 = vld [vmem:[%s11291_s5 + $0x624] ss:$16 sps:$4 sm:$0xff]  }
 0x2cf   : > { %3315 = vmatpush1.bf16.msra.mxu1 %v8427_v11  ;;  %v3555_v11 = vrot.slane %v9728_v6, 1 }
 0x2d0   : > { %3397 = vmatpush1.bf16.msra.mxu0 %v8430_v12  ;;  %3316 = vmatprep.subr.bf16.mxu1 %v8435_v13  ;;  %v8510_v12 = vld [vmem:[%s11291_s5 + $0x62c] ss:$16 sps:$4 sm:$0xff]   ;;  %v8508_v13 = vld [vmem:[%s11291_s5 + $0x628] ss:$16 sps:$4 sm:$0xff]  }
 0x2d1   : > { %3398 = vmatprep.subr.bf16.mxu0 %v8438_v14  ;;  %v8513_v14 = vld [vmem:[%s11291_s5 + $0x644] ss:$16 sps:$4 sm:$0xff]  }
 0x2d3   : > { %3317 = vmatpush1.bf16.msra.mxu1 %v8433_v15  ;;  %v8516_v15 = vld [vmem:[%s11291_s5 + $0x64c] ss:$16 sps:$4 sm:$0xff]  }
 0x2d4   : > { %3399 = vmatpush1.bf16.msra.mxu0 %v8436_v18  ;;  %3318 = vmatprep.subr.bf16.mxu1 %v8441_v16  ;;  %v8511_v18 = vld [vmem:[%s11291_s5 + $0x640] ss:$16 sps:$4 sm:$0xff]   ;;  %v8514_v16 = vld [vmem:[%s11291_s5 + $0x648] ss:$16 sps:$4 sm:$0xff]  }
 0x2d5   : > { %3400 = vmatprep.subr.bf16.mxu0 %v8444_v17  ;;  %v8519_v17 = vld [vmem:[%s11291_s5 + $0x664] ss:$16 sps:$4 sm:$0xff]  }
 0x2d7   : > { %3319 = vmatpush1.bf16.msra.mxu1 %v8439_v19  ;;  %v8522_v19 = vld [vmem:[%s11291_s5 + $0x66c] ss:$16 sps:$4 sm:$0xff]  }
 0x2d8   : > { %3401 = vmatpush1.bf16.msra.mxu0 %v8442_v3  ;;  %3320 = vmatprep.subr.bf16.mxu1 %v8447_v20  ;;  %v8517_v3 = vld [vmem:[%s11291_s5 + $0x660] ss:$16 sps:$4 sm:$0xff]   ;;  %v8520_v20 = vld [vmem:[%s11291_s5 + $0x668] ss:$16 sps:$4 sm:$0xff]  }
 0x2d9   : > { %3402 = vmatprep.subr.bf16.mxu0 %v8450_v22  ;;  %v8525_v22 = vld [vmem:[%s11291_s5 + $0x684] ss:$16 sps:$4 sm:$0xff]  }
 0x2db   : > { %3321 = vmatpush1.bf16.msra.mxu1 %v8445_v23  ;;  %v8528_v23 = vld [vmem:[%s11291_s5 + $0x68c] ss:$16 sps:$4 sm:$0xff]  }
 0x2dc   : > { %3403 = vmatpush1.bf16.msra.mxu0 %v8448_v24  ;;  %3331 = vmatprep.subr.bf16.mxu1 %v8453_v25  ;;  %v8523_v24 = vld [vmem:[%s11291_s5 + $0x680] ss:$16 sps:$4 sm:$0xff]   ;;  %v8526_v25 = vld [vmem:[%s11291_s5 + $0x688] ss:$16 sps:$4 sm:$0xff]  }
 0x2dd   : > { %3413 = vmatprep.subr.bf16.mxu0 %v8456_v26  ;;  %v8531_v26 = vld [vmem:[%s11291_s5 + $0x6a4] ss:$16 sps:$4 sm:$0xff]  }
 0x2de   : > { %3323 = vmatmul.mubr.bf16.vlgmr.msra.gmra.mrb[32].mxu1 %v1943_v28 }
 0x2df   : > { %3405 = vmatmul.mubr.bf16.vlgmr.msra.gmra.mrb[16].mxu0 %v1943_v28  ;;  %3332 = vmatpush1.bf16.msra.mxu1 %v8451_v27  ;;  %v8534_v27 = vld [vmem:[%s11291_s5 + $0x6ac] ss:$16 sps:$4 sm:$0xff]   ;;  %v8529_v28 = vld [vmem:[%s11291_s5 + $0x6a0] ss:$16 sps:$4 sm:$0xff]  }
 0x2e0   : > { %3414 = vmatpush1.bf16.msra.mxu0 %v8454_v30  ;;  %3333 = vmatprep.subr.bf16.mxu1 %v8459_v31  ;;  %v8532_v30 = vld [vmem:[%s11291_s5 + $0x6a8] ss:$16 sps:$4 sm:$0xff]   ;;  %v8537_v31 = vld [vmem:[%s11291_s5 + $0x6c4] ss:$16 sps:$4 sm:$0xff]  }
 0x2e1   : > { %3415 = vmatprep.subr.bf16.mxu0 %v8462_v32  ;;  %3363 = vmatprep.mubr.bf16.mxu1 %v9059_v2  ;;  %v8540_v32 = vld [vmem:[%s11291_s5 + $0x6cc] ss:$16 sps:$4 sm:$0xff]  }
 0x2e2   : > { %3445 = vmatprep.mubr.bf16.mxu0 %v9059_v2 }
 0x2e3   : > { %3334 = vmatpush1.bf16.msra.mxu1 %v8457_v63  ;;  %v8535_v63 = vld [vmem:[%s11291_s5 + $0x6c0] ss:$16 sps:$4 sm:$0xff]  }
 0x2e4   : > { %3416 = vmatpush1.bf16.msra.mxu0 %v8460_v35  ;;  %3335 = vmatprep.subr.bf16.mxu1 %v8465_v36  ;;  %v8538_v35 = vld [vmem:[%s11291_s5 + $0x6c8] ss:$16 sps:$4 sm:$0xff]   ;;  %v8543_v36 = vld [vmem:[%s11291_s5 + $0x6e4] ss:$16 sps:$4 sm:$0xff]  }
 0x2e5   : > { %3417 = vmatprep.subr.bf16.mxu0 %v8468_v37  ;;  %v8546_v37 = vld [vmem:[%s11291_s5 + $0x6ec] ss:$16 sps:$4 sm:$0xff]  }
 0x2e7   : > { %3336 = vmatpush1.bf16.msra.mxu1 %v8463_v38  ;;  %v8541_v38 = vld [vmem:[%s11291_s5 + $0x6e0] ss:$16 sps:$4 sm:$0xff]  }
 0x2e8   : > { %3418 = vmatpush1.bf16.msra.mxu0 %v8466_v40  ;;  %3337 = vmatprep.subr.bf16.mxu1 %v8471_v42  ;;  %v8544_v40 = vld [vmem:[%s11291_s5 + $0x6e8] ss:$16 sps:$4 sm:$0xff]   ;;  %v8549_v42 = vld [vmem:[%s11291_s5 + $0x704] ss:$16 sps:$4 sm:$0xff]  }
 0x2e9   : > { %3419 = vmatprep.subr.bf16.mxu0 %v8474_v43  ;;  %v8552_v43 = vld [vmem:[%s11291_s5 + $0x70c] ss:$16 sps:$4 sm:$0xff]  }
 0x2eb   : > { %3338 = vmatpush1.bf16.msra.mxu1 %v8469_v44  ;;  %v8547_v44 = vld [vmem:[%s11291_s5 + $0x700] ss:$16 sps:$4 sm:$0xff]  }
 0x2ec   : > { %3420 = vmatpush1.bf16.msra.mxu0 %v8472_v46  ;;  %3339 = vmatprep.subr.bf16.mxu1 %v8477_v47  ;;  %v8550_v46 = vld [vmem:[%s11291_s5 + $0x708] ss:$16 sps:$4 sm:$0xff]   ;;  %v8555_v47 = vld [vmem:[%s11291_s5 + $0x724] ss:$16 sps:$4 sm:$0xff]  }
 0x2ed   : > { %3421 = vmatprep.subr.bf16.mxu0 %v8480_v48  ;;  %v8558_v48 = vld [vmem:[%s11291_s5 + $0x72c] ss:$16 sps:$4 sm:$0xff]  }
 0x2ef   : > { %3340 = vmatpush1.bf16.msra.mxu1 %v8475_v50  ;;  %v8553_v50 = vld [vmem:[%s11291_s5 + $0x720] ss:$16 sps:$4 sm:$0xff]  }
 0x2f0   : > { %3422 = vmatpush1.bf16.msra.mxu0 %v8478_v51  ;;  %3341 = vmatprep.subr.bf16.mxu1 %v8483_v41  ;;  %v8556_v51 = vld [vmem:[%s11291_s5 + $0x728] ss:$16 sps:$4 sm:$0xff]   ;;  %v8561_v41 = vld [vmem:[%s11291_s5 + $0x744] ss:$16 sps:$4 sm:$0xff]  }
 0x2f1   : > { %3423 = vmatprep.subr.bf16.mxu0 %v8486_v53  ;;  %v8564_v53 = vld [vmem:[%s11291_s5 + $0x74c] ss:$16 sps:$4 sm:$0xff]  }
 0x2f3   : > { %3342 = vmatpush1.bf16.msra.mxu1 %v8481_v54  ;;  %v8559_v54 = vld [vmem:[%s11291_s5 + $0x740] ss:$16 sps:$4 sm:$0xff]  }
 0x2f4   : > { %3424 = vmatpush1.bf16.msra.mxu0 %v8484_v55  ;;  %3343 = vmatprep.subr.bf16.mxu1 %v8489_v56  ;;  %v8562_v55 = vld [vmem:[%s11291_s5 + $0x748] ss:$16 sps:$4 sm:$0xff]   ;;  %v8567_v56 = vld [vmem:[%s11291_s5 + $0x764] ss:$16 sps:$4 sm:$0xff]  }
 0x2f5   : > { %3425 = vmatprep.subr.bf16.mxu0 %v8492_v57  ;;  %v8570_v57 = vld [vmem:[%s11291_s5 + $0x76c] ss:$16 sps:$4 sm:$0xff]  }
 0x2f7   : > { %3344 = vmatpush1.bf16.msra.mxu1 %v8487_v58  ;;  %v8565_v58 = vld [vmem:[%s11291_s5 + $0x760] ss:$16 sps:$4 sm:$0xff]  }
 0x2f8   : > { %3426 = vmatpush1.bf16.msra.mxu0 %v8490_v59  ;;  %3345 = vmatprep.subr.bf16.mxu1 %v8495_v60  ;;  %v8568_v59 = vld [vmem:[%s11291_s5 + $0x768] ss:$16 sps:$4 sm:$0xff]   ;;  %v8573_v60 = vld [vmem:[%s11291_s5 + $0x784] ss:$16 sps:$4 sm:$0xff]  }
 0x2f9   : > { %3427 = vmatprep.subr.bf16.mxu0 %v8498_v61  ;;  %v8576_v61 = vld [vmem:[%s11291_s5 + $0x78c] ss:$16 sps:$4 sm:$0xff]  }
 0x2fb   : > { %3346 = vmatpush1.bf16.msra.mxu1 %v8493_v62  ;;  %v8571_v62 = vld [vmem:[%s11291_s5 + $0x780] ss:$16 sps:$4 sm:$0xff]  }
 0x2fc   : > { %3428 = vmatpush1.bf16.msra.mxu0 %v8496_v0  ;;  %4040 = vmatprep.subr.bf16.mxu1 %v8501_v1  ;;  %v8574_v0 = vld [vmem:[%s11291_s5 + $0x788] ss:$16 sps:$4 sm:$0xff]   ;;  %v8579_v1 = vld [vmem:[%s11291_s5 + $0x7a4] ss:$16 sps:$4 sm:$0xff]  }
 0x2fd   : > { %4122 = vmatprep.subr.bf16.mxu0 %v8504_v4  ;;  %v8582_v4 = vld [vmem:[%s11291_s5 + $0x7ac] ss:$16 sps:$4 sm:$0xff]  }
 0x2fe   : > { %3364 = vmatmul.mubr.bf16.vlgmr.msra.gmra.mrb[32].mxu1 %v1945_v8 }
 0x2ff   : > { %3446 = vmatmul.mubr.bf16.vlgmr.msra.gmra.mrb[16].mxu0 %v1945_v8  ;;  %4041 = vmatpush1.bf16.msra.mxu1 %v8499_v7  ;;  %v8577_v7 = vld [vmem:[%s11291_s5 + $0x7a0] ss:$16 sps:$4 sm:$0xff]   ;;  %v8580_v8 = vld [vmem:[%s11291_s5 + $0x7a8] ss:$16 sps:$4 sm:$0xff]  }
 0x300   : > { %4072 = vmatprep.mubr.bf16.mxu1 %v3555_v11  ;;  %4123 = vmatpush1.bf16.msra.mxu0 %v8502_v9  ;;  %v8585_v9 = vld [vmem:[%s11291_s5 + $0x7c4] ss:$16 sps:$4 sm:$0xff]  }
 0x301   : > { %4154 = vmatprep.mubr.bf16.mxu0 %v3555_v11  ;;  %4042 = vmatprep.subr.bf16.mxu1 %v8507_v10  ;;  %v8588_v10 = vld [vmem:[%s11291_s5 + $0x7cc] ss:$16 sps:$4 sm:$0xff]   ;;  %v8583_v11 = vld [vmem:[%s11291_s5 + $0x7c0] ss:$16 sps:$4 sm:$0xff]  }
 0x302   : > { %4124 = vmatprep.subr.bf16.mxu0 %v8510_v12  ;;  %v8586_v12 = vld [vmem:[%s11291_s5 + $0x7c8] ss:$16 sps:$4 sm:$0xff]  }
 0x303   : > { %4043 = vmatpush1.bf16.msra.mxu1 %v8505_v21  ;;  %v8591_v21 = vld [vmem:[%s11291_s5 + $0x7e4] ss:$16 sps:$4 sm:$0xff]  }
 0x304   : > { %4125 = vmatpush1.bf16.msra.mxu0 %v8508_v13  ;;  %4044 = vmatprep.subr.bf16.mxu1 %v8513_v14  ;;  %v8594_v13 = vld [vmem:[%s11291_s5 + $0x7ec] ss:$16 sps:$4 sm:$0xff]   ;;  %v8589_v14 = vld [vmem:[%s11291_s5 + $0x7e0] ss:$16 sps:$4 sm:$0xff]  }
 0x305   : > { %4126 = vmatprep.subr.bf16.mxu0 %v8516_v15  ;;  %v8592_v15 = vld [vmem:[%s11291_s5 + $0x7e8] ss:$16 sps:$4 sm:$0xff]  }
 0x307   : > { %4045 = vmatpush1.bf16.msra.mxu1 %v8511_v18  ;;  %v8597_v18 = vld [vmem:[%s11291_s5 + $0x804] ss:$16 sps:$4 sm:$0xff]  }
 0x308   : > { %4127 = vmatpush1.bf16.msra.mxu0 %v8514_v16  ;;  %4046 = vmatprep.subr.bf16.mxu1 %v8519_v17  ;;  %v8600_v16 = vld [vmem:[%s11291_s5 + $0x80c] ss:$16 sps:$4 sm:$0xff]   ;;  %v8595_v17 = vld [vmem:[%s11291_s5 + $0x800] ss:$16 sps:$4 sm:$0xff]  }
 0x309   : > { %4128 = vmatprep.subr.bf16.mxu0 %v8522_v19  ;;  %v3554_v19 = vrot.slane %v9725_v5, 1 }
 0x30b   : > { %4047 = vmatpush1.bf16.msra.mxu1 %v8517_v3  ;;  %v8598_v3 = vld [vmem:[%s11291_s5 + $0x808] ss:$16 sps:$4 sm:$0xff]  }
 0x30c   : > { %4129 = vmatpush1.bf16.msra.mxu0 %v8520_v20  ;;  %4048 = vmatprep.subr.bf16.mxu1 %v8525_v22  ;;  %v8603_v20 = vld [vmem:[%s11291_s5 + $0x824] ss:$16 sps:$4 sm:$0xff]   ;;  %v8606_v22 = vld [vmem:[%s11291_s5 + $0x82c] ss:$16 sps:$4 sm:$0xff]  }
 0x30d   : > { %4130 = vmatprep.subr.bf16.mxu0 %v8528_v23  ;;  %v8601_v23 = vld [vmem:[%s11291_s5 + $0x820] ss:$16 sps:$4 sm:$0xff]  }
 0x30f   : > { %4049 = vmatpush1.bf16.msra.mxu1 %v8523_v24  ;;  %v8604_v24 = vld [vmem:[%s11291_s5 + $0x828] ss:$16 sps:$4 sm:$0xff]  }
 0x310   : > { %4131 = vmatpush1.bf16.msra.mxu0 %v8526_v25  ;;  %4050 = vmatprep.subr.bf16.mxu1 %v8531_v26  ;;  %v8609_v25 = vld [vmem:[%s11291_s5 + $0x844] ss:$16 sps:$4 sm:$0xff]   ;;  %v8612_v26 = vld [vmem:[%s11291_s5 + $0x84c] ss:$16 sps:$4 sm:$0xff]  }
 0x311   : > { %4132 = vmatprep.subr.bf16.mxu0 %v8534_v27  ;;  %v8607_v27 = vld [vmem:[%s11291_s5 + $0x840] ss:$16 sps:$4 sm:$0xff]  }
 0x313   : > { %4051 = vmatpush1.bf16.msra.mxu1 %v8529_v28  ;;  %v8610_v28 = vld [vmem:[%s11291_s5 + $0x848] ss:$16 sps:$4 sm:$0xff]  }
 0x314   : > { %4133 = vmatpush1.bf16.msra.mxu0 %v8532_v30  ;;  %4052 = vmatprep.subr.bf16.mxu1 %v8537_v31  ;;  %v8615_v30 = vld [vmem:[%s11291_s5 + $0x864] ss:$16 sps:$4 sm:$0xff]   ;;  %v8618_v31 = vld [vmem:[%s11291_s5 + $0x86c] ss:$16 sps:$4 sm:$0xff]  }
 0x315   : > { %4134 = vmatprep.subr.bf16.mxu0 %v8540_v32  ;;  %v8613_v32 = vld [vmem:[%s11291_s5 + $0x860] ss:$16 sps:$4 sm:$0xff]  }
 0x317   : > { %4053 = vmatpush1.bf16.msra.mxu1 %v8535_v63  ;;  %v8616_v63 = vld [vmem:[%s11291_s5 + $0x868] ss:$16 sps:$4 sm:$0xff]  }
 0x318   : > { %4135 = vmatpush1.bf16.msra.mxu0 %v8538_v35  ;;  %4054 = vmatprep.subr.bf16.mxu1 %v8543_v36  ;;  %v8621_v35 = vld [vmem:[%s11291_s5 + $0x884] ss:$16 sps:$4 sm:$0xff]   ;;  %v8624_v36 = vld [vmem:[%s11291_s5 + $0x88c] ss:$16 sps:$4 sm:$0xff]  }
 0x319   : > { %4136 = vmatprep.subr.bf16.mxu0 %v8546_v37  ;;  %v8619_v37 = vld [vmem:[%s11291_s5 + $0x880] ss:$16 sps:$4 sm:$0xff]  }
 0x31b   : > { %4055 = vmatpush1.bf16.msra.mxu1 %v8541_v38  ;;  %v8622_v38 = vld [vmem:[%s11291_s5 + $0x888] ss:$16 sps:$4 sm:$0xff]  }
 0x31c   : > { %4137 = vmatpush1.bf16.msra.mxu0 %v8544_v40  ;;  %4056 = vmatprep.subr.bf16.mxu1 %v8549_v42  ;;  %v8627_v40 = vld [vmem:[%s11291_s5 + $0x8a4] ss:$16 sps:$4 sm:$0xff]   ;;  %v8630_v42 = vld [vmem:[%s11291_s5 + $0x8ac] ss:$16 sps:$4 sm:$0xff]  }
 0x31d   : > { %4138 = vmatprep.subr.bf16.mxu0 %v8552_v43  ;;  %v8625_v43 = vld [vmem:[%s11291_s5 + $0x8a0] ss:$16 sps:$4 sm:$0xff]  }
 0x31f   : > { %4057 = vmatpush1.bf16.msra.mxu1 %v8547_v44  ;;  %v8628_v44 = vld [vmem:[%s11291_s5 + $0x8a8] ss:$16 sps:$4 sm:$0xff]  }
 0x320   : > { %4139 = vmatpush1.bf16.msra.mxu0 %v8550_v46  ;;  %4058 = vmatprep.subr.bf16.mxu1 %v8555_v47  ;;  %v8633_v46 = vld [vmem:[%s11291_s5 + $0x8c4] ss:$16 sps:$4 sm:$0xff]   ;;  %v8636_v47 = vld [vmem:[%s11291_s5 + $0x8cc] ss:$16 sps:$4 sm:$0xff]  }
 0x321   : > { %4140 = vmatprep.subr.bf16.mxu0 %v8558_v48  ;;  %v8631_v48 = vld [vmem:[%s11291_s5 + $0x8c0] ss:$16 sps:$4 sm:$0xff]  }
 0x323   : > { %4059 = vmatpush1.bf16.msra.mxu1 %v8553_v50  ;;  %v8634_v50 = vld [vmem:[%s11291_s5 + $0x8c8] ss:$16 sps:$4 sm:$0xff]  }
 0x324   : > { %4141 = vmatpush1.bf16.msra.mxu0 %v8556_v51  ;;  %4060 = vmatprep.subr.bf16.mxu1 %v8561_v41  ;;  %v8639_v51 = vld [vmem:[%s11291_s5 + $0x8e4] ss:$16 sps:$4 sm:$0xff]   ;;  %v8642_v41 = vld [vmem:[%s11291_s5 + $0x8ec] ss:$16 sps:$4 sm:$0xff]  }
 0x325   : > { %4142 = vmatprep.subr.bf16.mxu0 %v8564_v53  ;;  %v8637_v53 = vld [vmem:[%s11291_s5 + $0x8e0] ss:$16 sps:$4 sm:$0xff]  }
 0x327   : > { %4061 = vmatpush1.bf16.msra.mxu1 %v8559_v54  ;;  %v8640_v54 = vld [vmem:[%s11291_s5 + $0x8e8] ss:$16 sps:$4 sm:$0xff]  }
 0x328   : > { %4143 = vmatpush1.bf16.msra.mxu0 %v8562_v55  ;;  %4062 = vmatprep.subr.bf16.mxu1 %v8567_v56  ;;  %v8645_v55 = vld [vmem:[%s11291_s5 + $0x904] ss:$16 sps:$4 sm:$0xff]   ;;  %v8648_v56 = vld [vmem:[%s11291_s5 + $0x90c] ss:$16 sps:$4 sm:$0xff]  }
 0x329   : > { %4144 = vmatprep.subr.bf16.mxu0 %v8570_v57  ;;  %v8643_v57 = vld [vmem:[%s11291_s5 + $0x900] ss:$16 sps:$4 sm:$0xff]  }
 0x32b   : > { %4063 = vmatpush1.bf16.msra.mxu1 %v8565_v58  ;;  %v3556_v58 = vrot.slane %v9743_v29, 1 }
 0x32c   : > { %4145 = vmatpush1.bf16.msra.mxu0 %v8568_v59  ;;  %4064 = vmatprep.subr.bf16.mxu1 %v8573_v60  ;;  %v8646_v59 = vld [vmem:[%s11291_s5 + $0x908] ss:$16 sps:$4 sm:$0xff]   ;;  %v8651_v60 = vld [vmem:[%s11291_s5 + $0x924] ss:$16 sps:$4 sm:$0xff]  }
 0x32d   : > { %4146 = vmatprep.subr.bf16.mxu0 %v8576_v61  ;;  %v8654_v61 = vld [vmem:[%s11291_s5 + $0x92c] ss:$16 sps:$4 sm:$0xff]  }
 0x32f   : > { %4065 = vmatpush1.bf16.msra.mxu1 %v8571_v62  ;;  %v8649_v62 = vld [vmem:[%s11291_s5 + $0x920] ss:$16 sps:$4 sm:$0xff]  }
 0x330   : > { %4147 = vmatpush1.bf16.msra.mxu0 %v8574_v0  ;;  %4066 = vmatprep.subr.bf16.mxu1 %v8579_v1  ;;  %v8652_v0 = vld [vmem:[%s11291_s5 + $0x928] ss:$16 sps:$4 sm:$0xff]   ;;  %v8657_v1 = vld [vmem:[%s11291_s5 + $0x944] ss:$16 sps:$4 sm:$0xff]  }
 0x331   : > { %4148 = vmatprep.subr.bf16.mxu0 %v8582_v4  ;;  %v8660_v4 = vld [vmem:[%s11291_s5 + $0x94c] ss:$16 sps:$4 sm:$0xff]  }
 0x333   : > { %4067 = vmatpush1.bf16.msra.mxu1 %v8577_v7  ;;  %v8655_v7 = vld [vmem:[%s11291_s5 + $0x940] ss:$16 sps:$4 sm:$0xff]  }
 0x334   : > { %4149 = vmatpush1.bf16.msra.mxu0 %v8580_v8  ;;  %4068 = vmatprep.subr.bf16.mxu1 %v8585_v9  ;;  %v8658_v8 = vld [vmem:[%s11291_s5 + $0x948] ss:$16 sps:$4 sm:$0xff]   ;;  %v8666_v9 = vld [vmem:[%s11291_s5 + $0x96c] ss:$16 sps:$4 sm:$0xff]  }
 0x335   : > { %4150 = vmatprep.subr.bf16.mxu0 %v8588_v10  ;;  %v8661_v10 = vld [vmem:[%s11291_s5 + $0x960] ss:$16 sps:$4 sm:$0xff]  }
 0x337   : > { %4069 = vmatpush1.bf16.msra.mxu1 %v8583_v11  ;;  %v8664_v11 = vld [vmem:[%s11291_s5 + $0x968] ss:$16 sps:$4 sm:$0xff]  }
 0x338   : > { %4151 = vmatpush1.bf16.msra.mxu0 %v8586_v12  ;;  %4070 = vmatprep.subr.bf16.mxu1 %v8591_v21  ;;  %v8669_v12 = vld [vmem:[%s11291_s5 + $0x984] ss:$16 sps:$4 sm:$0xff]   ;;  %v8672_v21 = vld [vmem:[%s11291_s5 + $0x98c] ss:$16 sps:$4 sm:$0xff]  }
 0x339   : > { %4152 = vmatprep.subr.bf16.mxu0 %v8594_v13  ;;  %v8667_v13 = vld [vmem:[%s11291_s5 + $0x980] ss:$16 sps:$4 sm:$0xff]  }
 0x33b   : > { %4071 = vmatpush1.bf16.msra.mxu1 %v8589_v14  ;;  %v8670_v14 = vld [vmem:[%s11291_s5 + $0x988] ss:$16 sps:$4 sm:$0xff]  }
 0x33c   : > { %4153 = vmatpush1.bf16.msra.mxu0 %v8592_v15  ;;  %4081 = vmatprep.subr.bf16.mxu1 %v8597_v18  ;;  %v8675_v15 = vld [vmem:[%s11291_s5 + $0x9a4] ss:$16 sps:$4 sm:$0xff]   ;;  %v8678_v18 = vld [vmem:[%s11291_s5 + $0x9ac] ss:$16 sps:$4 sm:$0xff]  }
 0x33d   : > { %4163 = vmatprep.subr.bf16.mxu0 %v8600_v16  ;;  %v8673_v16 = vld [vmem:[%s11291_s5 + $0x9a0] ss:$16 sps:$4 sm:$0xff]  }
 0x33e   : > { %4073 = vmatmul.mubr.bf16.vlgmr.msra.gmra.mrb[32].mxu1 %v3554_v19 }
 0x33f   : > { %4155 = vmatmul.mubr.bf16.vlgmr.msra.gmra.mrb[16].mxu0 %v3554_v19  ;;  %4082 = vmatpush1.bf16.msra.mxu1 %v8595_v17  ;;  %v8676_v17 = vld [vmem:[%s11291_s5 + $0x9a8] ss:$16 sps:$4 sm:$0xff]   ;;  %v8681_v19 = vld [vmem:[%s11291_s5 + $0x9c4] ss:$16 sps:$4 sm:$0xff]  }
 0x340   : > { %4164 = vmatpush1.bf16.msra.mxu0 %v8598_v3  ;;  %4083 = vmatprep.subr.bf16.mxu1 %v8603_v20  ;;  %v8684_v3 = vld [vmem:[%s11291_s5 + $0x9cc] ss:$16 sps:$4 sm:$0xff]   ;;  %v8679_v20 = vld [vmem:[%s11291_s5 + $0x9c0] ss:$16 sps:$4 sm:$0xff]  }
 0x341   : > { %4165 = vmatprep.subr.bf16.mxu0 %v8606_v22  ;;  %4113 = vmatprep.mubr.bf16.mxu1 %v9059_v2  ;;  %v8682_v22 = vld [vmem:[%s11291_s5 + $0x9c8] ss:$16 sps:$4 sm:$0xff]  }
 0x342   : > { %4195 = vmatprep.mubr.bf16.mxu0 %v9059_v2 }
 0x343   : > { %4084 = vmatpush1.bf16.msra.mxu1 %v8601_v23  ;;  %v8687_v23 = vld [vmem:[%s11291_s5 + $0x9e4] ss:$16 sps:$4 sm:$0xff]  }
 0x344   : > { %4166 = vmatpush1.bf16.msra.mxu0 %v8604_v24  ;;  %4085 = vmatprep.subr.bf16.mxu1 %v8609_v25  ;;  %v8690_v24 = vld [vmem:[%s11291_s5 + $0x9ec] ss:$16 sps:$4 sm:$0xff]   ;;  %v8685_v25 = vld [vmem:[%s11291_s5 + $0x9e0] ss:$16 sps:$4 sm:$0xff]  }
 0x345   : > { %4167 = vmatprep.subr.bf16.mxu0 %v8612_v26  ;;  %v8688_v26 = vld [vmem:[%s11291_s5 + $0x9e8] ss:$16 sps:$4 sm:$0xff]  }
 0x347   : > { %4086 = vmatpush1.bf16.msra.mxu1 %v8607_v27  ;;  %v8693_v27 = vld [vmem:[%s11291_s5 + $0xa04] ss:$16 sps:$4 sm:$0xff]  }
 0x348   : > { %4168 = vmatpush1.bf16.msra.mxu0 %v8610_v28  ;;  %4087 = vmatprep.subr.bf16.mxu1 %v8615_v30  ;;  %v8696_v28 = vld [vmem:[%s11291_s5 + $0xa0c] ss:$16 sps:$4 sm:$0xff]   ;;  %v8691_v30 = vld [vmem:[%s11291_s5 + $0xa00] ss:$16 sps:$4 sm:$0xff]  }
 0x349   : > { %4169 = vmatprep.subr.bf16.mxu0 %v8618_v31  ;;  %v8694_v31 = vld [vmem:[%s11291_s5 + $0xa08] ss:$16 sps:$4 sm:$0xff]  }
 0x34b   : > { %4088 = vmatpush1.bf16.msra.mxu1 %v8613_v32  ;;  %v8699_v32 = vld [vmem:[%s11291_s5 + $0xa24] ss:$16 sps:$4 sm:$0xff]  }
 0x34c   : > { %4170 = vmatpush1.bf16.msra.mxu0 %v8616_v63  ;;  %4089 = vmatprep.subr.bf16.mxu1 %v8621_v35  ;;  %v8702_v63 = vld [vmem:[%s11291_s5 + $0xa2c] ss:$16 sps:$4 sm:$0xff]   ;;  %v8697_v35 = vld [vmem:[%s11291_s5 + $0xa20] ss:$16 sps:$4 sm:$0xff]  }
 0x34d   : > { %4171 = vmatprep.subr.bf16.mxu0 %v8624_v36  ;;  %v8700_v36 = vld [vmem:[%s11291_s5 + $0xa28] ss:$16 sps:$4 sm:$0xff]  }
 0x34f   : > { %4090 = vmatpush1.bf16.msra.mxu1 %v8619_v37  ;;  %v8705_v37 = vld [vmem:[%s11291_s5 + $0xa44] ss:$16 sps:$4 sm:$0xff]  }
 0x350   : > { %4172 = vmatpush1.bf16.msra.mxu0 %v8622_v38  ;;  %4091 = vmatprep.subr.bf16.mxu1 %v8627_v40  ;;  %v8708_v38 = vld [vmem:[%s11291_s5 + $0xa4c] ss:$16 sps:$4 sm:$0xff]   ;;  %v8703_v40 = vld [vmem:[%s11291_s5 + $0xa40] ss:$16 sps:$4 sm:$0xff]  }
 0x351   : > { %4173 = vmatprep.subr.bf16.mxu0 %v8630_v42  ;;  %v8706_v42 = vld [vmem:[%s11291_s5 + $0xa48] ss:$16 sps:$4 sm:$0xff]  }
 0x353   : > { %4092 = vmatpush1.bf16.msra.mxu1 %v8625_v43  ;;  %v8711_v43 = vld [vmem:[%s11291_s5 + $0xa64] ss:$16 sps:$4 sm:$0xff]  }
 0x354   : > { %4174 = vmatpush1.bf16.msra.mxu0 %v8628_v44  ;;  %4093 = vmatprep.subr.bf16.mxu1 %v8633_v46  ;;  %v8714_v44 = vld [vmem:[%s11291_s5 + $0xa6c] ss:$16 sps:$4 sm:$0xff]   ;;  %v8709_v46 = vld [vmem:[%s11291_s5 + $0xa60] ss:$16 sps:$4 sm:$0xff]  }
 0x355   : > { %4175 = vmatprep.subr.bf16.mxu0 %v8636_v47  ;;  %v8712_v47 = vld [vmem:[%s11291_s5 + $0xa68] ss:$16 sps:$4 sm:$0xff]  }
 0x357   : > { %4094 = vmatpush1.bf16.msra.mxu1 %v8631_v48  ;;  %v8717_v48 = vld [vmem:[%s11291_s5 + $0xa84] ss:$16 sps:$4 sm:$0xff]  }
 0x358   : > { %4176 = vmatpush1.bf16.msra.mxu0 %v8634_v50  ;;  %4095 = vmatprep.subr.bf16.mxu1 %v8639_v51  ;;  %v8720_v50 = vld [vmem:[%s11291_s5 + $0xa8c] ss:$16 sps:$4 sm:$0xff]   ;;  %v8715_v51 = vld [vmem:[%s11291_s5 + $0xa80] ss:$16 sps:$4 sm:$0xff]  }
 0x359   : > { %4177 = vmatprep.subr.bf16.mxu0 %v8642_v41  ;;  %v8718_v41 = vld [vmem:[%s11291_s5 + $0xa88] ss:$16 sps:$4 sm:$0xff]  }
 0x35b   : > { %4096 = vmatpush1.bf16.msra.mxu1 %v8637_v53  ;;  %v8723_v53 = vld [vmem:[%s11291_s5 + $0xaa4] ss:$16 sps:$4 sm:$0xff]  }
 0x35c   : > { %4178 = vmatpush1.bf16.msra.mxu0 %v8640_v54  ;;  %4797 = vmatprep.subr.bf16.mxu1 %v8645_v55  ;;  %v8726_v54 = vld [vmem:[%s11291_s5 + $0xaac] ss:$16 sps:$4 sm:$0xff]   ;;  %v8721_v55 = vld [vmem:[%s11291_s5 + $0xaa0] ss:$16 sps:$4 sm:$0xff]  }
 0x35d   : > { %4879 = vmatprep.subr.bf16.mxu0 %v8648_v56  ;;  %v8724_v56 = vld [vmem:[%s11291_s5 + $0xaa8] ss:$16 sps:$4 sm:$0xff]  }
 0x35e   : > { %4114 = vmatmul.mubr.bf16.vlgmr.msra.gmra.mrb[32].mxu1 %v3556_v58 }
 0x35f   : > { %4196 = vmatmul.mubr.bf16.vlgmr.msra.gmra.mrb[16].mxu0 %v3556_v58  ;;  %4798 = vmatpush1.bf16.msra.mxu1 %v8643_v57  ;;  %v8729_v57 = vld [vmem:[%s11291_s5 + $0xac4] ss:$16 sps:$4 sm:$0xff]   ;;  %v8732_v58 = vld [vmem:[%s11291_s5 + $0xacc] ss:$16 sps:$4 sm:$0xff]  }
 0x360   : > { %4829 = vmatprep.mubr.bf16.mxu1 %v9751_v33  ;;  %4880 = vmatpush1.bf16.msra.mxu0 %v8646_v59  ;;  %v8727_v59 = vld [vmem:[%s11291_s5 + $0xac0] ss:$16 sps:$4 sm:$0xff]  }
 0x361   : > { %4911 = vmatprep.mubr.bf16.mxu0 %v9751_v33  ;;  %4799 = vmatprep.subr.bf16.mxu1 %v8651_v60  ;;  %v8663_v33 = vld [vmem:[%s11291_s5 + $0x964] ss:$16 sps:$4 sm:$0xff]   ;;  %v8730_v60 = vld [vmem:[%s11291_s5 + $0xac8] ss:$16 sps:$4 sm:$0xff]  }
 0x362   : > { %4881 = vmatprep.subr.bf16.mxu0 %v8654_v61  ;;  %v8735_v61 = vld [vmem:[%s11291_s5 + $0xae4] ss:$16 sps:$4 sm:$0xff]  }
 0x363   : > { %4800 = vmatpush1.bf16.msra.mxu1 %v8649_v62  ;;  %v8738_v62 = vld [vmem:[%s11291_s5 + $0xaec] ss:$16 sps:$4 sm:$0xff]  }
 0x364   : > { %4882 = vmatpush1.bf16.msra.mxu0 %v8652_v0  ;;  %4801 = vmatprep.subr.bf16.mxu1 %v8657_v1  ;;  %v8733_v0 = vld [vmem:[%s11291_s5 + $0xae0] ss:$16 sps:$4 sm:$0xff]   ;;  %v8736_v1 = vld [vmem:[%s11291_s5 + $0xae8] ss:$16 sps:$4 sm:$0xff]  }
 0x365   : > { %4883 = vmatprep.subr.bf16.mxu0 %v8660_v4  ;;  %v8741_v4 = vld [vmem:[%s11291_s5 + $0xb04] ss:$16 sps:$4 sm:$0xff]  }
 0x367   : > { %4802 = vmatpush1.bf16.msra.mxu1 %v8655_v7  ;;  %v8744_v7 = vld [vmem:[%s11291_s5 + $0xb0c] ss:$16 sps:$4 sm:$0xff]  }
 0x368   : > { %4884 = vmatpush1.bf16.msra.mxu0 %v8658_v8  ;;  %4803 = vmatprep.subr.bf16.mxu1 %v8663_v33  ;;  %v8739_v8 = vld [vmem:[%s11291_s5 + $0xb00] ss:$16 sps:$4 sm:$0xff]   ;;  %v8742_v33 = vld [vmem:[%s11291_s5 + $0xb08] ss:$16 sps:$4 sm:$0xff]  }
 0x369   : > { %4885 = vmatprep.subr.bf16.mxu0 %v8666_v9  ;;  %v8747_v9 = vld [vmem:[%s11291_s5 + $0xb24] ss:$16 sps:$4 sm:$0xff]  }
 0x36b   : > { %4804 = vmatpush1.bf16.msra.mxu1 %v8661_v10  ;;  %v8750_v10 = vld [vmem:[%s11291_s5 + $0xb2c] ss:$16 sps:$4 sm:$0xff]  }
 0x36c   : > { %4886 = vmatpush1.bf16.msra.mxu0 %v8664_v11  ;;  %4805 = vmatprep.subr.bf16.mxu1 %v8669_v12  ;;  %v8745_v11 = vld [vmem:[%s11291_s5 + $0xb20] ss:$16 sps:$4 sm:$0xff]   ;;  %v8748_v12 = vld [vmem:[%s11291_s5 + $0xb28] ss:$16 sps:$4 sm:$0xff]  }
 0x36d   : > { %4887 = vmatprep.subr.bf16.mxu0 %v8672_v21  ;;  %v8753_v21 = vld [vmem:[%s11291_s5 + $0xb44] ss:$16 sps:$4 sm:$0xff]  }
 0x36f   : > { %4806 = vmatpush1.bf16.msra.mxu1 %v8667_v13  ;;  %v8751_v13 = vld [vmem:[%s11291_s5 + $0xb40] ss:$16 sps:$4 sm:$0xff]  }
 0x370   : > { %4888 = vmatpush1.bf16.msra.mxu0 %v8670_v14  ;;  %4807 = vmatprep.subr.bf16.mxu1 %v8675_v15  ;;  %v8754_v14 = vld [vmem:[%s11291_s5 + $0xb48] ss:$16 sps:$4 sm:$0xff]   ;;  %v8759_v15 = vld [vmem:[%s11291_s5 + $0xb64] ss:$16 sps:$4 sm:$0xff]  }
 0x371   : > { %4889 = vmatprep.subr.bf16.mxu0 %v8678_v18  ;;  %v8762_v18 = vld [vmem:[%s11291_s5 + $0xb6c] ss:$16 sps:$4 sm:$0xff]  }
 0x373   : > { %4808 = vmatpush1.bf16.msra.mxu1 %v8673_v16  ;;  %v8757_v16 = vld [vmem:[%s11291_s5 + $0xb60] ss:$16 sps:$4 sm:$0xff]  }
 0x374   : > { %4890 = vmatpush1.bf16.msra.mxu0 %v8676_v17  ;;  %4809 = vmatprep.subr.bf16.mxu1 %v8681_v19  ;;  %v8760_v17 = vld [vmem:[%s11291_s5 + $0xb68] ss:$16 sps:$4 sm:$0xff]   ;;  %v8765_v19 = vld [vmem:[%s11291_s5 + $0xb84] ss:$16 sps:$4 sm:$0xff]  }
 0x375   : > { %4891 = vmatprep.subr.bf16.mxu0 %v8684_v3  ;;  %v8768_v3 = vld [vmem:[%s11291_s5 + $0xb8c] ss:$16 sps:$4 sm:$0xff]  }
 0x377   : > { %4810 = vmatpush1.bf16.msra.mxu1 %v8679_v20  ;;  %v8763_v20 = vld [vmem:[%s11291_s5 + $0xb80] ss:$16 sps:$4 sm:$0xff]  }
 0x378   : > { %4892 = vmatpush1.bf16.msra.mxu0 %v8682_v22  ;;  %4811 = vmatprep.subr.bf16.mxu1 %v8687_v23  ;;  %v8766_v22 = vld [vmem:[%s11291_s5 + $0xb88] ss:$16 sps:$4 sm:$0xff]   ;;  %v8771_v23 = vld [vmem:[%s11291_s5 + $0xba4] ss:$16 sps:$4 sm:$0xff]  }
 0x379   : > { %4893 = vmatprep.subr.bf16.mxu0 %v8690_v24  ;;  %v8774_v24 = vld [vmem:[%s11291_s5 + $0xbac] ss:$16 sps:$4 sm:$0xff]  }
 0x37b   : > { %4812 = vmatpush1.bf16.msra.mxu1 %v8685_v25  ;;  %v8769_v25 = vld [vmem:[%s11291_s5 + $0xba0] ss:$16 sps:$4 sm:$0xff]  }
 0x37c   : > { %4894 = vmatpush1.bf16.msra.mxu0 %v8688_v26  ;;  %4813 = vmatprep.subr.bf16.mxu1 %v8693_v27  ;;  %v8772_v26 = vld [vmem:[%s11291_s5 + $0xba8] ss:$16 sps:$4 sm:$0xff]   ;;  %v8777_v27 = vld [vmem:[%s11291_s5 + $0xbc4] ss:$16 sps:$4 sm:$0xff]  }
 0x37d   : > { %4895 = vmatprep.subr.bf16.mxu0 %v8696_v28  ;;  %v8780_v28 = vld [vmem:[%s11291_s5 + $0xbcc] ss:$16 sps:$4 sm:$0xff]  }
 0x37f   : > { %4814 = vmatpush1.bf16.msra.mxu1 %v8691_v30  ;;  %v8775_v30 = vld [vmem:[%s11291_s5 + $0xbc0] ss:$16 sps:$4 sm:$0xff]  }
 0x380   : > { %4896 = vmatpush1.bf16.msra.mxu0 %v8694_v31  ;;  %4815 = vmatprep.subr.bf16.mxu1 %v8699_v32  ;;  %v8778_v31 = vld [vmem:[%s11291_s5 + $0xbc8] ss:$16 sps:$4 sm:$0xff]   ;;  %v8783_v32 = vld [vmem:[%s11291_s5 + $0xbe4] ss:$16 sps:$4 sm:$0xff]  }
 0x381   : > { %4897 = vmatprep.subr.bf16.mxu0 %v8702_v63  ;;  %v8786_v63 = vld [vmem:[%s11291_s5 + $0xbec] ss:$16 sps:$4 sm:$0xff]  }
 0x383   : > { %4816 = vmatpush1.bf16.msra.mxu1 %v8697_v35  ;;  %v8781_v35 = vld [vmem:[%s11291_s5 + $0xbe0] ss:$16 sps:$4 sm:$0xff]  }
 0x384   : > { %4898 = vmatpush1.bf16.msra.mxu0 %v8700_v36  ;;  %4817 = vmatprep.subr.bf16.mxu1 %v8705_v37  ;;  %v8784_v36 = vld [vmem:[%s11291_s5 + $0xbe8] ss:$16 sps:$4 sm:$0xff]   ;;  %v8789_v37 = vld [vmem:[%s11291_s5 + $0xc04] ss:$16 sps:$4 sm:$0xff]  }
 0x385   : > { %4899 = vmatprep.subr.bf16.mxu0 %v8708_v38  ;;  %v8792_v38 = vld [vmem:[%s11291_s5 + $0xc0c] ss:$16 sps:$4 sm:$0xff]  }
 0x387   : > { %4818 = vmatpush1.bf16.msra.mxu1 %v8703_v40  ;;  %v8787_v40 = vld [vmem:[%s11291_s5 + $0xc00] ss:$16 sps:$4 sm:$0xff]  }
 0x388   : > { %4900 = vmatpush1.bf16.msra.mxu0 %v8706_v42  ;;  %4819 = vmatprep.subr.bf16.mxu1 %v8711_v43  ;;  %v8790_v42 = vld [vmem:[%s11291_s5 + $0xc08] ss:$16 sps:$4 sm:$0xff]   ;;  %v8795_v43 = vld [vmem:[%s11291_s5 + $0xc24] ss:$16 sps:$4 sm:$0xff]  }
 0x389   : > { %4901 = vmatprep.subr.bf16.mxu0 %v8714_v44  ;;  %v5063_v44 = vrot.slane %v9728_v6, 2  ;;  %v8801_v6 = vld [vmem:[%s11291_s5 + $0xc44] ss:$16 sps:$4 sm:$0xff]  }
 0x38b   : > { %4820 = vmatpush1.bf16.msra.mxu1 %v8709_v46  ;;  %v8798_v46 = vld [vmem:[%s11291_s5 + $0xc2c] ss:$16 sps:$4 sm:$0xff]  }
 0x38c   : > { %4902 = vmatpush1.bf16.msra.mxu0 %v8712_v47  ;;  %4821 = vmatprep.subr.bf16.mxu1 %v8717_v48  ;;  %v8793_v47 = vld [vmem:[%s11291_s5 + $0xc20] ss:$16 sps:$4 sm:$0xff]   ;;  %v8796_v48 = vld [vmem:[%s11291_s5 + $0xc28] ss:$16 sps:$4 sm:$0xff]  }
 0x38d   : > { %4903 = vmatprep.subr.bf16.mxu0 %v8720_v50  ;;  %v8799_v50 = vld [vmem:[%s11291_s5 + $0xc40] ss:$16 sps:$4 sm:$0xff]  }
 0x38f   : > { %4822 = vmatpush1.bf16.msra.mxu1 %v8715_v51  ;;  %v8802_v51 = vld [vmem:[%s11291_s5 + $0xc48] ss:$16 sps:$4 sm:$0xff]  }
 0x390   : > { %4904 = vmatpush1.bf16.msra.mxu0 %v8718_v41  ;;  %4823 = vmatprep.subr.bf16.mxu1 %v8723_v53  ;;  %v8807_v41 = vld [vmem:[%s11291_s5 + $0xc64] ss:$16 sps:$4 sm:$0xff]   ;;  %v8810_v53 = vld [vmem:[%s11291_s5 + $0xc6c] ss:$16 sps:$4 sm:$0xff]  }
 0x391   : > { %4905 = vmatprep.subr.bf16.mxu0 %v8726_v54  ;;  %v8805_v54 = vld [vmem:[%s11291_s5 + $0xc60] ss:$16 sps:$4 sm:$0xff]  }
 0x393   : > { %4824 = vmatpush1.bf16.msra.mxu1 %v8721_v55  ;;  %v8808_v55 = vld [vmem:[%s11291_s5 + $0xc68] ss:$16 sps:$4 sm:$0xff]  }
 0x394   : > { %4906 = vmatpush1.bf16.msra.mxu0 %v8724_v56  ;;  %4825 = vmatprep.subr.bf16.mxu1 %v8729_v57  ;;  %v8813_v56 = vld [vmem:[%s11291_s5 + $0xc84] ss:$16 sps:$4 sm:$0xff]   ;;  %v8816_v57 = vld [vmem:[%s11291_s5 + $0xc8c] ss:$16 sps:$4 sm:$0xff]  }
 0x395   : > { %4907 = vmatprep.subr.bf16.mxu0 %v8732_v58  ;;  %v8811_v58 = vld [vmem:[%s11291_s5 + $0xc80] ss:$16 sps:$4 sm:$0xff]  }
 0x397   : > { %4826 = vmatpush1.bf16.msra.mxu1 %v8727_v59  ;;  %v8814_v59 = vld [vmem:[%s11291_s5 + $0xc88] ss:$16 sps:$4 sm:$0xff]  }
 0x398   : > { %4908 = vmatpush1.bf16.msra.mxu0 %v8730_v60  ;;  %4827 = vmatprep.subr.bf16.mxu1 %v8735_v61  ;;  %v8819_v60 = vld [vmem:[%s11291_s5 + $0xca4] ss:$16 sps:$4 sm:$0xff]   ;;  %v8822_v61 = vld [vmem:[%s11291_s5 + $0xcac] ss:$16 sps:$4 sm:$0xff]  }
 0x399   : > { %4909 = vmatprep.subr.bf16.mxu0 %v8738_v62  ;;  %v8817_v62 = vld [vmem:[%s11291_s5 + $0xca0] ss:$16 sps:$4 sm:$0xff]  }
 0x39b   : > { %4828 = vmatpush1.bf16.msra.mxu1 %v8733_v0  ;;  %v8820_v0 = vld [vmem:[%s11291_s5 + $0xca8] ss:$16 sps:$4 sm:$0xff]  }
 0x39c   : > { %4910 = vmatpush1.bf16.msra.mxu0 %v8736_v1  ;;  %4838 = vmatprep.subr.bf16.mxu1 %v8741_v4  ;;  %v8825_v1 = vld [vmem:[%s11291_s5 + $0xcc4] ss:$16 sps:$4 sm:$0xff]   ;;  %v8828_v4 = vld [vmem:[%s11291_s5 + $0xccc] ss:$16 sps:$4 sm:$0xff]  }
 0x39d   : > { %4920 = vmatprep.subr.bf16.mxu0 %v8744_v7  ;;  %v8823_v7 = vld [vmem:[%s11291_s5 + $0xcc0] ss:$16 sps:$4 sm:$0xff]  }
 0x39e   : > { %4830 = vmatmul.mubr.bf16.vlgmr.msra.gmra.mrb[32].mxu1 %v9753_v34 }
 0x39f   : > { %4912 = vmatmul.mubr.bf16.vlgmr.msra.gmra.mrb[16].mxu0 %v9753_v34  ;;  %4839 = vmatpush1.bf16.msra.mxu1 %v8739_v8  ;;  %v8756_v34 = vld [vmem:[%s11291_s5 + $0xb4c] ss:$16 sps:$4 sm:$0xff]   ;;  %v8826_v8 = vld [vmem:[%s11291_s5 + $0xcc8] ss:$16 sps:$4 sm:$0xff]  }
 0x3a0   : > { %4921 = vmatpush1.bf16.msra.mxu0 %v8742_v33  ;;  %4840 = vmatprep.subr.bf16.mxu1 %v8747_v9  ;;  %v8831_v33 = vld [vmem:[%s11291_s5 + $0xce4] ss:$16 sps:$4 sm:$0xff]   ;;  %v8834_v9 = vld [vmem:[%s11291_s5 + $0xcec] ss:$16 sps:$4 sm:$0xff]  }
 0x3a1   : > { %4922 = vmatprep.subr.bf16.mxu0 %v8750_v10  ;;  %4870 = vmatprep.mubr.bf16.mxu1 %v9059_v2  ;;  %v8829_v10 = vld [vmem:[%s11291_s5 + $0xce0] ss:$16 sps:$4 sm:$0xff]  }
 0x3a2   : > { %4952 = vmatprep.mubr.bf16.mxu0 %v9059_v2 }
 0x3a3   : > { %4841 = vmatpush1.bf16.msra.mxu1 %v8745_v11  ;;  %v8832_v11 = vld [vmem:[%s11291_s5 + $0xce8] ss:$16 sps:$4 sm:$0xff]  }
 0x3a4   : > { %4923 = vmatpush1.bf16.msra.mxu0 %v8748_v12  ;;  %4842 = vmatprep.subr.bf16.mxu1 %v8753_v21  ;;  %v8837_v12 = vld [vmem:[%s11291_s5 + $0xd04] ss:$16 sps:$4 sm:$0xff]   ;;  %v8840_v21 = vld [vmem:[%s11291_s5 + $0xd0c] ss:$16 sps:$4 sm:$0xff]  }
 0x3a5   : > { %4924 = vmatprep.subr.bf16.mxu0 %v8756_v34  ;;  %v8835_v34 = vld [vmem:[%s11291_s5 + $0xd00] ss:$16 sps:$4 sm:$0xff]  }
 0x3a7   : > { %4843 = vmatpush1.bf16.msra.mxu1 %v8751_v13  ;;  %v8838_v13 = vld [vmem:[%s11291_s5 + $0xd08] ss:$16 sps:$4 sm:$0xff]  }
 0x3a8   : > { %4925 = vmatpush1.bf16.msra.mxu0 %v8754_v14  ;;  %4844 = vmatprep.subr.bf16.mxu1 %v8759_v15  ;;  %v8843_v14 = vld [vmem:[%s11291_s5 + $0xd24] ss:$16 sps:$4 sm:$0xff]   ;;  %v8846_v15 = vld [vmem:[%s11291_s5 + $0xd2c] ss:$16 sps:$4 sm:$0xff]  }
 0x3a9   : > { %4926 = vmatprep.subr.bf16.mxu0 %v8762_v18  ;;  %v8841_v18 = vld [vmem:[%s11291_s5 + $0xd20] ss:$16 sps:$4 sm:$0xff]  }
 0x3ab   : > { %4845 = vmatpush1.bf16.msra.mxu1 %v8757_v16  ;;  %v8844_v16 = vld [vmem:[%s11291_s5 + $0xd28] ss:$16 sps:$4 sm:$0xff]  }
 0x3ac   : > { %4927 = vmatpush1.bf16.msra.mxu0 %v8760_v17  ;;  %4846 = vmatprep.subr.bf16.mxu1 %v8765_v19  ;;  %v8849_v17 = vld [vmem:[%s11291_s5 + $0xd44] ss:$16 sps:$4 sm:$0xff]   ;;  %v8852_v19 = vld [vmem:[%s11291_s5 + $0xd4c] ss:$16 sps:$4 sm:$0xff]  }
 0x3ad   : > { %4928 = vmatprep.subr.bf16.mxu0 %v8768_v3  ;;  %v8847_v3 = vld [vmem:[%s11291_s5 + $0xd40] ss:$16 sps:$4 sm:$0xff]  }
 0x3af   : > { %4847 = vmatpush1.bf16.msra.mxu1 %v8763_v20  ;;  %v8850_v20 = vld [vmem:[%s11291_s5 + $0xd48] ss:$16 sps:$4 sm:$0xff]  }
 0x3b0   : > { %4929 = vmatpush1.bf16.msra.mxu0 %v8766_v22  ;;  %4848 = vmatprep.subr.bf16.mxu1 %v8771_v23  ;;  %v8855_v22 = vld [vmem:[%s11291_s5 + $0xd64] ss:$16 sps:$4 sm:$0xff]   ;;  %v8858_v23 = vld [vmem:[%s11291_s5 + $0xd6c] ss:$16 sps:$4 sm:$0xff]  }
 0x3b1   : > { %4930 = vmatprep.subr.bf16.mxu0 %v8774_v24  ;;  %v8853_v24 = vld [vmem:[%s11291_s5 + $0xd60] ss:$16 sps:$4 sm:$0xff]  }
 0x3b3   : > { %4849 = vmatpush1.bf16.msra.mxu1 %v8769_v25  ;;  %v8856_v25 = vld [vmem:[%s11291_s5 + $0xd68] ss:$16 sps:$4 sm:$0xff]  }
 0x3b4   : > { %4931 = vmatpush1.bf16.msra.mxu0 %v8772_v26  ;;  %4850 = vmatprep.subr.bf16.mxu1 %v8777_v27  ;;  %v8861_v26 = vld [vmem:[%s11291_s5 + $0xd84] ss:$16 sps:$4 sm:$0xff]   ;;  %v8864_v27 = vld [vmem:[%s11291_s5 + $0xd8c] ss:$16 sps:$4 sm:$0xff]  }
 0x3b5   : > { %4932 = vmatprep.subr.bf16.mxu0 %v8780_v28  ;;  %v8859_v28 = vld [vmem:[%s11291_s5 + $0xd80] ss:$16 sps:$4 sm:$0xff]  }
 0x3b7   : > { %4851 = vmatpush1.bf16.msra.mxu1 %v8775_v30  ;;  %v8862_v30 = vld [vmem:[%s11291_s5 + $0xd88] ss:$16 sps:$4 sm:$0xff]  }
 0x3b8   : > { %4933 = vmatpush1.bf16.msra.mxu0 %v8778_v31  ;;  %4852 = vmatprep.subr.bf16.mxu1 %v8783_v32  ;;  %v8867_v31 = vld [vmem:[%s11291_s5 + $0xda4] ss:$16 sps:$4 sm:$0xff]   ;;  %v8870_v32 = vld [vmem:[%s11291_s5 + $0xdac] ss:$16 sps:$4 sm:$0xff]  }
 0x3b9   : > { %4934 = vmatprep.subr.bf16.mxu0 %v8786_v63  ;;  %v8865_v63 = vld [vmem:[%s11291_s5 + $0xda0] ss:$16 sps:$4 sm:$0xff]  }
 0x3bb   : > { %4853 = vmatpush1.bf16.msra.mxu1 %v8781_v35  ;;  %v8868_v35 = vld [vmem:[%s11291_s5 + $0xda8] ss:$16 sps:$4 sm:$0xff]  }
 0x3bc   : > { %4935 = vmatpush1.bf16.msra.mxu0 %v8784_v36  ;;  %5548 = vmatprep.subr.bf16.mxu1 %v8789_v37  ;;  %v8873_v36 = vld [vmem:[%s11291_s5 + $0xdc4] ss:$16 sps:$4 sm:$0xff]   ;;  %v8876_v37 = vld [vmem:[%s11291_s5 + $0xdcc] ss:$16 sps:$4 sm:$0xff]  }
 0x3bd   : > { %5630 = vmatprep.subr.bf16.mxu0 %v8792_v38  ;;  %v8871_v38 = vld [vmem:[%s11291_s5 + $0xdc0] ss:$16 sps:$4 sm:$0xff]  }
 0x3be   : > { %4871 = vmatmul.mubr.bf16.vlgmr.msra.gmra.mrb[32].mxu1 %v9773_v45 }
 0x3bf   : > { %4953 = vmatmul.mubr.bf16.vlgmr.msra.gmra.mrb[16].mxu0 %v9773_v45  ;;  %5549 = vmatpush1.bf16.msra.mxu1 %v8787_v40  ;;  %v8804_v45 = vld [vmem:[%s11291_s5 + $0xc4c] ss:$16 sps:$4 sm:$0xff]   ;;  %v8874_v40 = vld [vmem:[%s11291_s5 + $0xdc8] ss:$16 sps:$4 sm:$0xff]  }
 0x3c0   : > { %5580 = vmatprep.mubr.bf16.mxu1 %v5063_v44  ;;  %5631 = vmatpush1.bf16.msra.mxu0 %v8790_v42  ;;  %v8879_v42 = vld [vmem:[%s11291_s5 + $0xde4] ss:$16 sps:$4 sm:$0xff]  }
 0x3c1   : > { %5662 = vmatprep.mubr.bf16.mxu0 %v5063_v44  ;;  %5550 = vmatprep.subr.bf16.mxu1 %v8795_v43  ;;  %v8882_v43 = vld [vmem:[%s11291_s5 + $0xdec] ss:$16 sps:$4 sm:$0xff]   ;;  %v8877_v44 = vld [vmem:[%s11291_s5 + $0xde0] ss:$16 sps:$4 sm:$0xff]  }
 0x3c2   : > { %5632 = vmatprep.subr.bf16.mxu0 %v8798_v46  ;;  %v8880_v46 = vld [vmem:[%s11291_s5 + $0xde8] ss:$16 sps:$4 sm:$0xff]  }
 0x3c3   : > { %5551 = vmatpush1.bf16.msra.mxu1 %v8793_v47  ;;  %v8885_v47 = vld [vmem:[%s11291_s5 + $0xe04] ss:$16 sps:$4 sm:$0xff]  }
 0x3c4   : > { %5633 = vmatpush1.bf16.msra.mxu0 %v8796_v48  ;;  %5552 = vmatprep.subr.bf16.mxu1 %v8801_v6  ;;  %v8888_v48 = vld [vmem:[%s11291_s5 + $0xe0c] ss:$16 sps:$4 sm:$0xff]   ;;  %v8883_v6 = vld [vmem:[%s11291_s5 + $0xe00] ss:$16 sps:$4 sm:$0xff]  }
 0x3c5   : > { %5634 = vmatprep.subr.bf16.mxu0 %v8804_v45  ;;  %v5062_v45 = vrot.slane %v9725_v5, 2  ;;  %v8889_v5 = vld [vmem:[%s11291_s5 + $0xe20] ss:$16 sps:$4 sm:$0xff]  }
 0x3c7   : > { %5553 = vmatpush1.bf16.msra.mxu1 %v8799_v50  ;;  %v8886_v50 = vld [vmem:[%s11291_s5 + $0xe08] ss:$16 sps:$4 sm:$0xff]  }
 0x3c8   : > { %5635 = vmatpush1.bf16.msra.mxu0 %v8802_v51  ;;  %5554 = vmatprep.subr.bf16.mxu1 %v8807_v41  ;;  %v8891_v51 = vld [vmem:[%s11291_s5 + $0xe24] ss:$16 sps:$4 sm:$0xff]   ;;  %v8894_v41 = vld [vmem:[%s11291_s5 + $0xe2c] ss:$16 sps:$4 sm:$0xff]  }
 0x3c9   : > { %5636 = vmatprep.subr.bf16.mxu0 %v8810_v53  ;;  %v8892_v53 = vld [vmem:[%s11291_s5 + $0xe28] ss:$16 sps:$4 sm:$0xff]  }
 0x3cb   : > { %5555 = vmatpush1.bf16.msra.mxu1 %v8805_v54  ;;  %v8897_v54 = vld [vmem:[%s11291_s5 + $0xe44] ss:$16 sps:$4 sm:$0xff]  }
 0x3cc   : > { %5637 = vmatpush1.bf16.msra.mxu0 %v8808_v55  ;;  %5556 = vmatprep.subr.bf16.mxu1 %v8813_v56  ;;  %v8900_v55 = vld [vmem:[%s11291_s5 + $0xe4c] ss:$16 sps:$4 sm:$0xff]   ;;  %v8895_v56 = vld [vmem:[%s11291_s5 + $0xe40] ss:$16 sps:$4 sm:$0xff]  }
 0x3cd   : > { %5638 = vmatprep.subr.bf16.mxu0 %v8816_v57  ;;  %v8898_v57 = vld [vmem:[%s11291_s5 + $0xe48] ss:$16 sps:$4 sm:$0xff]  }
 0x3cf   : > { %5557 = vmatpush1.bf16.msra.mxu1 %v8811_v58  ;;  %v8903_v58 = vld [vmem:[%s11291_s5 + $0xe64] ss:$16 sps:$4 sm:$0xff]  }
 0x3d0   : > { %5639 = vmatpush1.bf16.msra.mxu0 %v8814_v59  ;;  %5558 = vmatprep.subr.bf16.mxu1 %v8819_v60  ;;  %v8906_v59 = vld [vmem:[%s11291_s5 + $0xe6c] ss:$16 sps:$4 sm:$0xff]   ;;  %v8901_v60 = vld [vmem:[%s11291_s5 + $0xe60] ss:$16 sps:$4 sm:$0xff]  }
 0x3d1   : > { %5640 = vmatprep.subr.bf16.mxu0 %v8822_v61  ;;  %v8904_v61 = vld [vmem:[%s11291_s5 + $0xe68] ss:$16 sps:$4 sm:$0xff]  }
 0x3d3   : > { %5559 = vmatpush1.bf16.msra.mxu1 %v8817_v62  ;;  %v8909_v62 = vld [vmem:[%s11291_s5 + $0xe84] ss:$16 sps:$4 sm:$0xff]  }
 0x3d4   : > { %5641 = vmatpush1.bf16.msra.mxu0 %v8820_v0  ;;  %5560 = vmatprep.subr.bf16.mxu1 %v8825_v1  ;;  %v8912_v0 = vld [vmem:[%s11291_s5 + $0xe8c] ss:$16 sps:$4 sm:$0xff]   ;;  %v8907_v1 = vld [vmem:[%s11291_s5 + $0xe80] ss:$16 sps:$4 sm:$0xff]  }
 0x3d5   : > { %5642 = vmatprep.subr.bf16.mxu0 %v8828_v4  ;;  %v8910_v4 = vld [vmem:[%s11291_s5 + $0xe88] ss:$16 sps:$4 sm:$0xff]  }
 0x3d7   : > { %5561 = vmatpush1.bf16.msra.mxu1 %v8823_v7  ;;  %v8915_v7 = vld [vmem:[%s11291_s5 + $0xea4] ss:$16 sps:$4 sm:$0xff]  }
 0x3d8   : > { %5643 = vmatpush1.bf16.msra.mxu0 %v8826_v8  ;;  %5562 = vmatprep.subr.bf16.mxu1 %v8831_v33  ;;  %v8918_v8 = vld [vmem:[%s11291_s5 + $0xeac] ss:$16 sps:$4 sm:$0xff]   ;;  %v8913_v33 = vld [vmem:[%s11291_s5 + $0xea0] ss:$16 sps:$4 sm:$0xff]  }
 0x3d9   : > { %5644 = vmatprep.subr.bf16.mxu0 %v8834_v9  ;;  %v8916_v9 = vld [vmem:[%s11291_s5 + $0xea8] ss:$16 sps:$4 sm:$0xff]  }
 0x3db   : > { %5563 = vmatpush1.bf16.msra.mxu1 %v8829_v10  ;;  %v8921_v10 = vld [vmem:[%s11291_s5 + $0xec4] ss:$16 sps:$4 sm:$0xff]  }
 0x3dc   : > { %5645 = vmatpush1.bf16.msra.mxu0 %v8832_v11  ;;  %5564 = vmatprep.subr.bf16.mxu1 %v8837_v12  ;;  %v8924_v11 = vld [vmem:[%s11291_s5 + $0xecc] ss:$16 sps:$4 sm:$0xff]   ;;  %v8919_v12 = vld [vmem:[%s11291_s5 + $0xec0] ss:$16 sps:$4 sm:$0xff]  }
 0x3dd   : > { %5646 = vmatprep.subr.bf16.mxu0 %v8840_v21  ;;  %v8922_v21 = vld [vmem:[%s11291_s5 + $0xec8] ss:$16 sps:$4 sm:$0xff]  }
 0x3df   : > { %5565 = vmatpush1.bf16.msra.mxu1 %v8835_v34  ;;  %v8927_v34 = vld [vmem:[%s11291_s5 + $0xee4] ss:$16 sps:$4 sm:$0xff]  }
 0x3e0   : > { %5647 = vmatpush1.bf16.msra.mxu0 %v8838_v13  ;;  %5566 = vmatprep.subr.bf16.mxu1 %v8843_v14  ;;  %v8930_v13 = vld [vmem:[%s11291_s5 + $0xeec] ss:$16 sps:$4 sm:$0xff]   ;;  %v8925_v14 = vld [vmem:[%s11291_s5 + $0xee0] ss:$16 sps:$4 sm:$0xff]  }
 0x3e1   : > { %5648 = vmatprep.subr.bf16.mxu0 %v8846_v15  ;;  %v8928_v15 = vld [vmem:[%s11291_s5 + $0xee8] ss:$16 sps:$4 sm:$0xff]  }
 0x3e3   : > { %5567 = vmatpush1.bf16.msra.mxu1 %v8841_v18  ;;  %v5064_v18 = vrot.slane %v9743_v29, 2  ;;  %v8936_v29 = vld [vmem:[%s11295_s9 + $0x8] sm:$0xff]  }
 0x3e4   : > { %5649 = vmatpush1.bf16.msra.mxu0 %v8844_v16  ;;  %5568 = vmatprep.subr.bf16.mxu1 %v8849_v17  ;;  %v8931_v16 = vld [vmem:[%s11295_s9 + $0x40] sm:$0xff]  }
 0x3e5   : > { %5650 = vmatprep.subr.bf16.mxu0 %v8852_v19  ;;  %v8932_v17 = vld [vmem:[%s11295_s9] sm:$0xff]   ;;  %v8935_v19 = vld [vmem:[%s11295_s9 + $0x48] sm:$0xff]  }
 0x3e7   : > { %5569 = vmatpush1.bf16.msra.mxu1 %v8847_v3  ;;  %v8939_v3 = vld [vmem:[%s11295_s9 + $0x50] sm:$0xff]  }
 0x3e8   : > { %5651 = vmatpush1.bf16.msra.mxu0 %v8850_v20  ;;  %5570 = vmatprep.subr.bf16.mxu1 %v8855_v22  ;;  %v8940_v20 = vld [vmem:[%s11295_s9 + $0x10] sm:$0xff]   ;;  %v8943_v22 = vld [vmem:[%s11295_s9 + $0x58] sm:$0xff]  }
 0x3e9   : > { %5652 = vmatprep.subr.bf16.mxu0 %v8858_v23  ;;  %v8944_v23 = vld [vmem:[%s11295_s9 + $0x18] sm:$0xff]  }
 0x3eb   : > { %5571 = vmatpush1.bf16.msra.mxu1 %v8853_v24  ;;  %v8947_v24 = vld [vmem:[%s11295_s9 + $0x60] sm:$0xff]  }
 0x3ec   : > { %5653 = vmatpush1.bf16.msra.mxu0 %v8856_v25  ;;  %5572 = vmatprep.subr.bf16.mxu1 %v8861_v26  ;;  %v8948_v25 = vld [vmem:[%s11295_s9 + $0x20] sm:$0xff]  }
 0x3ed   : > { %5654 = vmatprep.subr.bf16.mxu0 %v8864_v27 }
 0x3ef   : > { %5573 = vmatpush1.bf16.msra.mxu1 %v8859_v28 }
 0x3f0   : > { %5655 = vmatpush1.bf16.msra.mxu0 %v8862_v30  ;;  %5574 = vmatprep.subr.bf16.mxu1 %v8867_v31 }
 0x3f1   : > { %5656 = vmatprep.subr.bf16.mxu0 %v8870_v32 }
 0x3f3   : > { %5575 = vmatpush1.bf16.msra.mxu1 %v8865_v63 }
 0x3f4   : > { %5657 = vmatpush1.bf16.msra.mxu0 %v8868_v35  ;;  %5576 = vmatprep.subr.bf16.mxu1 %v8873_v36 }
 0x3f5   : > { %5658 = vmatprep.subr.bf16.mxu0 %v8876_v37 }
 0x3f7   : > { %5577 = vmatpush1.bf16.msra.mxu1 %v8871_v38 }
 0x3f8   : > { %5659 = vmatpush1.bf16.msra.mxu0 %v8874_v40  ;;  %5578 = vmatprep.subr.bf16.mxu1 %v8879_v42 }
 0x3f9   : > { %5660 = vmatprep.subr.bf16.mxu0 %v8882_v43  ;;  %v5720_v43 = vld [vmem:[%s11292_s6] sm:$0x3] }
 0x3fb   : > { %5579 = vmatpush1.bf16.msra.mxu1 %v8877_v44  ;;  %v8933_v44 = vld [vmem:[%s11295_s9 + $0xc0] sm:$0xff]  }
 0x3fc   : > { %5661 = vmatpush1.bf16.msra.mxu0 %v8880_v46  ;;  %5589 = vmatprep.subr.bf16.mxu1 %v8885_v47  ;;  %v5772_v46 = vld [vmem:[%s11293_s7] sm:$0x3] }
 0x3fd   : > { %5671 = vmatprep.subr.bf16.mxu0 %v8888_v48  ;;  %v8934_v47 = vld [vmem:[%s11295_s9 + $0x80] sm:$0xff]   ;;  %v8937_v48 = vld [vmem:[%s11295_s9 + $0xc8] sm:$0xff]  }
 0x3fe   : > { %5581 = vmatmul.mubr.bf16.vlgmr.msra.gmra.mrb[32].mxu1 %v5062_v45 }
 0x3ff   : > { %5663 = vmatmul.mubr.bf16.vlgmr.msra.gmra.mrb[16].mxu0 %v5062_v45  ;;  %5590 = vmatpush1.bf16.msra.mxu1 %v8883_v6  ;;  %v8938_v6 = vld [vmem:[%s11295_s9 + $0x88] sm:$0xff]   ;;  %v8942_v45 = vld [vmem:[%s11295_s9 + $0x90] sm:$0xff]  }
 0x400   : > { %5672 = vmatpush1.bf16.msra.mxu0 %v8886_v50  ;;  %5591 = vmatprep.subr.bf16.mxu1 %v8891_v51  ;;  %v8945_v50 = vld [vmem:[%s11295_s9 + $0xd8] sm:$0xff]  }
 0x401   : > { %5673 = vmatprep.subr.bf16.mxu0 %v8894_v41  ;;  %5621 = vmatprep.mubr.bf16.mxu1 %v9059_v2  ;;  %v8946_v51 = vld [vmem:[%s11295_s9 + $0x98] sm:$0xff]   ;;  %v8949_v41 = vld [vmem:[%s11295_s9 + $0xe0] sm:$0xff]  }
 0x402   : > { %5703 = vmatprep.mubr.bf16.mxu0 %v9059_v2 }
 0x403   : > { %5592 = vmatpush1.bf16.msra.mxu1 %v8889_v5  ;;  %v8950_v5 = vld [vmem:[%s11295_s9 + $0xa0] sm:$0xff]  }
 0x404   : > { %5674 = vmatpush1.bf16.msra.mxu0 %v8892_v53  ;;  %5593 = vmatprep.subr.bf16.mxu1 %v8897_v54  ;;  %v8951_v53 = vld [vmem:[%s11295_s9 + $0x68] sm:$0xff]  }
 0x405   : > { %5675 = vmatprep.subr.bf16.mxu0 %v8900_v55  ;;  %v8952_v54 = vld [vmem:[%s11295_s9 + $0x28] sm:$0xff]  }
 0x406   : > { %v8953_v55 = vld [vmem:[%s11295_s9 + $0xe8] sm:$0xff]  }
 0x407   : > { %5594 = vmatpush1.bf16.msra.mxu1 %v8895_v56  ;;  %v8954_v56 = vld [vmem:[%s11295_s9 + $0xa8] sm:$0xff]  }
 0x408   : > { %5676 = vmatpush1.bf16.msra.mxu0 %v8898_v57  ;;  %5595 = vmatprep.subr.bf16.mxu1 %v8903_v58  ;;  %v8955_v57 = vld [vmem:[%s11295_s9 + $0x70] sm:$0xff]  }
 0x409   : > { %5677 = vmatprep.subr.bf16.mxu0 %v8906_v59  ;;  %v8956_v58 = vld [vmem:[%s11295_s9 + $0x30] sm:$0xff]  }
 0x40a   : > { %v8957_v59 = vld [vmem:[%s11295_s9 + $0xf0] sm:$0xff]  }
 0x40b   : > { %5596 = vmatpush1.bf16.msra.mxu1 %v8901_v60  ;;  %v8958_v60 = vld [vmem:[%s11295_s9 + $0xb0] sm:$0xff]  }
 0x40c   : > { %5678 = vmatpush1.bf16.msra.mxu0 %v8904_v61  ;;  %5597 = vmatprep.subr.bf16.mxu1 %v8909_v62  ;;  %v8959_v61 = vld [vmem:[%s11295_s9 + $0x78] sm:$0xff]  }
 0x40d   : > { %5679 = vmatprep.subr.bf16.mxu0 %v8912_v0  ;;  %v8960_v62 = vld [vmem:[%s11295_s9 + $0x38] sm:$0xff]  }
 0x40e   : > { %v8961_v0 = vld [vmem:[%s11295_s9 + $0xf8] sm:$0xff]  }
 0x40f   : > { %5598 = vmatpush1.bf16.msra.mxu1 %v8907_v1  ;;  %v8962_v1 = vld [vmem:[%s11295_s9 + $0xb8] sm:$0xff]  }
 0x410   : > { %5680 = vmatpush1.bf16.msra.mxu0 %v8910_v4  ;;  %5599 = vmatprep.subr.bf16.mxu1 %v8915_v7  ;;  %v8963_v4 = vld [vmem:[%s11295_s9 + $0x1c0] sm:$0xff]  }
 0x411   : > { %5681 = vmatprep.subr.bf16.mxu0 %v8918_v8  ;;  %v8965_v7 = vld [vmem:[%s11295_s9 + $0x140] sm:$0xff]  }
 0x413   : > { %5600 = vmatpush1.bf16.msra.mxu1 %v8913_v33 }
 0x414   : > { %5682 = vmatpush1.bf16.msra.mxu0 %v8916_v9  ;;  %5601 = vmatprep.subr.bf16.mxu1 %v8921_v10 }
 0x415   : > { %5683 = vmatprep.subr.bf16.mxu0 %v8924_v11  ;;  %v5819_v11 = vld [vmem:[%s11294_s8] sm:$0x3] }
 0x417   : > { %5602 = vmatpush1.bf16.msra.mxu1 %v8919_v12  ;;  %v5824_v12 = vrot.slane %v5819_v11, %v1924_v52  ;;  %v8967_v52 = vld [vmem:[%s11295_s9 + $0x1c8] sm:$0xff]  }
 0x418   : > { %5684 = vmatpush1.bf16.msra.mxu0 %v8922_v21  ;;  %5603 = vmatprep.subr.bf16.mxu1 %v8927_v34  ;;  %v5828_v34 = vrot.slane %v5819_v11, %v1928_v39  ;;  %v8966_v39 = vld [vmem:[%s11295_s9 + $0x100] sm:$0xff]  }
 0x419   : > { %5685 = vmatprep.subr.bf16.mxu0 %v8930_v13 }
 0x41b   : > { %5604 = vmatpush1.bf16.msra.mxu1 %v8925_v14 }
 0x41c   : > { %5686 = vmatpush1.bf16.msra.mxu0 %v8928_v15 }
 0x41d   : > { %7829 = vmatprep.subr.bf16.mxu0 %v8931_v16 }
 0x41e   : > { %5622 = vmatmul.mubr.bf16.vlgmr.msra.gmra.mrb[32].mxu1 %v5064_v18 }
 0x41f   : > { %5704 = vmatmul.mubr.bf16.vlgmr.msra.gmra.mrb[16].mxu0 %v5064_v18  ;;  %5763 = vmatprep.mubr.bf16.mxu1 %v9059_v2 }
 0x420   : > { %7830 = vmatpush3.bf16.msra.mxu0 %v8932_v17 }
 0x421   : > { %7831 = vmatprep.subr.bf16.mxu0 %v8935_v19 }
 0x424   : > { %7832 = vmatpush3.bf16.msra.mxu0 %v8936_v29 }
 0x425   : > { %7833 = vmatprep.subr.bf16.mxu0 %v8939_v3 }
 0x428   : > { %7834 = vmatpush3.bf16.msra.mxu0 %v8940_v20  ;;  %v8964_v20 = vld [vmem:[%s11295_s9 + $0x180] sm:$0xff]  }
 0x429   : > { %7835 = vmatprep.subr.bf16.mxu0 %v8943_v22 }
 0x42c   : > { %7836 = vmatpush3.bf16.msra.mxu0 %v8944_v23  ;;  %v8969_v23 = vld [vmem:[%s11295_s9 + $0x148] sm:$0xff]  }
 0x42d   : > { %7837 = vmatprep.subr.bf16.mxu0 %v8947_v24 }
 0x430   : > { %7838 = vmatpush3.bf16.msra.mxu0 %v8948_v25 }
 0x431   : > { %7839 = vmatprep.subr.bf16.mxu0 %v8951_v53  ;;  %v8994_v53 = vld [vmem:[%s11295_s9 + $0x138] sm:$0xff]  }
 0x434   : > { %7840 = vmatpush3.bf16.msra.mxu0 %v8952_v54 }
 0x435   : > { %7841 = vmatprep.subr.bf16.mxu0 %v8955_v57 }
 0x438   : > { %7842 = vmatpush3.bf16.msra.mxu0 %v8956_v58 }
 0x439   : > { %7843 = vmatprep.subr.bf16.mxu0 %v8959_v61 }
 0x43c   : > { %7844 = vmatpush3.bf16.msra.mxu0 %v8960_v62 }
 0x43d   : > { %7873 = vmatprep.subr.bf16.mxu0 %v8963_v4 }
 0x4f1   : > { %v5623_v26 = vpop.f32.mrb[32].mxu1 }
 0x4f2   : > { %v5705_v27 = vpop.f32.mrb[16].mxu0  ;;  %v5625_v28 = vpop.f32.mrb[33].mxu1 }
 0x4f3   : > { %v5716_v30 = vmax.f32 %v5623_v26, %v5705_v27  ;;  %v5707_v31 = vpop.f32.mrb[17].mxu0  ;;  %v5627_v32 = vpop.f32.mrb[34].mxu1  ;;  %v8968_v26 = vld [vmem:[%s11295_s9 + $0x188] sm:$0xff]   ;;  %v8971_v27 = vld [vmem:[%s11295_s9 + $0x1d0] sm:$0xff]  }
 0x4f4   : > { %v5717_v63 = vmax.f32 %v5625_v28, %v5707_v31  ;;  %v5709_v35 = vpop.f32.mrb[18].mxu0  ;;  %v5628_v36 = vpop.f32.mrb[35].mxu1  ;;  %v8970_v28 = vld [vmem:[%s11295_s9 + $0x108] sm:$0xff]   ;;  %v8972_v31 = vld [vmem:[%s11295_s9 + $0x190] sm:$0xff]   ;;  %v8975_v32 = vld [vmem:[%s11295_s9 + $0x1d8] sm:$0xff]  }
 0x4f5   : > { %v5718_v37 = vpack.c.bf16 %v5716_v30, %v5716_v30  ;;  %v5710_v38 = vpop.f32.mrb[19].mxu0  ;;  %v8973_v30 = vld [vmem:[%s11295_s9 + $0x150] sm:$0xff]   ;;  %v8977_v35 = vld [vmem:[%s11295_s9 + $0x158] sm:$0xff]  }
 0x4f6   : > { %v5719_v40 = vpack.c.bf16 %v5717_v63, %v5717_v63  ;;  %v8974_v63 = vld [vmem:[%s11295_s9 + $0x110] sm:$0xff]   ;;  %v8976_v36 = vld [vmem:[%s11295_s9 + $0x198] sm:$0xff]  }
 0x4f7   : > { %v5726_v42 = vsel %vm1726_vm5, %v5718_v37, 0  ;;  %v8979_v37 = vld [vmem:[%s11295_s9 + $0x1e0] sm:$0xff]   ;;  %v8978_v38 = vld [vmem:[%s11295_s9 + $0x118] sm:$0xff]  }
 0x4f8   : > { %7633 = vmatprep.subr.msk.bf16.mxu1 %vm1726_vm5, %v5719_v40 }
 0x4f9   : > { %5732 = vmatpush1.bf16.msra.mxu1 %v5726_v42 }
 0x4fa   : > { %7635 = vmatprep.subr.msk.bf16.mxu1 %vm1726_vm5, %v5719_v40  ;;  %v8981_v40 = vld [vmem:[%s11295_s9 + $0x160] sm:$0xff]  }
 0x4fc   : > { %7634 = vmatmul.mubr.msk.bf16.vlgmr.msra.gmra.mrb[36].mxu1 %vm5721_vm8, %v5720_v43  ;;  %v8983_v43 = vld [vmem:[%s11295_s9 + $0x1e8] sm:$0xff]  }
 0x4fd   : > { %5777 = vmatpush1.bf16.msra.mxu1 %v5726_v42  ;;  %5808 = vmatprep.mubr.bf16.mxu1 %v9059_v2  ;;  %v8941_v2 = vld [vmem:[%s11295_s9 + $0xd0] sm:$0xff]   ;;  %v8980_v42 = vld [vmem:[%s11295_s9 + $0x1a0] sm:$0xff]  }
 0x4fe   : > { %7807 = vmatprep.subr.bf16.mxu1 %v8933_v44  ;;  %v8982_v44 = vld [vmem:[%s11295_s9 + $0x120] sm:$0xff]  }
 0x504   : > { %7636 = vmatmul.mubr.msk.bf16.vlgmr.msra.gmra.mrb[40].mxu1 %vm5721_vm8, %v5772_v46  ;;  %v8985_v46 = vld [vmem:[%s11295_s9 + $0x168] sm:$0xff]  }
 0x505   : > { %7808 = vmatpush3.bf16.msra.mxu1 %v8934_v47  ;;  %v8984_v47 = vld [vmem:[%s11295_s9 + $0x1a8] sm:$0xff]  }
 0x506   : > { %7809 = vmatprep.subr.bf16.mxu1 %v8937_v48  ;;  %v8987_v48 = vld [vmem:[%s11295_s9 + $0x1f0] sm:$0xff]  }
 0x509   : > { %7810 = vmatpush3.bf16.msra.mxu1 %v8938_v6  ;;  %v8986_v6 = vld [vmem:[%s11295_s9 + $0x128] sm:$0xff]  }
 0x50a   : > { %7811 = vmatprep.subr.bf16.mxu1 %v8941_v2  ;;  %v8989_v2 = vld [vmem:[%s11295_s9 + $0x170] sm:$0xff]  }
 0x50d   : > { %7812 = vmatpush3.bf16.msra.mxu1 %v8942_v45  ;;  %v8988_v45 = vld [vmem:[%s11295_s9 + $0x1b0] sm:$0xff]  }
 0x50e   : > { %7813 = vmatprep.subr.bf16.mxu1 %v8945_v50  ;;  %v8991_v50 = vld [vmem:[%s11295_s9 + $0x1f8] sm:$0xff]  }
 0x511   : > { %7814 = vmatpush3.bf16.msra.mxu1 %v8946_v51  ;;  %v8990_v51 = vld [vmem:[%s11295_s9 + $0x130] sm:$0xff]  }
 0x512   : > { %7815 = vmatprep.subr.bf16.mxu1 %v8949_v41  ;;  %v8993_v41 = vld [vmem:[%s11295_s9 + $0x178] sm:$0xff]  }
 0x515   : > { %7816 = vmatpush3.bf16.msra.mxu1 %v8950_v5  ;;  %v8992_v5 = vld [vmem:[%s11295_s9 + $0x1b8] sm:$0xff]  }
 0x516   : > { %7817 = vmatprep.subr.bf16.mxu1 %v8953_v55 }
 0x519   : > { %7818 = vmatpush3.bf16.msra.mxu1 %v8954_v56 }
 0x51a   : > { %7819 = vmatprep.subr.bf16.mxu1 %v8957_v59 }
 0x51d   : > { %7820 = vmatpush3.bf16.msra.mxu1 %v8958_v60 }
 0x51e   : > { %7821 = vmatprep.subr.bf16.mxu1 %v8961_v0 }
 0x521   : > { %7822 = vmatpush3.bf16.msra.mxu1 %v8962_v1 }
 0x522   : > { %7851 = vmatprep.subr.bf16.mxu1 %v8965_v7 }
 0x5cf   : > { %v5765_v8 = vpop.f32.mrb[36].mxu1 }
 0x5d0   : > { %v5767_v33 = vpop.f32.mrb[37].mxu1 }
 0x5d1   : > { %v5769_v9 = vpop.f32.mrb[38].mxu1 }
 0x5d2   : > { %v5770_v10 = vpop.f32.mrb[39].mxu1 }
 0x5d7   : > { %v5810_v21 = vpop.f32.mrb[40].mxu1 }
 0x5d8   : > { %v5817_v13 = vmax.f32 %v5765_v8, %v5810_v21  ;;  %v5812_v14 = vpop.f32.mrb[41].mxu1 }
 0x5d9   : > { %v5818_v15 = vmax.f32 %v5767_v33, %v5812_v14  ;;  %v5814_v18 = vpop.f32.mrb[42].mxu1 }
 0x5da   : > { %v5831_v16 = vadd.f32 %v5824_v12, %v5817_v13  ;;  %v5815_v17 = vpop.f32.mrb[43].mxu1  ;;  %v6530_v18 = vld [vmem:[%s11296_s10] sm:$0x1] }
 0x5db   : > { %v5832_v19 = vadd.f32 %v5828_v34, %v5818_v15 }
 0x5dc   : > { %v11141_v29 = vpack.c.bf16 %v5831_v16, %v5831_v16 }
 0x5dd   : > { %v5834_v3 = vpack.c.bf16 %v5832_v19, %v5832_v19 }
 0x5de   : > { %v5901_v22 = vshrl.u32 %v11141_v29, 16  ;;  %v6215_v55 = vrot.slane %v11141_v29, 1 }
 0x5df   : > { %6172 = vmatprep.mubr.bf16.mxu0 %v5834_v3  ;;  %v5904_v49 = vshrl.u32 %v5834_v3, 16  ;;  %v6216_v24 = vrot.slane %v5834_v3, 1 }
 0x5e0   : > { %6173 = vmatmul.mubr.bf16.vlgmr.msra.gmra.mrb[20].mxu0 %v11141_v29  ;;  %v6389_v54 = vrot.slane %v5901_v22, 1 }
 0x5e1   : > { %7874 = vmatpush3.bf16.msra.mxu0 %v8964_v20  ;;  %6036 = vmatprep.mubr.bf16.mxu1 %v5904_v49  ;;  %v6390_v25 = vrot.slane %v5904_v49, 1 }
 0x5e2   : > { %6037 = vmatmul.mubr.bf16.vlgmr.msra.gmra.mrb[44].mxu1 %v5901_v22  ;;  %7875 = vmatprep.subr.bf16.mxu0 %v8967_v52 }
 0x5e3   : > { %7852 = vmatpush3.bf16.msra.mxu1 %v8966_v39  ;;  %6347 = vmatprep.mubr.bf16.mxu1 %v6216_v24 }
 0x5e4   : > { %6521 = vmatprep.mubr.bf16.mxu0 %v6390_v25  ;;  %7853 = vmatprep.subr.bf16.mxu1 %v8969_v23 }
 0x5e5   : > { %7876 = vmatpush3.bf16.msra.mxu0 %v8968_v26 }
 0x5e6   : > { %7877 = vmatprep.subr.bf16.mxu0 %v8971_v27 }
 0x5e7   : > { %7854 = vmatpush3.bf16.msra.mxu1 %v8970_v28 }
 0x5e8   : > { %7855 = vmatprep.subr.bf16.mxu1 %v8973_v30 }
 0x5e9   : > { %7878 = vmatpush3.bf16.msra.mxu0 %v8972_v31 }
 0x5ea   : > { %7879 = vmatprep.subr.bf16.mxu0 %v8975_v32 }
 0x5eb   : > { %7856 = vmatpush3.bf16.msra.mxu1 %v8974_v63 }
 0x5ec   : > { %7857 = vmatprep.subr.bf16.mxu1 %v8977_v35 }
 0x5ed   : > { %7880 = vmatpush3.bf16.msra.mxu0 %v8976_v36 }
 0x5ee   : > { %7881 = vmatprep.subr.bf16.mxu0 %v8979_v37 }
 0x5ef   : > { %7858 = vmatpush3.bf16.msra.mxu1 %v8978_v38 }
 0x5f0   : > { %7859 = vmatprep.subr.bf16.mxu1 %v8981_v40 }
 0x5f1   : > { %7882 = vmatpush3.bf16.msra.mxu0 %v8980_v42 }
 0x5f2   : > { %7883 = vmatprep.subr.bf16.mxu0 %v8983_v43 }
 0x5f3   : > { %7860 = vmatpush3.bf16.msra.mxu1 %v8982_v44 }
 0x5f4   : > { %7861 = vmatprep.subr.bf16.mxu1 %v8985_v46 }
 0x5f5   : > { %7884 = vmatpush3.bf16.msra.mxu0 %v8984_v47 }
 0x5f6   : > { %7885 = vmatprep.subr.bf16.mxu0 %v8987_v48 }
 0x5f7   : > { %7862 = vmatpush3.bf16.msra.mxu1 %v8986_v6 }
 0x5f8   : > { %7863 = vmatprep.subr.bf16.mxu1 %v8989_v2 }
 0x5f9   : > { %7886 = vmatpush3.bf16.msra.mxu0 %v8988_v45 }
 0x5fa   : > { %7887 = vmatprep.subr.bf16.mxu0 %v8991_v50 }
 0x5fb   : > { %7864 = vmatpush3.bf16.msra.mxu1 %v8990_v51 }
 0x5fc   : > { %7865 = vmatprep.subr.bf16.mxu1 %v8993_v41 }
 0x5fd   : > { %7888 = vmatpush3.bf16.msra.mxu0 %v8992_v5 }
 0x5ff   : > { %7866 = vmatpush3.bf16.msra.mxu1 %v8994_v53 }
 0x600   : > { %6522 = vmatmul.mubr.bf16.vlgmr.msra.gmra.mrb[24].mxu0 %v6389_v54 }
 0x602   : > { %6348 = vmatmul.mubr.bf16.vlgmr.msra.gmra.mrb[48].mxu1 %v6215_v55 }
 0x6b3   : > { %v7845_v56 = vpop.f32.mrb[20].mxu0 }
 0x6b4   : > { %v7846_v57 = vpop.f32.mrb[21].mxu0 }
 0x6b5   : > { %v7847_v58 = vadd.f32 %v7846_v57, %v7845_v56  ;;  %v7823_v59 = vpop.f32.mrb[44].mxu1  ;;  %v7848_v60 = vpop.f32.mrb[22].mxu0 }
 0x6b6   : > { %v7824_v61 = vpop.f32.mrb[45].mxu1  ;;  %v7849_v62 = vpop.f32.mrb[23].mxu0 }
 0x6b7   : > { %v7825_v0 = vadd.f32 %v7824_v61, %v7823_v59  ;;  %v7826_v1 = vpop.f32.mrb[46].mxu1 }
 0x6b8   : > { %v7827_v4 = vpop.f32.mrb[47].mxu1 }
 0x6b9   : > { %v6175_v7 = vadd.f32 %v7847_v58, %v7825_v0 }
 0x6d3   : > { %v7889_v8 = vpop.f32.mrb[24].mxu0 }
 0x6d4   : > { %v7890_v33 = vpop.f32.mrb[25].mxu0 }
 0x6d5   : > { %v7891_v9 = vadd.f32 %v7890_v33, %v7889_v8  ;;  %v7867_v10 = vpop.f32.mrb[48].mxu1  ;;  %v7892_v11 = vpop.f32.mrb[26].mxu0 }
 0x6d6   : > { %v7868_v12 = vpop.f32.mrb[49].mxu1  ;;  %v7893_v21 = vpop.f32.mrb[27].mxu0 }
 0x6d7   : > { %v7869_v34 = vadd.f32 %v7868_v12, %v7867_v10  ;;  %v7870_v13 = vpop.f32.mrb[50].mxu1 }
 0x6d8   : > { %v7871_v14 = vpop.f32.mrb[51].mxu1 }
 0x6d9   : > { %v6355_v15 = vadd.f32 %v7869_v34, %v6175_v7 }
 0x6db   : > { %v6529_v16 = vadd.f32 %v7891_v9, %v6355_v15 }
 0x6dd   : > { %v6531_v17 = vadd.f32 %v6530_v18, %v6529_v16 }
 0x6df   : > { %v6532_v19 = vmax.f32 %v6531_v17, 0.0 }
 0x6e1   : > { %6533 = vst [vmem:[%s378_s25] sm:$0x1] %v6532_v19 }
 0x6e2   : > { %9008 = shalt.err (!%p9005_p3)
}
 0x6e3   : > { %s9009_s0 = scalar_lea.hbm %s11244_s13, 16  ;;  %s9013_s25 = scalar_lea.hbm %s11297_s11, 32 }
 0x6e4   : > { %p9010_p4 = scmp.ne.s32.totalorder %s11244_s13, %s9009_s0  ;;  %p9014_p9 = scmp.lt.u32.totalorder %s11244_s13, %s11297_s11 }
 0x6e5   : > { %p9015_p10 = scmp.lt.u32.totalorder %s9013_s25, %s9009_s0  ;;  %p9017_p12 = scmp.lt.u32.totalorder %s9009_s0, %s11244_s13 }
 0x6e6   : > { %p9011_p7 = pnand %p9010_p4, %p9161_p5 }
 0x6e7   : > { %p9016_p11 = por %p9015_p10, %p9014_p9 }
 0x6e8   : > { %p9012_p8 = pneg %p9011_p7 }
 0x6e9   : > { %p9018_p13 = por %p9017_p12, %p9016_p11 }
 0x6eb   : > { %p9019_p0 = pnand %p9018_p13, %p9012_p8 }
 0x6ed   : > { %9022 = shalt.err (!%p9019_p0)
}
 0x6ee   : > { %8077 = dma.vmem_to_hbm [thread:$0]  (%p9161_p5), %s11246_s29, 16, %s11244_s13, %s6535_s26  }
 0x6ef PF: > { %p8083_p1 = scmp.ge.s32.totalorder %s9057_s20, 2  ;;  %s6559_s14 = sand.u32 1, %s9045_s17  }
 0x6f0   : > { %s6560_s21 = scalar_lea.sflag [#allocation3], %s6559_s14 }
 0x6f1   : > { %p8080_p2 = pnand %p8083_p1, %p9165_p6 }
 0x6f3   : > { %9040 = dma.done.wait (!%p8080_p2), %s6560_s21, 16  }
 0x6f4   : > { %9042 = vsyncadd (!%p8080_p2), %s6560_s21, 4294967280  ;;  %s11303_s15 = sld [smem:[#allocation5_spill]]  ;;  %p21_p3 = scmp.ge.s32.totalorder %s9148_s23, 4  }
 0x6f5   : > { %s11304_s17 = smov %s9049_s18  ;;  %s11305_s18 = smov %s9053_s19 }
 0x6f6   : > { %s11307_s20 = smov %s9148_s23  ;;  %23 = sbr.rel (!%p21_p3) target bundleno = 5 (0x5), region = 110 }
 0x6fa   : > { %s11306_s19 = smov %s11303_s15 }
 0x6fd   :  { %6564 = vsyncpa [#allocation3], 1 }
 0x6fe   :  { %6566 = vsyncpa [#allocation3 + $0x1], 1 }

</bundles_post_ra>
